<compile_context>
chip_gen: v7x
topology: tpu7x:2x2x1
jax: 0.10.0
libtpu: 0.0.40
codegen_flags: <defaults>
</compile_context>

<pallas_src>
import jax
import jax.numpy as jnp
from jax import lax
from jax.experimental import pallas as pl
from jax.experimental.pallas import tpu as pltpu

# ---------------- configuration (small, consistent with the module) ---------
B = 2            # batch
N = 8            # query sequence length
M = 16           # context sequence length
LATENT_DIM = 32  # query_dim of the cross attention
INPUT_DIM = 24   # context_dim of the cross attention
HEADS = 8        # hard-coded inside CrossSelfAduioTransformer's cross_attn
DIM_HEAD = 16    # hard-coded inside CrossSelfAduioTransformer's cross_attn
INNER = HEADS * DIM_HEAD            # 128
SCALE = DIM_HEAD ** (-0.5)
DEPTH = 2        # exercises the fused layer loop (module default is 1)


def _fused_transformer_kernel(x_ref, ctx_ref, wq_ref, wkvo_ref, bout_ref,
                              o_ref):
  """Single grid step: all layers, all batches, all heads.

  x_ref   : (B*N, LATENT_DIM)        batch folded into rows
  ctx_ref : (B*M, INPUT_DIM)
  wq_ref  : (DEPTH, LATENT_DIM, INNER)
  wkvo_ref: (DEPTH, INPUT_DIM, INNER + HEADS*LATENT_DIM)   [Wk | Wv@Wout fold]
  bout_ref: (DEPTH, 1, LATENT_DIM)
  o_ref   : (B*N, LATENT_DIM)
  """
  x = x_ref[...].astype(jnp.float32)        # (B*N, DQ)
  c = ctx_ref[...].astype(jnp.float32)      # (B*M, DC)

  for layer in range(DEPTH):                # static unroll over layers
    wq = wq_ref[layer]                      # (DQ, INNER)
    wkvo = wkvo_ref[layer]                  # (DC, INNER + H*DQ)
    bout = bout_ref[layer]                  # (1, DQ)

    # Batched-in-rows projections (two MXU matmuls per layer).
    q = jnp.dot(x, wq, preferred_element_type=jnp.float32)      # (B*N, 128)
    kvo = jnp.dot(c, wkvo, preferred_element_type=jnp.float32)  # (B*M, 384)
    k = kvo[:, :INNER]                       # (B*M, 128)
    vo = kvo[:, INNER:]                      # (B*M, HEADS*DQ) = (B*M, 256)

    # Per-(batch, head) attention.  Each head occupies columns
    # [h*DIM_HEAD, (h+1)*DIM_HEAD) of q/k (matching 'b n (h d) -> (b h) n d')
    # and columns [h*DQ, (h+1)*DQ) of the folded vo.  The output projection is
    # already inside vo, so o_b is accumulated directly in latent space.
    outs = []
    for b in range(B):                       # static unroll
      qb = q[b * N:(b + 1) * N]              # (N, 128)
      kb = k[b * M:(b + 1) * M]              # (M, 128)
      vob = vo[b * M:(b + 1) * M]            # (M, 256)
      ob = jnp.zeros((N, LATENT_DIM), jnp.float32)
      for h in range(HEADS):                 # static unroll
        lo = h * DIM_HEAD
        qh = qb[:, lo:lo + DIM_HEAD]         # (N, d)
        kh = kb[:, lo:lo + DIM_HEAD]         # (M, d)
        # q . k^T without materializing a transpose: contract feature dims.
        sim = lax.dot_general(qh, kh, (((1,), (1,)), ((), ())),
                              preferred_element_type=jnp.float32) * SCALE
        sim = sim - jnp.max(sim, axis=-1, keepdims=True)
        p = jnp.exp(sim)
        attn = p / jnp.sum(p, axis=-1, keepdims=True)   # exact (tiny vector)
        ob = ob + jnp.dot(attn,
                          vob[:, h * LATENT_DIM:(h + 1) * LATENT_DIM],
                          preferred_element_type=jnp.float32)  # (N, DQ)
      outs.append(ob + bout)                 # to_out bias
    x = jnp.concatenate(outs, axis=0)        # (B*N, DQ) -> next layer

  o_ref[...] = x.astype(o_ref.dtype)


def cross_self_audio_transformer_forward(x, context, layer_params):
  """Pallas implementation of CrossSelfAduioTransformer.forward (mask=None).

  layer_params: list of (wq, wkv, wout, bout) per layer, weights stored as
  (in_features, out_features).
  """
  b, n, dq = x.shape
  _, m, dc = context.shape
  depth = len(layer_params)

  # ---- weight prep: fold Wout into Wv per head, fuse with Wk --------------
  wq_list, wkvo_list, bout_list = [], [], []
  for (wq, wkv, wout, bout) in layer_params:
    wk = wkv[:, :INNER]                                     # (DC, INNER)
    wv = wkv[:, INNER:]                                     # (DC, INNER)
    # Wvo_h = Wv_h @ Wout_h   -> (DC, HEADS, DQ) -> (DC, HEADS*DQ)
    wvo = jnp.einsum('chd,hdq->chq',
                     wv.reshape(dc, HEADS, DIM_HEAD),
                     wout.reshape(HEADS, DIM_HEAD, dq)).reshape(dc, HEADS * dq)
    wq_list.append(wq)
    wkvo_list.append(jnp.concatenate([wk, wvo], axis=1))    # (DC, 128 + 256)
    bout_list.append(bout)

  wq_s = jnp.stack(wq_list)        # (L, DQ, INNER)
  wkvo_s = jnp.stack(wkvo_list)    # (L, DC, INNER + HEADS*DQ)
  bout_s = jnp.stack(bout_list)    # (L, 1, DQ)

  x2d = x.reshape(b * n, dq)       # batch folded into rows (contiguous)
  c2d = context.reshape(b * m, dc)

  out2d = pl.pallas_call(
      _fused_transformer_kernel,
      out_shape=jax.ShapeDtypeStruct((b * n, dq), x.dtype),
      grid_spec=pltpu.PrefetchScalarGridSpec(
          num_scalar_prefetch=0,
          grid=(1,),  # single step: everything lives in VMEM, no re-DMA
          in_specs=[
              pl.BlockSpec((b * n, dq), lambda i: (0, 0)),
              pl.BlockSpec((b * m, dc), lambda i: (0, 0)),
              pl.BlockSpec((depth, dq, INNER), lambda i: (0, 0, 0)),
              pl.BlockSpec((depth, dc, INNER + HEADS * dq),
                           lambda i: (0, 0, 0)),
              pl.BlockSpec((depth, 1, dq), lambda i: (0, 0, 0)),
          ],
          out_specs=pl.BlockSpec((b * n, dq), lambda i: (0, 0)),
      ),
      compiler_params=pltpu.CompilerParams(
          dimension_semantics=("arbitrary",)),
  )(x2d, c2d, wq_s, wkvo_s, bout_s)

  return out2d.reshape(b, n, dq)


# ---------------------------- pure-JAX reference -----------------------------
def _ref_cross_attn(x, c, wq, wkv, wout, bout):
  b, n, _ = x.shape
  m = c.shape[1]
  q = x @ wq
  kv = c @ wkv
  k, v = kv[..., :INNER], kv[..., INNER:]
  qh = q.reshape(b, n, HEADS, DIM_HEAD).transpose(0, 2, 1, 3)
  kh = k.reshape(b, m, HEADS, DIM_HEAD).transpose(0, 2, 1, 3)
  vh = v.reshape(b, m, HEADS, DIM_HEAD).transpose(0, 2, 1, 3)
  sim = jnp.einsum('bhid,bhjd->bhij', qh, kh) * SCALE
  attn = jax.nn.softmax(sim, axis=-1)
  out = jnp.einsum('bhij,bhjd->bhid', attn, vh)
  out = out.transpose(0, 2, 1, 3).reshape(b, n, INNER)
  return out @ wout + bout


def _ref_forward(x, context, layer_params):
  for (wq, wkv, wout, bout) in layer_params:
    x = _ref_cross_attn(x, context, wq, wkv, wout, bout)
  return x


# --------------------------------- main ---------------------------------------
if __name__ == "__main__":
  key = jax.random.PRNGKey(0)
  kx, kc, *wkeys = jax.random.split(key, 2 + 4 * DEPTH)

  x = jax.random.normal(kx, (B, N, LATENT_DIM), dtype=jnp.float32)
  context = jax.random.normal(kc, (B, M, INPUT_DIM), dtype=jnp.float32)

  # Deterministic parameter init (shapes follow nn.Linear in Attention,
  # stored as (in_features, out_features)).
  layer_params = []
  for l in range(DEPTH):
    k0, k1, k2, k3 = wkeys[4 * l:4 * l + 4]
    wq = jax.random.normal(k0, (LATENT_DIM, INNER), jnp.float32) * 0.05
    wkv = jax.random.normal(k1, (INPUT_DIM, 2 * INNER), jnp.float32) * 0.05
    wout = jax.random.normal(k2, (INNER, LATENT_DIM), jnp.float32) * 0.05
    bout = jax.random.normal(k3, (1, LATENT_DIM), jnp.float32) * 0.05
    layer_params.append((wq, wkv, wout, bout))

  out = cross_self_audio_transformer_forward(x, context, layer_params)
  out = jax.block_until_ready(out)

  ref = _ref_forward(x, context, layer_params)
  assert out.shape == (B, N, LATENT_DIM)
  # Softmax uses the exact reciprocal; the only numerical deltas are f32
  # reassociation from the Wv@Wout fold, well inside this tolerance.
  assert jnp.allclose(out, ref, atol=2e-3, rtol=2e-3), "mismatch vs reference"

  print("KERNEL_OK")
</pallas_src>

<mosaic_0001>
module attributes {stable_mosaic.version = 11 : i64} {
  func.func @_fused_transformer_kernel(%arg0: i32, %arg1: memref<16x32xf32, #tpu.memory_space<vmem>>, %arg2: memref<32x24xf32, #tpu.memory_space<vmem>>, %arg3: memref<2x32x128xf32, #tpu.memory_space<vmem>>, %arg4: memref<2x24x384xf32, #tpu.memory_space<vmem>>, %arg5: memref<2x1x32xf32, #tpu.memory_space<vmem>>, %arg6: memref<16x32xf32, #tpu.memory_space<vmem>>) attributes {dimension_semantics = [#tpu.dimension_semantics<arbitrary>], iteration_bounds = array<i64: 1>, scalar_prefetch = 0 : i64, scratch_operands = 0 : i64, tpu.core_type = #tpu.core_type<tc>, window_params = [{pipeline_mode = #tpu.pipeline_mode<synchronous>, transform_indices = @transform_0, window_bounds = array<i64: 16, 32>}, {pipeline_mode = #tpu.pipeline_mode<synchronous>, transform_indices = @transform_1, window_bounds = array<i64: 32, 24>}, {pipeline_mode = #tpu.pipeline_mode<synchronous>, transform_indices = @transform_2, window_bounds = array<i64: 2, 32, 128>}, {pipeline_mode = #tpu.pipeline_mode<synchronous>, transform_indices = @transform_3, window_bounds = array<i64: 2, 24, 384>}, {pipeline_mode = #tpu.pipeline_mode<synchronous>, transform_indices = @transform_4, window_bounds = array<i64: 2, 1, 32>}, {pipeline_mode = #tpu.pipeline_mode<synchronous>, transform_indices = @transform_5, window_bounds = array<i64: 16, 32>}]} {
    %c0 = arith.constant 0 : index
    %c0_0 = arith.constant 0 : index
    %0 = vector.load %arg1[%c0, %c0_0] : memref<16x32xf32, #tpu.memory_space<vmem>>, vector<16x32xf32>
    %c0_1 = arith.constant 0 : index
    %c0_2 = arith.constant 0 : index
    %1 = vector.load %arg2[%c0_1, %c0_2] : memref<32x24xf32, #tpu.memory_space<vmem>>, vector<32x24xf32>
    %c0_3 = arith.constant 0 : index
    %c0_4 = arith.constant 0 : index
    %c0_5 = arith.constant 0 : index
    %2 = vector.load %arg3[%c0_3, %c0_4, %c0_5] : memref<2x32x128xf32, #tpu.memory_space<vmem>>, vector<1x32x128xf32>
    %3 = vector.shape_cast %2 : vector<1x32x128xf32> to vector<32x128xf32>
    %c0_6 = arith.constant 0 : index
    %c0_7 = arith.constant 0 : index
    %c0_8 = arith.constant 0 : index
    %4 = vector.load %arg4[%c0_6, %c0_7, %c0_8] : memref<2x24x384xf32, #tpu.memory_space<vmem>>, vector<1x24x384xf32>
    %5 = vector.shape_cast %4 : vector<1x24x384xf32> to vector<24x384xf32>
    %c0_9 = arith.constant 0 : index
    %c0_10 = arith.constant 0 : index
    %c0_11 = arith.constant 0 : index
    %6 = vector.load %arg5[%c0_9, %c0_10, %c0_11] : memref<2x1x32xf32, #tpu.memory_space<vmem>>, vector<1x1x32xf32>
    %7 = vector.shape_cast %6 : vector<1x1x32xf32> to vector<1x32xf32>
    %cst = arith.constant dense<0.000000e+00> : vector<16x128xf32>
    %8 = tpu.matmul %0, %3, %cst {dimension_numbers = #tpu.dot_dimension_numbers<[1], [0], [0], [1], [0, 0, 1, 1], [], []>} : vector<16x32xf32>, vector<32x128xf32>, vector<16x128xf32> -> vector<16x128xf32>
    %cst_12 = arith.constant dense<0.000000e+00> : vector<32x384xf32>
    %9 = tpu.matmul %1, %5, %cst_12 {dimension_numbers = #tpu.dot_dimension_numbers<[1], [0], [0], [1], [0, 0, 1, 1], [], []>} : vector<32x24xf32>, vector<24x384xf32>, vector<32x384xf32> -> vector<32x384xf32>
    %10 = vector.extract_strided_slice %9 {offsets = [0, 0], sizes = [32, 128], strides = [1, 1]} : vector<32x384xf32> to vector<32x128xf32>
    %11 = vector.extract_strided_slice %9 {offsets = [0, 128], sizes = [32, 256], strides = [1, 1]} : vector<32x384xf32> to vector<32x256xf32>
    %12 = vector.extract_strided_slice %8 {offsets = [0, 0], sizes = [8, 128], strides = [1, 1]} : vector<16x128xf32> to vector<8x128xf32>
    %13 = vector.extract_strided_slice %10 {offsets = [0, 0], sizes = [16, 128], strides = [1, 1]} : vector<32x128xf32> to vector<16x128xf32>
    %14 = vector.extract_strided_slice %11 {offsets = [0, 0], sizes = [16, 256], strides = [1, 1]} : vector<32x256xf32> to vector<16x256xf32>
    %cst_13 = arith.constant 0.000000e+00 : f32
    %15 = vector.broadcast %cst_13 : f32 to vector<8x32xf32>
    %16 = vector.extract_strided_slice %12 {offsets = [0, 0], sizes = [8, 16], strides = [1, 1]} : vector<8x128xf32> to vector<8x16xf32>
    %17 = vector.extract_strided_slice %13 {offsets = [0, 0], sizes = [16, 16], strides = [1, 1]} : vector<16x128xf32> to vector<16x16xf32>
    %cst_14 = arith.constant dense<0.000000e+00> : vector<8x16xf32>
    %18 = tpu.matmul %16, %17, %cst_14 {dimension_numbers = #tpu.dot_dimension_numbers<[1], [1], [0], [0], [0, 0, 1, 0], [], []>} : vector<8x16xf32>, vector<16x16xf32>, vector<8x16xf32> -> vector<8x16xf32>
    %cst_15 = arith.constant 2.500000e-01 : f32
    %19 = vector.broadcast %cst_15 : f32 to vector<8x16xf32>
    %20 = arith.mulf %18, %19 : vector<8x16xf32>
    %cst_16 = arith.constant dense<0xFF800000> : vector<8xf32>
    %21 = vector.multi_reduction <maximumf>, %20, %cst_16 [1] : vector<8x16xf32> to vector<8xf32>
    %22 = vector.shape_cast %21 : vector<8xf32> to vector<8x1xf32>
    %23 = vector.broadcast %22 : vector<8x1xf32> to vector<8x16xf32>
    %24 = arith.subf %20, %23 : vector<8x16xf32>
    %25 = math.exp %24 : vector<8x16xf32>
    %cst_17 = arith.constant dense<0.000000e+00> : vector<8xf32>
    %26 = vector.multi_reduction <add>, %25, %cst_17 [1] : vector<8x16xf32> to vector<8xf32>
    %27 = vector.shape_cast %26 : vector<8xf32> to vector<8x1xf32>
    %28 = vector.broadcast %27 : vector<8x1xf32> to vector<8x16xf32>
    %29 = arith.divf %25, %28 : vector<8x16xf32>
    %30 = vector.extract_strided_slice %14 {offsets = [0, 0], sizes = [16, 32], strides = [1, 1]} : vector<16x256xf32> to vector<16x32xf32>
    %cst_18 = arith.constant dense<0.000000e+00> : vector<8x32xf32>
    %31 = tpu.matmul %29, %30, %cst_18 {dimension_numbers = #tpu.dot_dimension_numbers<[1], [0], [0], [1], [0, 0, 1, 1], [], []>} : vector<8x16xf32>, vector<16x32xf32>, vector<8x32xf32> -> vector<8x32xf32>
    %32 = arith.addf %15, %31 : vector<8x32xf32>
    %33 = vector.extract_strided_slice %12 {offsets = [0, 16], sizes = [8, 16], strides = [1, 1]} : vector<8x128xf32> to vector<8x16xf32>
    %34 = vector.extract_strided_slice %13 {offsets = [0, 16], sizes = [16, 16], strides = [1, 1]} : vector<16x128xf32> to vector<16x16xf32>
    %cst_19 = arith.constant dense<0.000000e+00> : vector<8x16xf32>
    %35 = tpu.matmul %33, %34, %cst_19 {dimension_numbers = #tpu.dot_dimension_numbers<[1], [1], [0], [0], [0, 0, 1, 0], [], []>} : vector<8x16xf32>, vector<16x16xf32>, vector<8x16xf32> -> vector<8x16xf32>
    %cst_20 = arith.constant 2.500000e-01 : f32
    %36 = vector.broadcast %cst_20 : f32 to vector<8x16xf32>
    %37 = arith.mulf %35, %36 : vector<8x16xf32>
    %cst_21 = arith.constant dense<0xFF800000> : vector<8xf32>
    %38 = vector.multi_reduction <maximumf>, %37, %cst_21 [1] : vector<8x16xf32> to vector<8xf32>
    %39 = vector.shape_cast %38 : vector<8xf32> to vector<8x1xf32>
    %40 = vector.broadcast %39 : vector<8x1xf32> to vector<8x16xf32>
    %41 = arith.subf %37, %40 : vector<8x16xf32>
    %42 = math.exp %41 : vector<8x16xf32>
    %cst_22 = arith.constant dense<0.000000e+00> : vector<8xf32>
    %43 = vector.multi_reduction <add>, %42, %cst_22 [1] : vector<8x16xf32> to vector<8xf32>
    %44 = vector.shape_cast %43 : vector<8xf32> to vector<8x1xf32>
    %45 = vector.broadcast %44 : vector<8x1xf32> to vector<8x16xf32>
    %46 = arith.divf %42, %45 : vector<8x16xf32>
    %47 = vector.extract_strided_slice %14 {offsets = [0, 32], sizes = [16, 32], strides = [1, 1]} : vector<16x256xf32> to vector<16x32xf32>
    %cst_23 = arith.constant dense<0.000000e+00> : vector<8x32xf32>
    %48 = tpu.matmul %46, %47, %cst_23 {dimension_numbers = #tpu.dot_dimension_numbers<[1], [0], [0], [1], [0, 0, 1, 1], [], []>} : vector<8x16xf32>, vector<16x32xf32>, vector<8x32xf32> -> vector<8x32xf32>
    %49 = arith.addf %32, %48 : vector<8x32xf32>
    %50 = vector.extract_strided_slice %12 {offsets = [0, 32], sizes = [8, 16], strides = [1, 1]} : vector<8x128xf32> to vector<8x16xf32>
    %51 = vector.extract_strided_slice %13 {offsets = [0, 32], sizes = [16, 16], strides = [1, 1]} : vector<16x128xf32> to vector<16x16xf32>
    %cst_24 = arith.constant dense<0.000000e+00> : vector<8x16xf32>
    %52 = tpu.matmul %50, %51, %cst_24 {dimension_numbers = #tpu.dot_dimension_numbers<[1], [1], [0], [0], [0, 0, 1, 0], [], []>} : vector<8x16xf32>, vector<16x16xf32>, vector<8x16xf32> -> vector<8x16xf32>
    %cst_25 = arith.constant 2.500000e-01 : f32
    %53 = vector.broadcast %cst_25 : f32 to vector<8x16xf32>
    %54 = arith.mulf %52, %53 : vector<8x16xf32>
    %cst_26 = arith.constant dense<0xFF800000> : vector<8xf32>
    %55 = vector.multi_reduction <maximumf>, %54, %cst_26 [1] : vector<8x16xf32> to vector<8xf32>
    %56 = vector.shape_cast %55 : vector<8xf32> to vector<8x1xf32>
    %57 = vector.broadcast %56 : vector<8x1xf32> to vector<8x16xf32>
    %58 = arith.subf %54, %57 : vector<8x16xf32>
    %59 = math.exp %58 : vector<8x16xf32>
    %cst_27 = arith.constant dense<0.000000e+00> : vector<8xf32>
    %60 = vector.multi_reduction <add>, %59, %cst_27 [1] : vector<8x16xf32> to vector<8xf32>
    %61 = vector.shape_cast %60 : vector<8xf32> to vector<8x1xf32>
    %62 = vector.broadcast %61 : vector<8x1xf32> to vector<8x16xf32>
    %63 = arith.divf %59, %62 : vector<8x16xf32>
    %64 = vector.extract_strided_slice %14 {offsets = [0, 64], sizes = [16, 32], strides = [1, 1]} : vector<16x256xf32> to vector<16x32xf32>
    %cst_28 = arith.constant dense<0.000000e+00> : vector<8x32xf32>
    %65 = tpu.matmul %63, %64, %cst_28 {dimension_numbers = #tpu.dot_dimension_numbers<[1], [0], [0], [1], [0, 0, 1, 1], [], []>} : vector<8x16xf32>, vector<16x32xf32>, vector<8x32xf32> -> vector<8x32xf32>
    %66 = arith.addf %49, %65 : vector<8x32xf32>
    %67 = vector.extract_strided_slice %12 {offsets = [0, 48], sizes = [8, 16], strides = [1, 1]} : vector<8x128xf32> to vector<8x16xf32>
    %68 = vector.extract_strided_slice %13 {offsets = [0, 48], sizes = [16, 16], strides = [1, 1]} : vector<16x128xf32> to vector<16x16xf32>
    %cst_29 = arith.constant dense<0.000000e+00> : vector<8x16xf32>
    %69 = tpu.matmul %67, %68, %cst_29 {dimension_numbers = #tpu.dot_dimension_numbers<[1], [1], [0], [0], [0, 0, 1, 0], [], []>} : vector<8x16xf32>, vector<16x16xf32>, vector<8x16xf32> -> vector<8x16xf32>
    %cst_30 = arith.constant 2.500000e-01 : f32
    %70 = vector.broadcast %cst_30 : f32 to vector<8x16xf32>
    %71 = arith.mulf %69, %70 : vector<8x16xf32>
    %cst_31 = arith.constant dense<0xFF800000> : vector<8xf32>
    %72 = vector.multi_reduction <maximumf>, %71, %cst_31 [1] : vector<8x16xf32> to vector<8xf32>
    %73 = vector.shape_cast %72 : vector<8xf32> to vector<8x1xf32>
    %74 = vector.broadcast %73 : vector<8x1xf32> to vector<8x16xf32>
    %75 = arith.subf %71, %74 : vector<8x16xf32>
    %76 = math.exp %75 : vector<8x16xf32>
    %cst_32 = arith.constant dense<0.000000e+00> : vector<8xf32>
    %77 = vector.multi_reduction <add>, %76, %cst_32 [1] : vector<8x16xf32> to vector<8xf32>
    %78 = vector.shape_cast %77 : vector<8xf32> to vector<8x1xf32>
    %79 = vector.broadcast %78 : vector<8x1xf32> to vector<8x16xf32>
    %80 = arith.divf %76, %79 : vector<8x16xf32>
    %81 = vector.extract_strided_slice %14 {offsets = [0, 96], sizes = [16, 32], strides = [1, 1]} : vector<16x256xf32> to vector<16x32xf32>
    %cst_33 = arith.constant dense<0.000000e+00> : vector<8x32xf32>
    %82 = tpu.matmul %80, %81, %cst_33 {dimension_numbers = #tpu.dot_dimension_numbers<[1], [0], [0], [1], [0, 0, 1, 1], [], []>} : vector<8x16xf32>, vector<16x32xf32>, vector<8x32xf32> -> vector<8x32xf32>
    %83 = arith.addf %66, %82 : vector<8x32xf32>
    %84 = vector.extract_strided_slice %12 {offsets = [0, 64], sizes = [8, 16], strides = [1, 1]} : vector<8x128xf32> to vector<8x16xf32>
    %85 = vector.extract_strided_slice %13 {offsets = [0, 64], sizes = [16, 16], strides = [1, 1]} : vector<16x128xf32> to vector<16x16xf32>
    %cst_34 = arith.constant dense<0.000000e+00> : vector<8x16xf32>
    %86 = tpu.matmul %84, %85, %cst_34 {dimension_numbers = #tpu.dot_dimension_numbers<[1], [1], [0], [0], [0, 0, 1, 0], [], []>} : vector<8x16xf32>, vector<16x16xf32>, vector<8x16xf32> -> vector<8x16xf32>
    %cst_35 = arith.constant 2.500000e-01 : f32
    %87 = vector.broadcast %cst_35 : f32 to vector<8x16xf32>
    %88 = arith.mulf %86, %87 : vector<8x16xf32>
    %cst_36 = arith.constant dense<0xFF800000> : vector<8xf32>
    %89 = vector.multi_reduction <maximumf>, %88, %cst_36 [1] : vector<8x16xf32> to vector<8xf32>
    %90 = vector.shape_cast %89 : vector<8xf32> to vector<8x1xf32>
    %91 = vector.broadcast %90 : vector<8x1xf32> to vector<8x16xf32>
    %92 = arith.subf %88, %91 : vector<8x16xf32>
    %93 = math.exp %92 : vector<8x16xf32>
    %cst_37 = arith.constant dense<0.000000e+00> : vector<8xf32>
    %94 = vector.multi_reduction <add>, %93, %cst_37 [1] : vector<8x16xf32> to vector<8xf32>
    %95 = vector.shape_cast %94 : vector<8xf32> to vector<8x1xf32>
    %96 = vector.broadcast %95 : vector<8x1xf32> to vector<8x16xf32>
    %97 = arith.divf %93, %96 : vector<8x16xf32>
    %98 = vector.extract_strided_slice %14 {offsets = [0, 128], sizes = [16, 32], strides = [1, 1]} : vector<16x256xf32> to vector<16x32xf32>
    %cst_38 = arith.constant dense<0.000000e+00> : vector<8x32xf32>
    %99 = tpu.matmul %97, %98, %cst_38 {dimension_numbers = #tpu.dot_dimension_numbers<[1], [0], [0], [1], [0, 0, 1, 1], [], []>} : vector<8x16xf32>, vector<16x32xf32>, vector<8x32xf32> -> vector<8x32xf32>
    %100 = arith.addf %83, %99 : vector<8x32xf32>
    %101 = vector.extract_strided_slice %12 {offsets = [0, 80], sizes = [8, 16], strides = [1, 1]} : vector<8x128xf32> to vector<8x16xf32>
    %102 = vector.extract_strided_slice %13 {offsets = [0, 80], sizes = [16, 16], strides = [1, 1]} : vector<16x128xf32> to vector<16x16xf32>
    %cst_39 = arith.constant dense<0.000000e+00> : vector<8x16xf32>
    %103 = tpu.matmul %101, %102, %cst_39 {dimension_numbers = #tpu.dot_dimension_numbers<[1], [1], [0], [0], [0, 0, 1, 0], [], []>} : vector<8x16xf32>, vector<16x16xf32>, vector<8x16xf32> -> vector<8x16xf32>
    %cst_40 = arith.constant 2.500000e-01 : f32
    %104 = vector.broadcast %cst_40 : f32 to vector<8x16xf32>
    %105 = arith.mulf %103, %104 : vector<8x16xf32>
    %cst_41 = arith.constant dense<0xFF800000> : vector<8xf32>
    %106 = vector.multi_reduction <maximumf>, %105, %cst_41 [1] : vector<8x16xf32> to vector<8xf32>
    %107 = vector.shape_cast %106 : vector<8xf32> to vector<8x1xf32>
    %108 = vector.broadcast %107 : vector<8x1xf32> to vector<8x16xf32>
    %109 = arith.subf %105, %108 : vector<8x16xf32>
    %110 = math.exp %109 : vector<8x16xf32>
    %cst_42 = arith.constant dense<0.000000e+00> : vector<8xf32>
    %111 = vector.multi_reduction <add>, %110, %cst_42 [1] : vector<8x16xf32> to vector<8xf32>
    %112 = vector.shape_cast %111 : vector<8xf32> to vector<8x1xf32>
    %113 = vector.broadcast %112 : vector<8x1xf32> to vector<8x16xf32>
    %114 = arith.divf %110, %113 : vector<8x16xf32>
    %115 = vector.extract_strided_slice %14 {offsets = [0, 160], sizes = [16, 32], strides = [1, 1]} : vector<16x256xf32> to vector<16x32xf32>
    %cst_43 = arith.constant dense<0.000000e+00> : vector<8x32xf32>
    %116 = tpu.matmul %114, %115, %cst_43 {dimension_numbers = #tpu.dot_dimension_numbers<[1], [0], [0], [1], [0, 0, 1, 1], [], []>} : vector<8x16xf32>, vector<16x32xf32>, vector<8x32xf32> -> vector<8x32xf32>
    %117 = arith.addf %100, %116 : vector<8x32xf32>
    %118 = vector.extract_strided_slice %12 {offsets = [0, 96], sizes = [8, 16], strides = [1, 1]} : vector<8x128xf32> to vector<8x16xf32>
    %119 = vector.extract_strided_slice %13 {offsets = [0, 96], sizes = [16, 16], strides = [1, 1]} : vector<16x128xf32> to vector<16x16xf32>
    %cst_44 = arith.constant dense<0.000000e+00> : vector<8x16xf32>
    %120 = tpu.matmul %118, %119, %cst_44 {dimension_numbers = #tpu.dot_dimension_numbers<[1], [1], [0], [0], [0, 0, 1, 0], [], []>} : vector<8x16xf32>, vector<16x16xf32>, vector<8x16xf32> -> vector<8x16xf32>
    %cst_45 = arith.constant 2.500000e-01 : f32
    %121 = vector.broadcast %cst_45 : f32 to vector<8x16xf32>
    %122 = arith.mulf %120, %121 : vector<8x16xf32>
    %cst_46 = arith.constant dense<0xFF800000> : vector<8xf32>
    %123 = vector.multi_reduction <maximumf>, %122, %cst_46 [1] : vector<8x16xf32> to vector<8xf32>
    %124 = vector.shape_cast %123 : vector<8xf32> to vector<8x1xf32>
    %125 = vector.broadcast %124 : vector<8x1xf32> to vector<8x16xf32>
    %126 = arith.subf %122, %125 : vector<8x16xf32>
    %127 = math.exp %126 : vector<8x16xf32>
    %cst_47 = arith.constant dense<0.000000e+00> : vector<8xf32>
    %128 = vector.multi_reduction <add>, %127, %cst_47 [1] : vector<8x16xf32> to vector<8xf32>
    %129 = vector.shape_cast %128 : vector<8xf32> to vector<8x1xf32>
    %130 = vector.broadcast %129 : vector<8x1xf32> to vector<8x16xf32>
    %131 = arith.divf %127, %130 : vector<8x16xf32>
    %132 = vector.extract_strided_slice %14 {offsets = [0, 192], sizes = [16, 32], strides = [1, 1]} : vector<16x256xf32> to vector<16x32xf32>
    %cst_48 = arith.constant dense<0.000000e+00> : vector<8x32xf32>
    %133 = tpu.matmul %131, %132, %cst_48 {dimension_numbers = #tpu.dot_dimension_numbers<[1], [0], [0], [1], [0, 0, 1, 1], [], []>} : vector<8x16xf32>, vector<16x32xf32>, vector<8x32xf32> -> vector<8x32xf32>
    %134 = arith.addf %117, %133 : vector<8x32xf32>
    %135 = vector.extract_strided_slice %12 {offsets = [0, 112], sizes = [8, 16], strides = [1, 1]} : vector<8x128xf32> to vector<8x16xf32>
    %136 = vector.extract_strided_slice %13 {offsets = [0, 112], sizes = [16, 16], strides = [1, 1]} : vector<16x128xf32> to vector<16x16xf32>
    %cst_49 = arith.constant dense<0.000000e+00> : vector<8x16xf32>
    %137 = tpu.matmul %135, %136, %cst_49 {dimension_numbers = #tpu.dot_dimension_numbers<[1], [1], [0], [0], [0, 0, 1, 0], [], []>} : vector<8x16xf32>, vector<16x16xf32>, vector<8x16xf32> -> vector<8x16xf32>
    %cst_50 = arith.constant 2.500000e-01 : f32
    %138 = vector.broadcast %cst_50 : f32 to vector<8x16xf32>
    %139 = arith.mulf %137, %138 : vector<8x16xf32>
    %cst_51 = arith.constant dense<0xFF800000> : vector<8xf32>
    %140 = vector.multi_reduction <maximumf>, %139, %cst_51 [1] : vector<8x16xf32> to vector<8xf32>
    %141 = vector.shape_cast %140 : vector<8xf32> to vector<8x1xf32>
    %142 = vector.broadcast %141 : vector<8x1xf32> to vector<8x16xf32>
    %143 = arith.subf %139, %142 : vector<8x16xf32>
    %144 = math.exp %143 : vector<8x16xf32>
    %cst_52 = arith.constant dense<0.000000e+00> : vector<8xf32>
    %145 = vector.multi_reduction <add>, %144, %cst_52 [1] : vector<8x16xf32> to vector<8xf32>
    %146 = vector.shape_cast %145 : vector<8xf32> to vector<8x1xf32>
    %147 = vector.broadcast %146 : vector<8x1xf32> to vector<8x16xf32>
    %148 = arith.divf %144, %147 : vector<8x16xf32>
    %149 = vector.extract_strided_slice %14 {offsets = [0, 224], sizes = [16, 32], strides = [1, 1]} : vector<16x256xf32> to vector<16x32xf32>
    %cst_53 = arith.constant dense<0.000000e+00> : vector<8x32xf32>
    %150 = tpu.matmul %148, %149, %cst_53 {dimension_numbers = #tpu.dot_dimension_numbers<[1], [0], [0], [1], [0, 0, 1, 1], [], []>} : vector<8x16xf32>, vector<16x32xf32>, vector<8x32xf32> -> vector<8x32xf32>
    %151 = arith.addf %134, %150 : vector<8x32xf32>
    %152 = vector.broadcast %7 : vector<1x32xf32> to vector<8x32xf32>
    %153 = arith.addf %151, %152 : vector<8x32xf32>
    %154 = vector.extract_strided_slice %8 {offsets = [8, 0], sizes = [8, 128], strides = [1, 1]} : vector<16x128xf32> to vector<8x128xf32>
    %155 = vector.extract_strided_slice %10 {offsets = [16, 0], sizes = [16, 128], strides = [1, 1]} : vector<32x128xf32> to vector<16x128xf32>
    %156 = vector.extract_strided_slice %11 {offsets = [16, 0], sizes = [16, 256], strides = [1, 1]} : vector<32x256xf32> to vector<16x256xf32>
    %cst_54 = arith.constant 0.000000e+00 : f32
    %157 = vector.broadcast %cst_54 : f32 to vector<8x32xf32>
    %158 = vector.extract_strided_slice %154 {offsets = [0, 0], sizes = [8, 16], strides = [1, 1]} : vector<8x128xf32> to vector<8x16xf32>
    %159 = vector.extract_strided_slice %155 {offsets = [0, 0], sizes = [16, 16], strides = [1, 1]} : vector<16x128xf32> to vector<16x16xf32>
    %cst_55 = arith.constant dense<0.000000e+00> : vector<8x16xf32>
    %160 = tpu.matmul %158, %159, %cst_55 {dimension_numbers = #tpu.dot_dimension_numbers<[1], [1], [0], [0], [0, 0, 1, 0], [], []>} : vector<8x16xf32>, vector<16x16xf32>, vector<8x16xf32> -> vector<8x16xf32>
    %cst_56 = arith.constant 2.500000e-01 : f32
    %161 = vector.broadcast %cst_56 : f32 to vector<8x16xf32>
    %162 = arith.mulf %160, %161 : vector<8x16xf32>
    %cst_57 = arith.constant dense<0xFF800000> : vector<8xf32>
    %163 = vector.multi_reduction <maximumf>, %162, %cst_57 [1] : vector<8x16xf32> to vector<8xf32>
    %164 = vector.shape_cast %163 : vector<8xf32> to vector<8x1xf32>
    %165 = vector.broadcast %164 : vector<8x1xf32> to vector<8x16xf32>
    %166 = arith.subf %162, %165 : vector<8x16xf32>
    %167 = math.exp %166 : vector<8x16xf32>
    %cst_58 = arith.constant dense<0.000000e+00> : vector<8xf32>
    %168 = vector.multi_reduction <add>, %167, %cst_58 [1] : vector<8x16xf32> to vector<8xf32>
    %169 = vector.shape_cast %168 : vector<8xf32> to vector<8x1xf32>
    %170 = vector.broadcast %169 : vector<8x1xf32> to vector<8x16xf32>
    %171 = arith.divf %167, %170 : vector<8x16xf32>
    %172 = vector.extract_strided_slice %156 {offsets = [0, 0], sizes = [16, 32], strides = [1, 1]} : vector<16x256xf32> to vector<16x32xf32>
    %cst_59 = arith.constant dense<0.000000e+00> : vector<8x32xf32>
    %173 = tpu.matmul %171, %172, %cst_59 {dimension_numbers = #tpu.dot_dimension_numbers<[1], [0], [0], [1], [0, 0, 1, 1], [], []>} : vector<8x16xf32>, vector<16x32xf32>, vector<8x32xf32> -> vector<8x32xf32>
    %174 = arith.addf %157, %173 : vector<8x32xf32>
    %175 = vector.extract_strided_slice %154 {offsets = [0, 16], sizes = [8, 16], strides = [1, 1]} : vector<8x128xf32> to vector<8x16xf32>
    %176 = vector.extract_strided_slice %155 {offsets = [0, 16], sizes = [16, 16], strides = [1, 1]} : vector<16x128xf32> to vector<16x16xf32>
    %cst_60 = arith.constant dense<0.000000e+00> : vector<8x16xf32>
    %177 = tpu.matmul %175, %176, %cst_60 {dimension_numbers = #tpu.dot_dimension_numbers<[1], [1], [0], [0], [0, 0, 1, 0], [], []>} : vector<8x16xf32>, vector<16x16xf32>, vector<8x16xf32> -> vector<8x16xf32>
    %cst_61 = arith.constant 2.500000e-01 : f32
    %178 = vector.broadcast %cst_61 : f32 to vector<8x16xf32>
    %179 = arith.mulf %177, %178 : vector<8x16xf32>
    %cst_62 = arith.constant dense<0xFF800000> : vector<8xf32>
    %180 = vector.multi_reduction <maximumf>, %179, %cst_62 [1] : vector<8x16xf32> to vector<8xf32>
    %181 = vector.shape_cast %180 : vector<8xf32> to vector<8x1xf32>
    %182 = vector.broadcast %181 : vector<8x1xf32> to vector<8x16xf32>
    %183 = arith.subf %179, %182 : vector<8x16xf32>
    %184 = math.exp %183 : vector<8x16xf32>
    %cst_63 = arith.constant dense<0.000000e+00> : vector<8xf32>
    %185 = vector.multi_reduction <add>, %184, %cst_63 [1] : vector<8x16xf32> to vector<8xf32>
    %186 = vector.shape_cast %185 : vector<8xf32> to vector<8x1xf32>
    %187 = vector.broadcast %186 : vector<8x1xf32> to vector<8x16xf32>
    %188 = arith.divf %184, %187 : vector<8x16xf32>
    %189 = vector.extract_strided_slice %156 {offsets = [0, 32], sizes = [16, 32], strides = [1, 1]} : vector<16x256xf32> to vector<16x32xf32>
    %cst_64 = arith.constant dense<0.000000e+00> : vector<8x32xf32>
    %190 = tpu.matmul %188, %189, %cst_64 {dimension_numbers = #tpu.dot_dimension_numbers<[1], [0], [0], [1], [0, 0, 1, 1], [], []>} : vector<8x16xf32>, vector<16x32xf32>, vector<8x32xf32> -> vector<8x32xf32>
    %191 = arith.addf %174, %190 : vector<8x32xf32>
    %192 = vector.extract_strided_slice %154 {offsets = [0, 32], sizes = [8, 16], strides = [1, 1]} : vector<8x128xf32> to vector<8x16xf32>
    %193 = vector.extract_strided_slice %155 {offsets = [0, 32], sizes = [16, 16], strides = [1, 1]} : vector<16x128xf32> to vector<16x16xf32>
    %cst_65 = arith.constant dense<0.000000e+00> : vector<8x16xf32>
    %194 = tpu.matmul %192, %193, %cst_65 {dimension_numbers = #tpu.dot_dimension_numbers<[1], [1], [0], [0], [0, 0, 1, 0], [], []>} : vector<8x16xf32>, vector<16x16xf32>, vector<8x16xf32> -> vector<8x16xf32>
    %cst_66 = arith.constant 2.500000e-01 : f32
    %195 = vector.broadcast %cst_66 : f32 to vector<8x16xf32>
    %196 = arith.mulf %194, %195 : vector<8x16xf32>
    %cst_67 = arith.constant dense<0xFF800000> : vector<8xf32>
    %197 = vector.multi_reduction <maximumf>, %196, %cst_67 [1] : vector<8x16xf32> to vector<8xf32>
    %198 = vector.shape_cast %197 : vector<8xf32> to vector<8x1xf32>
    %199 = vector.broadcast %198 : vector<8x1xf32> to vector<8x16xf32>
    %200 = arith.subf %196, %199 : vector<8x16xf32>
    %201 = math.exp %200 : vector<8x16xf32>
    %cst_68 = arith.constant dense<0.000000e+00> : vector<8xf32>
    %202 = vector.multi_reduction <add>, %201, %cst_68 [1] : vector<8x16xf32> to vector<8xf32>
    %203 = vector.shape_cast %202 : vector<8xf32> to vector<8x1xf32>
    %204 = vector.broadcast %203 : vector<8x1xf32> to vector<8x16xf32>
    %205 = arith.divf %201, %204 : vector<8x16xf32>
    %206 = vector.extract_strided_slice %156 {offsets = [0, 64], sizes = [16, 32], strides = [1, 1]} : vector<16x256xf32> to vector<16x32xf32>
    %cst_69 = arith.constant dense<0.000000e+00> : vector<8x32xf32>
    %207 = tpu.matmul %205, %206, %cst_69 {dimension_numbers = #tpu.dot_dimension_numbers<[1], [0], [0], [1], [0, 0, 1, 1], [], []>} : vector<8x16xf32>, vector<16x32xf32>, vector<8x32xf32> -> vector<8x32xf32>
    %208 = arith.addf %191, %207 : vector<8x32xf32>
    %209 = vector.extract_strided_slice %154 {offsets = [0, 48], sizes = [8, 16], strides = [1, 1]} : vector<8x128xf32> to vector<8x16xf32>
    %210 = vector.extract_strided_slice %155 {offsets = [0, 48], sizes = [16, 16], strides = [1, 1]} : vector<16x128xf32> to vector<16x16xf32>
    %cst_70 = arith.constant dense<0.000000e+00> : vector<8x16xf32>
    %211 = tpu.matmul %209, %210, %cst_70 {dimension_numbers = #tpu.dot_dimension_numbers<[1], [1], [0], [0], [0, 0, 1, 0], [], []>} : vector<8x16xf32>, vector<16x16xf32>, vector<8x16xf32> -> vector<8x16xf32>
    %cst_71 = arith.constant 2.500000e-01 : f32
    %212 = vector.broadcast %cst_71 : f32 to vector<8x16xf32>
    %213 = arith.mulf %211, %212 : vector<8x16xf32>
    %cst_72 = arith.constant dense<0xFF800000> : vector<8xf32>
    %214 = vector.multi_reduction <maximumf>, %213, %cst_72 [1] : vector<8x16xf32> to vector<8xf32>
    %215 = vector.shape_cast %214 : vector<8xf32> to vector<8x1xf32>
    %216 = vector.broadcast %215 : vector<8x1xf32> to vector<8x16xf32>
    %217 = arith.subf %213, %216 : vector<8x16xf32>
    %218 = math.exp %217 : vector<8x16xf32>
    %cst_73 = arith.constant dense<0.000000e+00> : vector<8xf32>
    %219 = vector.multi_reduction <add>, %218, %cst_73 [1] : vector<8x16xf32> to vector<8xf32>
    %220 = vector.shape_cast %219 : vector<8xf32> to vector<8x1xf32>
    %221 = vector.broadcast %220 : vector<8x1xf32> to vector<8x16xf32>
    %222 = arith.divf %218, %221 : vector<8x16xf32>
    %223 = vector.extract_strided_slice %156 {offsets = [0, 96], sizes = [16, 32], strides = [1, 1]} : vector<16x256xf32> to vector<16x32xf32>
    %cst_74 = arith.constant dense<0.000000e+00> : vector<8x32xf32>
    %224 = tpu.matmul %222, %223, %cst_74 {dimension_numbers = #tpu.dot_dimension_numbers<[1], [0], [0], [1], [0, 0, 1, 1], [], []>} : vector<8x16xf32>, vector<16x32xf32>, vector<8x32xf32> -> vector<8x32xf32>
    %225 = arith.addf %208, %224 : vector<8x32xf32>
    %226 = vector.extract_strided_slice %154 {offsets = [0, 64], sizes = [8, 16], strides = [1, 1]} : vector<8x128xf32> to vector<8x16xf32>
    %227 = vector.extract_strided_slice %155 {offsets = [0, 64], sizes = [16, 16], strides = [1, 1]} : vector<16x128xf32> to vector<16x16xf32>
    %cst_75 = arith.constant dense<0.000000e+00> : vector<8x16xf32>
    %228 = tpu.matmul %226, %227, %cst_75 {dimension_numbers = #tpu.dot_dimension_numbers<[1], [1], [0], [0], [0, 0, 1, 0], [], []>} : vector<8x16xf32>, vector<16x16xf32>, vector<8x16xf32> -> vector<8x16xf32>
    %cst_76 = arith.constant 2.500000e-01 : f32
    %229 = vector.broadcast %cst_76 : f32 to vector<8x16xf32>
    %230 = arith.mulf %228, %229 : vector<8x16xf32>
    %cst_77 = arith.constant dense<0xFF800000> : vector<8xf32>
    %231 = vector.multi_reduction <maximumf>, %230, %cst_77 [1] : vector<8x16xf32> to vector<8xf32>
    %232 = vector.shape_cast %231 : vector<8xf32> to vector<8x1xf32>
    %233 = vector.broadcast %232 : vector<8x1xf32> to vector<8x16xf32>
    %234 = arith.subf %230, %233 : vector<8x16xf32>
    %235 = math.exp %234 : vector<8x16xf32>
    %cst_78 = arith.constant dense<0.000000e+00> : vector<8xf32>
    %236 = vector.multi_reduction <add>, %235, %cst_78 [1] : vector<8x16xf32> to vector<8xf32>
    %237 = vector.shape_cast %236 : vector<8xf32> to vector<8x1xf32>
    %238 = vector.broadcast %237 : vector<8x1xf32> to vector<8x16xf32>
    %239 = arith.divf %235, %238 : vector<8x16xf32>
    %240 = vector.extract_strided_slice %156 {offsets = [0, 128], sizes = [16, 32], strides = [1, 1]} : vector<16x256xf32> to vector<16x32xf32>
    %cst_79 = arith.constant dense<0.000000e+00> : vector<8x32xf32>
    %241 = tpu.matmul %239, %240, %cst_79 {dimension_numbers = #tpu.dot_dimension_numbers<[1], [0], [0], [1], [0, 0, 1, 1], [], []>} : vector<8x16xf32>, vector<16x32xf32>, vector<8x32xf32> -> vector<8x32xf32>
    %242 = arith.addf %225, %241 : vector<8x32xf32>
    %243 = vector.extract_strided_slice %154 {offsets = [0, 80], sizes = [8, 16], strides = [1, 1]} : vector<8x128xf32> to vector<8x16xf32>
    %244 = vector.extract_strided_slice %155 {offsets = [0, 80], sizes = [16, 16], strides = [1, 1]} : vector<16x128xf32> to vector<16x16xf32>
    %cst_80 = arith.constant dense<0.000000e+00> : vector<8x16xf32>
    %245 = tpu.matmul %243, %244, %cst_80 {dimension_numbers = #tpu.dot_dimension_numbers<[1], [1], [0], [0], [0, 0, 1, 0], [], []>} : vector<8x16xf32>, vector<16x16xf32>, vector<8x16xf32> -> vector<8x16xf32>
    %cst_81 = arith.constant 2.500000e-01 : f32
    %246 = vector.broadcast %cst_81 : f32 to vector<8x16xf32>
    %247 = arith.mulf %245, %246 : vector<8x16xf32>
    %cst_82 = arith.constant dense<0xFF800000> : vector<8xf32>
    %248 = vector.multi_reduction <maximumf>, %247, %cst_82 [1] : vector<8x16xf32> to vector<8xf32>
    %249 = vector.shape_cast %248 : vector<8xf32> to vector<8x1xf32>
    %250 = vector.broadcast %249 : vector<8x1xf32> to vector<8x16xf32>
    %251 = arith.subf %247, %250 : vector<8x16xf32>
    %252 = math.exp %251 : vector<8x16xf32>
    %cst_83 = arith.constant dense<0.000000e+00> : vector<8xf32>
    %253 = vector.multi_reduction <add>, %252, %cst_83 [1] : vector<8x16xf32> to vector<8xf32>
    %254 = vector.shape_cast %253 : vector<8xf32> to vector<8x1xf32>
    %255 = vector.broadcast %254 : vector<8x1xf32> to vector<8x16xf32>
    %256 = arith.divf %252, %255 : vector<8x16xf32>
    %257 = vector.extract_strided_slice %156 {offsets = [0, 160], sizes = [16, 32], strides = [1, 1]} : vector<16x256xf32> to vector<16x32xf32>
    %cst_84 = arith.constant dense<0.000000e+00> : vector<8x32xf32>
    %258 = tpu.matmul %256, %257, %cst_84 {dimension_numbers = #tpu.dot_dimension_numbers<[1], [0], [0], [1], [0, 0, 1, 1], [], []>} : vector<8x16xf32>, vector<16x32xf32>, vector<8x32xf32> -> vector<8x32xf32>
    %259 = arith.addf %242, %258 : vector<8x32xf32>
    %260 = vector.extract_strided_slice %154 {offsets = [0, 96], sizes = [8, 16], strides = [1, 1]} : vector<8x128xf32> to vector<8x16xf32>
    %261 = vector.extract_strided_slice %155 {offsets = [0, 96], sizes = [16, 16], strides = [1, 1]} : vector<16x128xf32> to vector<16x16xf32>
    %cst_85 = arith.constant dense<0.000000e+00> : vector<8x16xf32>
    %262 = tpu.matmul %260, %261, %cst_85 {dimension_numbers = #tpu.dot_dimension_numbers<[1], [1], [0], [0], [0, 0, 1, 0], [], []>} : vector<8x16xf32>, vector<16x16xf32>, vector<8x16xf32> -> vector<8x16xf32>
    %cst_86 = arith.constant 2.500000e-01 : f32
    %263 = vector.broadcast %cst_86 : f32 to vector<8x16xf32>
    %264 = arith.mulf %262, %263 : vector<8x16xf32>
    %cst_87 = arith.constant dense<0xFF800000> : vector<8xf32>
    %265 = vector.multi_reduction <maximumf>, %264, %cst_87 [1] : vector<8x16xf32> to vector<8xf32>
    %266 = vector.shape_cast %265 : vector<8xf32> to vector<8x1xf32>
    %267 = vector.broadcast %266 : vector<8x1xf32> to vector<8x16xf32>
    %268 = arith.subf %264, %267 : vector<8x16xf32>
    %269 = math.exp %268 : vector<8x16xf32>
    %cst_88 = arith.constant dense<0.000000e+00> : vector<8xf32>
    %270 = vector.multi_reduction <add>, %269, %cst_88 [1] : vector<8x16xf32> to vector<8xf32>
    %271 = vector.shape_cast %270 : vector<8xf32> to vector<8x1xf32>
    %272 = vector.broadcast %271 : vector<8x1xf32> to vector<8x16xf32>
    %273 = arith.divf %269, %272 : vector<8x16xf32>
    %274 = vector.extract_strided_slice %156 {offsets = [0, 192], sizes = [16, 32], strides = [1, 1]} : vector<16x256xf32> to vector<16x32xf32>
    %cst_89 = arith.constant dense<0.000000e+00> : vector<8x32xf32>
    %275 = tpu.matmul %273, %274, %cst_89 {dimension_numbers = #tpu.dot_dimension_numbers<[1], [0], [0], [1], [0, 0, 1, 1], [], []>} : vector<8x16xf32>, vector<16x32xf32>, vector<8x32xf32> -> vector<8x32xf32>
    %276 = arith.addf %259, %275 : vector<8x32xf32>
    %277 = vector.extract_strided_slice %154 {offsets = [0, 112], sizes = [8, 16], strides = [1, 1]} : vector<8x128xf32> to vector<8x16xf32>
    %278 = vector.extract_strided_slice %155 {offsets = [0, 112], sizes = [16, 16], strides = [1, 1]} : vector<16x128xf32> to vector<16x16xf32>
    %cst_90 = arith.constant dense<0.000000e+00> : vector<8x16xf32>
    %279 = tpu.matmul %277, %278, %cst_90 {dimension_numbers = #tpu.dot_dimension_numbers<[1], [1], [0], [0], [0, 0, 1, 0], [], []>} : vector<8x16xf32>, vector<16x16xf32>, vector<8x16xf32> -> vector<8x16xf32>
    %cst_91 = arith.constant 2.500000e-01 : f32
    %280 = vector.broadcast %cst_91 : f32 to vector<8x16xf32>
    %281 = arith.mulf %279, %280 : vector<8x16xf32>
    %cst_92 = arith.constant dense<0xFF800000> : vector<8xf32>
    %282 = vector.multi_reduction <maximumf>, %281, %cst_92 [1] : vector<8x16xf32> to vector<8xf32>
    %283 = vector.shape_cast %282 : vector<8xf32> to vector<8x1xf32>
    %284 = vector.broadcast %283 : vector<8x1xf32> to vector<8x16xf32>
    %285 = arith.subf %281, %284 : vector<8x16xf32>
    %286 = math.exp %285 : vector<8x16xf32>
    %cst_93 = arith.constant dense<0.000000e+00> : vector<8xf32>
    %287 = vector.multi_reduction <add>, %286, %cst_93 [1] : vector<8x16xf32> to vector<8xf32>
    %288 = vector.shape_cast %287 : vector<8xf32> to vector<8x1xf32>
    %289 = vector.broadcast %288 : vector<8x1xf32> to vector<8x16xf32>
    %290 = arith.divf %286, %289 : vector<8x16xf32>
    %291 = vector.extract_strided_slice %156 {offsets = [0, 224], sizes = [16, 32], strides = [1, 1]} : vector<16x256xf32> to vector<16x32xf32>
    %cst_94 = arith.constant dense<0.000000e+00> : vector<8x32xf32>
    %292 = tpu.matmul %290, %291, %cst_94 {dimension_numbers = #tpu.dot_dimension_numbers<[1], [0], [0], [1], [0, 0, 1, 1], [], []>} : vector<8x16xf32>, vector<16x32xf32>, vector<8x32xf32> -> vector<8x32xf32>
    %293 = arith.addf %276, %292 : vector<8x32xf32>
    %294 = vector.broadcast %7 : vector<1x32xf32> to vector<8x32xf32>
    %295 = arith.addf %293, %294 : vector<8x32xf32>
    %296 = tpu.concatenate %153, %295 in 0 : vector<8x32xf32>, vector<8x32xf32> -> vector<16x32xf32>
    %c1 = arith.constant 1 : index
    %c0_95 = arith.constant 0 : index
    %c0_96 = arith.constant 0 : index
    %297 = vector.load %arg3[%c1, %c0_95, %c0_96] : memref<2x32x128xf32, #tpu.memory_space<vmem>>, vector<1x32x128xf32>
    %298 = vector.shape_cast %297 : vector<1x32x128xf32> to vector<32x128xf32>
    %c1_97 = arith.constant 1 : index
    %c0_98 = arith.constant 0 : index
    %c0_99 = arith.constant 0 : index
    %299 = vector.load %arg4[%c1_97, %c0_98, %c0_99] : memref<2x24x384xf32, #tpu.memory_space<vmem>>, vector<1x24x384xf32>
    %300 = vector.shape_cast %299 : vector<1x24x384xf32> to vector<24x384xf32>
    %c1_100 = arith.constant 1 : index
    %c0_101 = arith.constant 0 : index
    %c0_102 = arith.constant 0 : index
    %301 = vector.load %arg5[%c1_100, %c0_101, %c0_102] : memref<2x1x32xf32, #tpu.memory_space<vmem>>, vector<1x1x32xf32>
    %302 = vector.shape_cast %301 : vector<1x1x32xf32> to vector<1x32xf32>
    %cst_103 = arith.constant dense<0.000000e+00> : vector<16x128xf32>
    %303 = tpu.matmul %296, %298, %cst_103 {dimension_numbers = #tpu.dot_dimension_numbers<[1], [0], [0], [1], [0, 0, 1, 1], [], []>} : vector<16x32xf32>, vector<32x128xf32>, vector<16x128xf32> -> vector<16x128xf32>
    %cst_104 = arith.constant dense<0.000000e+00> : vector<32x384xf32>
    %304 = tpu.matmul %1, %300, %cst_104 {dimension_numbers = #tpu.dot_dimension_numbers<[1], [0], [0], [1], [0, 0, 1, 1], [], []>} : vector<32x24xf32>, vector<24x384xf32>, vector<32x384xf32> -> vector<32x384xf32>
    %305 = vector.extract_strided_slice %304 {offsets = [0, 0], sizes = [32, 128], strides = [1, 1]} : vector<32x384xf32> to vector<32x128xf32>
    %306 = vector.extract_strided_slice %304 {offsets = [0, 128], sizes = [32, 256], strides = [1, 1]} : vector<32x384xf32> to vector<32x256xf32>
    %307 = vector.extract_strided_slice %303 {offsets = [0, 0], sizes = [8, 128], strides = [1, 1]} : vector<16x128xf32> to vector<8x128xf32>
    %308 = vector.extract_strided_slice %305 {offsets = [0, 0], sizes = [16, 128], strides = [1, 1]} : vector<32x128xf32> to vector<16x128xf32>
    %309 = vector.extract_strided_slice %306 {offsets = [0, 0], sizes = [16, 256], strides = [1, 1]} : vector<32x256xf32> to vector<16x256xf32>
    %cst_105 = arith.constant 0.000000e+00 : f32
    %310 = vector.broadcast %cst_105 : f32 to vector<8x32xf32>
    %311 = vector.extract_strided_slice %307 {offsets = [0, 0], sizes = [8, 16], strides = [1, 1]} : vector<8x128xf32> to vector<8x16xf32>
    %312 = vector.extract_strided_slice %308 {offsets = [0, 0], sizes = [16, 16], strides = [1, 1]} : vector<16x128xf32> to vector<16x16xf32>
    %cst_106 = arith.constant dense<0.000000e+00> : vector<8x16xf32>
    %313 = tpu.matmul %311, %312, %cst_106 {dimension_numbers = #tpu.dot_dimension_numbers<[1], [1], [0], [0], [0, 0, 1, 0], [], []>} : vector<8x16xf32>, vector<16x16xf32>, vector<8x16xf32> -> vector<8x16xf32>
    %cst_107 = arith.constant 2.500000e-01 : f32
    %314 = vector.broadcast %cst_107 : f32 to vector<8x16xf32>
    %315 = arith.mulf %313, %314 : vector<8x16xf32>
    %cst_108 = arith.constant dense<0xFF800000> : vector<8xf32>
    %316 = vector.multi_reduction <maximumf>, %315, %cst_108 [1] : vector<8x16xf32> to vector<8xf32>
    %317 = vector.shape_cast %316 : vector<8xf32> to vector<8x1xf32>
    %318 = vector.broadcast %317 : vector<8x1xf32> to vector<8x16xf32>
    %319 = arith.subf %315, %318 : vector<8x16xf32>
    %320 = math.exp %319 : vector<8x16xf32>
    %cst_109 = arith.constant dense<0.000000e+00> : vector<8xf32>
    %321 = vector.multi_reduction <add>, %320, %cst_109 [1] : vector<8x16xf32> to vector<8xf32>
    %322 = vector.shape_cast %321 : vector<8xf32> to vector<8x1xf32>
    %323 = vector.broadcast %322 : vector<8x1xf32> to vector<8x16xf32>
    %324 = arith.divf %320, %323 : vector<8x16xf32>
    %325 = vector.extract_strided_slice %309 {offsets = [0, 0], sizes = [16, 32], strides = [1, 1]} : vector<16x256xf32> to vector<16x32xf32>
    %cst_110 = arith.constant dense<0.000000e+00> : vector<8x32xf32>
    %326 = tpu.matmul %324, %325, %cst_110 {dimension_numbers = #tpu.dot_dimension_numbers<[1], [0], [0], [1], [0, 0, 1, 1], [], []>} : vector<8x16xf32>, vector<16x32xf32>, vector<8x32xf32> -> vector<8x32xf32>
    %327 = arith.addf %310, %326 : vector<8x32xf32>
    %328 = vector.extract_strided_slice %307 {offsets = [0, 16], sizes = [8, 16], strides = [1, 1]} : vector<8x128xf32> to vector<8x16xf32>
    %329 = vector.extract_strided_slice %308 {offsets = [0, 16], sizes = [16, 16], strides = [1, 1]} : vector<16x128xf32> to vector<16x16xf32>
    %cst_111 = arith.constant dense<0.000000e+00> : vector<8x16xf32>
    %330 = tpu.matmul %328, %329, %cst_111 {dimension_numbers = #tpu.dot_dimension_numbers<[1], [1], [0], [0], [0, 0, 1, 0], [], []>} : vector<8x16xf32>, vector<16x16xf32>, vector<8x16xf32> -> vector<8x16xf32>
    %cst_112 = arith.constant 2.500000e-01 : f32
    %331 = vector.broadcast %cst_112 : f32 to vector<8x16xf32>
    %332 = arith.mulf %330, %331 : vector<8x16xf32>
    %cst_113 = arith.constant dense<0xFF800000> : vector<8xf32>
    %333 = vector.multi_reduction <maximumf>, %332, %cst_113 [1] : vector<8x16xf32> to vector<8xf32>
    %334 = vector.shape_cast %333 : vector<8xf32> to vector<8x1xf32>
    %335 = vector.broadcast %334 : vector<8x1xf32> to vector<8x16xf32>
    %336 = arith.subf %332, %335 : vector<8x16xf32>
    %337 = math.exp %336 : vector<8x16xf32>
    %cst_114 = arith.constant dense<0.000000e+00> : vector<8xf32>
    %338 = vector.multi_reduction <add>, %337, %cst_114 [1] : vector<8x16xf32> to vector<8xf32>
    %339 = vector.shape_cast %338 : vector<8xf32> to vector<8x1xf32>
    %340 = vector.broadcast %339 : vector<8x1xf32> to vector<8x16xf32>
    %341 = arith.divf %337, %340 : vector<8x16xf32>
    %342 = vector.extract_strided_slice %309 {offsets = [0, 32], sizes = [16, 32], strides = [1, 1]} : vector<16x256xf32> to vector<16x32xf32>
    %cst_115 = arith.constant dense<0.000000e+00> : vector<8x32xf32>
    %343 = tpu.matmul %341, %342, %cst_115 {dimension_numbers = #tpu.dot_dimension_numbers<[1], [0], [0], [1], [0, 0, 1, 1], [], []>} : vector<8x16xf32>, vector<16x32xf32>, vector<8x32xf32> -> vector<8x32xf32>
    %344 = arith.addf %327, %343 : vector<8x32xf32>
    %345 = vector.extract_strided_slice %307 {offsets = [0, 32], sizes = [8, 16], strides = [1, 1]} : vector<8x128xf32> to vector<8x16xf32>
    %346 = vector.extract_strided_slice %308 {offsets = [0, 32], sizes = [16, 16], strides = [1, 1]} : vector<16x128xf32> to vector<16x16xf32>
    %cst_116 = arith.constant dense<0.000000e+00> : vector<8x16xf32>
    %347 = tpu.matmul %345, %346, %cst_116 {dimension_numbers = #tpu.dot_dimension_numbers<[1], [1], [0], [0], [0, 0, 1, 0], [], []>} : vector<8x16xf32>, vector<16x16xf32>, vector<8x16xf32> -> vector<8x16xf32>
    %cst_117 = arith.constant 2.500000e-01 : f32
    %348 = vector.broadcast %cst_117 : f32 to vector<8x16xf32>
    %349 = arith.mulf %347, %348 : vector<8x16xf32>
    %cst_118 = arith.constant dense<0xFF800000> : vector<8xf32>
    %350 = vector.multi_reduction <maximumf>, %349, %cst_118 [1] : vector<8x16xf32> to vector<8xf32>
    %351 = vector.shape_cast %350 : vector<8xf32> to vector<8x1xf32>
    %352 = vector.broadcast %351 : vector<8x1xf32> to vector<8x16xf32>
    %353 = arith.subf %349, %352 : vector<8x16xf32>
    %354 = math.exp %353 : vector<8x16xf32>
    %cst_119 = arith.constant dense<0.000000e+00> : vector<8xf32>
    %355 = vector.multi_reduction <add>, %354, %cst_119 [1] : vector<8x16xf32> to vector<8xf32>
    %356 = vector.shape_cast %355 : vector<8xf32> to vector<8x1xf32>
    %357 = vector.broadcast %356 : vector<8x1xf32> to vector<8x16xf32>
    %358 = arith.divf %354, %357 : vector<8x16xf32>
    %359 = vector.extract_strided_slice %309 {offsets = [0, 64], sizes = [16, 32], strides = [1, 1]} : vector<16x256xf32> to vector<16x32xf32>
    %cst_120 = arith.constant dense<0.000000e+00> : vector<8x32xf32>
    %360 = tpu.matmul %358, %359, %cst_120 {dimension_numbers = #tpu.dot_dimension_numbers<[1], [0], [0], [1], [0, 0, 1, 1], [], []>} : vector<8x16xf32>, vector<16x32xf32>, vector<8x32xf32> -> vector<8x32xf32>
    %361 = arith.addf %344, %360 : vector<8x32xf32>
    %362 = vector.extract_strided_slice %307 {offsets = [0, 48], sizes = [8, 16], strides = [1, 1]} : vector<8x128xf32> to vector<8x16xf32>
    %363 = vector.extract_strided_slice %308 {offsets = [0, 48], sizes = [16, 16], strides = [1, 1]} : vector<16x128xf32> to vector<16x16xf32>
    %cst_121 = arith.constant dense<0.000000e+00> : vector<8x16xf32>
    %364 = tpu.matmul %362, %363, %cst_121 {dimension_numbers = #tpu.dot_dimension_numbers<[1], [1], [0], [0], [0, 0, 1, 0], [], []>} : vector<8x16xf32>, vector<16x16xf32>, vector<8x16xf32> -> vector<8x16xf32>
    %cst_122 = arith.constant 2.500000e-01 : f32
    %365 = vector.broadcast %cst_122 : f32 to vector<8x16xf32>
    %366 = arith.mulf %364, %365 : vector<8x16xf32>
    %cst_123 = arith.constant dense<0xFF800000> : vector<8xf32>
    %367 = vector.multi_reduction <maximumf>, %366, %cst_123 [1] : vector<8x16xf32> to vector<8xf32>
    %368 = vector.shape_cast %367 : vector<8xf32> to vector<8x1xf32>
    %369 = vector.broadcast %368 : vector<8x1xf32> to vector<8x16xf32>
    %370 = arith.subf %366, %369 : vector<8x16xf32>
    %371 = math.exp %370 : vector<8x16xf32>
    %cst_124 = arith.constant dense<0.000000e+00> : vector<8xf32>
    %372 = vector.multi_reduction <add>, %371, %cst_124 [1] : vector<8x16xf32> to vector<8xf32>
    %373 = vector.shape_cast %372 : vector<8xf32> to vector<8x1xf32>
    %374 = vector.broadcast %373 : vector<8x1xf32> to vector<8x16xf32>
    %375 = arith.divf %371, %374 : vector<8x16xf32>
    %376 = vector.extract_strided_slice %309 {offsets = [0, 96], sizes = [16, 32], strides = [1, 1]} : vector<16x256xf32> to vector<16x32xf32>
    %cst_125 = arith.constant dense<0.000000e+00> : vector<8x32xf32>
    %377 = tpu.matmul %375, %376, %cst_125 {dimension_numbers = #tpu.dot_dimension_numbers<[1], [0], [0], [1], [0, 0, 1, 1], [], []>} : vector<8x16xf32>, vector<16x32xf32>, vector<8x32xf32> -> vector<8x32xf32>
    %378 = arith.addf %361, %377 : vector<8x32xf32>
    %379 = vector.extract_strided_slice %307 {offsets = [0, 64], sizes = [8, 16], strides = [1, 1]} : vector<8x128xf32> to vector<8x16xf32>
    %380 = vector.extract_strided_slice %308 {offsets = [0, 64], sizes = [16, 16], strides = [1, 1]} : vector<16x128xf32> to vector<16x16xf32>
    %cst_126 = arith.constant dense<0.000000e+00> : vector<8x16xf32>
    %381 = tpu.matmul %379, %380, %cst_126 {dimension_numbers = #tpu.dot_dimension_numbers<[1], [1], [0], [0], [0, 0, 1, 0], [], []>} : vector<8x16xf32>, vector<16x16xf32>, vector<8x16xf32> -> vector<8x16xf32>
    %cst_127 = arith.constant 2.500000e-01 : f32
    %382 = vector.broadcast %cst_127 : f32 to vector<8x16xf32>
    %383 = arith.mulf %381, %382 : vector<8x16xf32>
    %cst_128 = arith.constant dense<0xFF800000> : vector<8xf32>
    %384 = vector.multi_reduction <maximumf>, %383, %cst_128 [1] : vector<8x16xf32> to vector<8xf32>
    %385 = vector.shape_cast %384 : vector<8xf32> to vector<8x1xf32>
    %386 = vector.broadcast %385 : vector<8x1xf32> to vector<8x16xf32>
    %387 = arith.subf %383, %386 : vector<8x16xf32>
    %388 = math.exp %387 : vector<8x16xf32>
    %cst_129 = arith.constant dense<0.000000e+00> : vector<8xf32>
    %389 = vector.multi_reduction <add>, %388, %cst_129 [1] : vector<8x16xf32> to vector<8xf32>
    %390 = vector.shape_cast %389 : vector<8xf32> to vector<8x1xf32>
    %391 = vector.broadcast %390 : vector<8x1xf32> to vector<8x16xf32>
    %392 = arith.divf %388, %391 : vector<8x16xf32>
    %393 = vector.extract_strided_slice %309 {offsets = [0, 128], sizes = [16, 32], strides = [1, 1]} : vector<16x256xf32> to vector<16x32xf32>
    %cst_130 = arith.constant dense<0.000000e+00> : vector<8x32xf32>
    %394 = tpu.matmul %392, %393, %cst_130 {dimension_numbers = #tpu.dot_dimension_numbers<[1], [0], [0], [1], [0, 0, 1, 1], [], []>} : vector<8x16xf32>, vector<16x32xf32>, vector<8x32xf32> -> vector<8x32xf32>
    %395 = arith.addf %378, %394 : vector<8x32xf32>
    %396 = vector.extract_strided_slice %307 {offsets = [0, 80], sizes = [8, 16], strides = [1, 1]} : vector<8x128xf32> to vector<8x16xf32>
    %397 = vector.extract_strided_slice %308 {offsets = [0, 80], sizes = [16, 16], strides = [1, 1]} : vector<16x128xf32> to vector<16x16xf32>
    %cst_131 = arith.constant dense<0.000000e+00> : vector<8x16xf32>
    %398 = tpu.matmul %396, %397, %cst_131 {dimension_numbers = #tpu.dot_dimension_numbers<[1], [1], [0], [0], [0, 0, 1, 0], [], []>} : vector<8x16xf32>, vector<16x16xf32>, vector<8x16xf32> -> vector<8x16xf32>
    %cst_132 = arith.constant 2.500000e-01 : f32
    %399 = vector.broadcast %cst_132 : f32 to vector<8x16xf32>
    %400 = arith.mulf %398, %399 : vector<8x16xf32>
    %cst_133 = arith.constant dense<0xFF800000> : vector<8xf32>
    %401 = vector.multi_reduction <maximumf>, %400, %cst_133 [1] : vector<8x16xf32> to vector<8xf32>
    %402 = vector.shape_cast %401 : vector<8xf32> to vector<8x1xf32>
    %403 = vector.broadcast %402 : vector<8x1xf32> to vector<8x16xf32>
    %404 = arith.subf %400, %403 : vector<8x16xf32>
    %405 = math.exp %404 : vector<8x16xf32>
    %cst_134 = arith.constant dense<0.000000e+00> : vector<8xf32>
    %406 = vector.multi_reduction <add>, %405, %cst_134 [1] : vector<8x16xf32> to vector<8xf32>
    %407 = vector.shape_cast %406 : vector<8xf32> to vector<8x1xf32>
    %408 = vector.broadcast %407 : vector<8x1xf32> to vector<8x16xf32>
    %409 = arith.divf %405, %408 : vector<8x16xf32>
    %410 = vector.extract_strided_slice %309 {offsets = [0, 160], sizes = [16, 32], strides = [1, 1]} : vector<16x256xf32> to vector<16x32xf32>
    %cst_135 = arith.constant dense<0.000000e+00> : vector<8x32xf32>
    %411 = tpu.matmul %409, %410, %cst_135 {dimension_numbers = #tpu.dot_dimension_numbers<[1], [0], [0], [1], [0, 0, 1, 1], [], []>} : vector<8x16xf32>, vector<16x32xf32>, vector<8x32xf32> -> vector<8x32xf32>
    %412 = arith.addf %395, %411 : vector<8x32xf32>
    %413 = vector.extract_strided_slice %307 {offsets = [0, 96], sizes = [8, 16], strides = [1, 1]} : vector<8x128xf32> to vector<8x16xf32>
    %414 = vector.extract_strided_slice %308 {offsets = [0, 96], sizes = [16, 16], strides = [1, 1]} : vector<16x128xf32> to vector<16x16xf32>
    %cst_136 = arith.constant dense<0.000000e+00> : vector<8x16xf32>
    %415 = tpu.matmul %413, %414, %cst_136 {dimension_numbers = #tpu.dot_dimension_numbers<[1], [1], [0], [0], [0, 0, 1, 0], [], []>} : vector<8x16xf32>, vector<16x16xf32>, vector<8x16xf32> -> vector<8x16xf32>
    %cst_137 = arith.constant 2.500000e-01 : f32
    %416 = vector.broadcast %cst_137 : f32 to vector<8x16xf32>
    %417 = arith.mulf %415, %416 : vector<8x16xf32>
    %cst_138 = arith.constant dense<0xFF800000> : vector<8xf32>
    %418 = vector.multi_reduction <maximumf>, %417, %cst_138 [1] : vector<8x16xf32> to vector<8xf32>
    %419 = vector.shape_cast %418 : vector<8xf32> to vector<8x1xf32>
    %420 = vector.broadcast %419 : vector<8x1xf32> to vector<8x16xf32>
    %421 = arith.subf %417, %420 : vector<8x16xf32>
    %422 = math.exp %421 : vector<8x16xf32>
    %cst_139 = arith.constant dense<0.000000e+00> : vector<8xf32>
    %423 = vector.multi_reduction <add>, %422, %cst_139 [1] : vector<8x16xf32> to vector<8xf32>
    %424 = vector.shape_cast %423 : vector<8xf32> to vector<8x1xf32>
    %425 = vector.broadcast %424 : vector<8x1xf32> to vector<8x16xf32>
    %426 = arith.divf %422, %425 : vector<8x16xf32>
    %427 = vector.extract_strided_slice %309 {offsets = [0, 192], sizes = [16, 32], strides = [1, 1]} : vector<16x256xf32> to vector<16x32xf32>
    %cst_140 = arith.constant dense<0.000000e+00> : vector<8x32xf32>
    %428 = tpu.matmul %426, %427, %cst_140 {dimension_numbers = #tpu.dot_dimension_numbers<[1], [0], [0], [1], [0, 0, 1, 1], [], []>} : vector<8x16xf32>, vector<16x32xf32>, vector<8x32xf32> -> vector<8x32xf32>
    %429 = arith.addf %412, %428 : vector<8x32xf32>
    %430 = vector.extract_strided_slice %307 {offsets = [0, 112], sizes = [8, 16], strides = [1, 1]} : vector<8x128xf32> to vector<8x16xf32>
    %431 = vector.extract_strided_slice %308 {offsets = [0, 112], sizes = [16, 16], strides = [1, 1]} : vector<16x128xf32> to vector<16x16xf32>
    %cst_141 = arith.constant dense<0.000000e+00> : vector<8x16xf32>
    %432 = tpu.matmul %430, %431, %cst_141 {dimension_numbers = #tpu.dot_dimension_numbers<[1], [1], [0], [0], [0, 0, 1, 0], [], []>} : vector<8x16xf32>, vector<16x16xf32>, vector<8x16xf32> -> vector<8x16xf32>
    %cst_142 = arith.constant 2.500000e-01 : f32
    %433 = vector.broadcast %cst_142 : f32 to vector<8x16xf32>
    %434 = arith.mulf %432, %433 : vector<8x16xf32>
    %cst_143 = arith.constant dense<0xFF800000> : vector<8xf32>
    %435 = vector.multi_reduction <maximumf>, %434, %cst_143 [1] : vector<8x16xf32> to vector<8xf32>
    %436 = vector.shape_cast %435 : vector<8xf32> to vector<8x1xf32>
    %437 = vector.broadcast %436 : vector<8x1xf32> to vector<8x16xf32>
    %438 = arith.subf %434, %437 : vector<8x16xf32>
    %439 = math.exp %438 : vector<8x16xf32>
    %cst_144 = arith.constant dense<0.000000e+00> : vector<8xf32>
    %440 = vector.multi_reduction <add>, %439, %cst_144 [1] : vector<8x16xf32> to vector<8xf32>
    %441 = vector.shape_cast %440 : vector<8xf32> to vector<8x1xf32>
    %442 = vector.broadcast %441 : vector<8x1xf32> to vector<8x16xf32>
    %443 = arith.divf %439, %442 : vector<8x16xf32>
    %444 = vector.extract_strided_slice %309 {offsets = [0, 224], sizes = [16, 32], strides = [1, 1]} : vector<16x256xf32> to vector<16x32xf32>
    %cst_145 = arith.constant dense<0.000000e+00> : vector<8x32xf32>
    %445 = tpu.matmul %443, %444, %cst_145 {dimension_numbers = #tpu.dot_dimension_numbers<[1], [0], [0], [1], [0, 0, 1, 1], [], []>} : vector<8x16xf32>, vector<16x32xf32>, vector<8x32xf32> -> vector<8x32xf32>
    %446 = arith.addf %429, %445 : vector<8x32xf32>
    %447 = vector.broadcast %302 : vector<1x32xf32> to vector<8x32xf32>
    %448 = arith.addf %446, %447 : vector<8x32xf32>
    %449 = vector.extract_strided_slice %303 {offsets = [8, 0], sizes = [8, 128], strides = [1, 1]} : vector<16x128xf32> to vector<8x128xf32>
    %450 = vector.extract_strided_slice %305 {offsets = [16, 0], sizes = [16, 128], strides = [1, 1]} : vector<32x128xf32> to vector<16x128xf32>
    %451 = vector.extract_strided_slice %306 {offsets = [16, 0], sizes = [16, 256], strides = [1, 1]} : vector<32x256xf32> to vector<16x256xf32>
    %cst_146 = arith.constant 0.000000e+00 : f32
    %452 = vector.broadcast %cst_146 : f32 to vector<8x32xf32>
    %453 = vector.extract_strided_slice %449 {offsets = [0, 0], sizes = [8, 16], strides = [1, 1]} : vector<8x128xf32> to vector<8x16xf32>
    %454 = vector.extract_strided_slice %450 {offsets = [0, 0], sizes = [16, 16], strides = [1, 1]} : vector<16x128xf32> to vector<16x16xf32>
    %cst_147 = arith.constant dense<0.000000e+00> : vector<8x16xf32>
    %455 = tpu.matmul %453, %454, %cst_147 {dimension_numbers = #tpu.dot_dimension_numbers<[1], [1], [0], [0], [0, 0, 1, 0], [], []>} : vector<8x16xf32>, vector<16x16xf32>, vector<8x16xf32> -> vector<8x16xf32>
    %cst_148 = arith.constant 2.500000e-01 : f32
    %456 = vector.broadcast %cst_148 : f32 to vector<8x16xf32>
    %457 = arith.mulf %455, %456 : vector<8x16xf32>
    %cst_149 = arith.constant dense<0xFF800000> : vector<8xf32>
    %458 = vector.multi_reduction <maximumf>, %457, %cst_149 [1] : vector<8x16xf32> to vector<8xf32>
    %459 = vector.shape_cast %458 : vector<8xf32> to vector<8x1xf32>
    %460 = vector.broadcast %459 : vector<8x1xf32> to vector<8x16xf32>
    %461 = arith.subf %457, %460 : vector<8x16xf32>
    %462 = math.exp %461 : vector<8x16xf32>
    %cst_150 = arith.constant dense<0.000000e+00> : vector<8xf32>
    %463 = vector.multi_reduction <add>, %462, %cst_150 [1] : vector<8x16xf32> to vector<8xf32>
    %464 = vector.shape_cast %463 : vector<8xf32> to vector<8x1xf32>
    %465 = vector.broadcast %464 : vector<8x1xf32> to vector<8x16xf32>
    %466 = arith.divf %462, %465 : vector<8x16xf32>
    %467 = vector.extract_strided_slice %451 {offsets = [0, 0], sizes = [16, 32], strides = [1, 1]} : vector<16x256xf32> to vector<16x32xf32>
    %cst_151 = arith.constant dense<0.000000e+00> : vector<8x32xf32>
    %468 = tpu.matmul %466, %467, %cst_151 {dimension_numbers = #tpu.dot_dimension_numbers<[1], [0], [0], [1], [0, 0, 1, 1], [], []>} : vector<8x16xf32>, vector<16x32xf32>, vector<8x32xf32> -> vector<8x32xf32>
    %469 = arith.addf %452, %468 : vector<8x32xf32>
    %470 = vector.extract_strided_slice %449 {offsets = [0, 16], sizes = [8, 16], strides = [1, 1]} : vector<8x128xf32> to vector<8x16xf32>
    %471 = vector.extract_strided_slice %450 {offsets = [0, 16], sizes = [16, 16], strides = [1, 1]} : vector<16x128xf32> to vector<16x16xf32>
    %cst_152 = arith.constant dense<0.000000e+00> : vector<8x16xf32>
    %472 = tpu.matmul %470, %471, %cst_152 {dimension_numbers = #tpu.dot_dimension_numbers<[1], [1], [0], [0], [0, 0, 1, 0], [], []>} : vector<8x16xf32>, vector<16x16xf32>, vector<8x16xf32> -> vector<8x16xf32>
    %cst_153 = arith.constant 2.500000e-01 : f32
    %473 = vector.broadcast %cst_153 : f32 to vector<8x16xf32>
    %474 = arith.mulf %472, %473 : vector<8x16xf32>
    %cst_154 = arith.constant dense<0xFF800000> : vector<8xf32>
    %475 = vector.multi_reduction <maximumf>, %474, %cst_154 [1] : vector<8x16xf32> to vector<8xf32>
    %476 = vector.shape_cast %475 : vector<8xf32> to vector<8x1xf32>
    %477 = vector.broadcast %476 : vector<8x1xf32> to vector<8x16xf32>
    %478 = arith.subf %474, %477 : vector<8x16xf32>
    %479 = math.exp %478 : vector<8x16xf32>
    %cst_155 = arith.constant dense<0.000000e+00> : vector<8xf32>
    %480 = vector.multi_reduction <add>, %479, %cst_155 [1] : vector<8x16xf32> to vector<8xf32>
    %481 = vector.shape_cast %480 : vector<8xf32> to vector<8x1xf32>
    %482 = vector.broadcast %481 : vector<8x1xf32> to vector<8x16xf32>
    %483 = arith.divf %479, %482 : vector<8x16xf32>
    %484 = vector.extract_strided_slice %451 {offsets = [0, 32], sizes = [16, 32], strides = [1, 1]} : vector<16x256xf32> to vector<16x32xf32>
    %cst_156 = arith.constant dense<0.000000e+00> : vector<8x32xf32>
    %485 = tpu.matmul %483, %484, %cst_156 {dimension_numbers = #tpu.dot_dimension_numbers<[1], [0], [0], [1], [0, 0, 1, 1], [], []>} : vector<8x16xf32>, vector<16x32xf32>, vector<8x32xf32> -> vector<8x32xf32>
    %486 = arith.addf %469, %485 : vector<8x32xf32>
    %487 = vector.extract_strided_slice %449 {offsets = [0, 32], sizes = [8, 16], strides = [1, 1]} : vector<8x128xf32> to vector<8x16xf32>
    %488 = vector.extract_strided_slice %450 {offsets = [0, 32], sizes = [16, 16], strides = [1, 1]} : vector<16x128xf32> to vector<16x16xf32>
    %cst_157 = arith.constant dense<0.000000e+00> : vector<8x16xf32>
    %489 = tpu.matmul %487, %488, %cst_157 {dimension_numbers = #tpu.dot_dimension_numbers<[1], [1], [0], [0], [0, 0, 1, 0], [], []>} : vector<8x16xf32>, vector<16x16xf32>, vector<8x16xf32> -> vector<8x16xf32>
    %cst_158 = arith.constant 2.500000e-01 : f32
    %490 = vector.broadcast %cst_158 : f32 to vector<8x16xf32>
    %491 = arith.mulf %489, %490 : vector<8x16xf32>
    %cst_159 = arith.constant dense<0xFF800000> : vector<8xf32>
    %492 = vector.multi_reduction <maximumf>, %491, %cst_159 [1] : vector<8x16xf32> to vector<8xf32>
    %493 = vector.shape_cast %492 : vector<8xf32> to vector<8x1xf32>
    %494 = vector.broadcast %493 : vector<8x1xf32> to vector<8x16xf32>
    %495 = arith.subf %491, %494 : vector<8x16xf32>
    %496 = math.exp %495 : vector<8x16xf32>
    %cst_160 = arith.constant dense<0.000000e+00> : vector<8xf32>
    %497 = vector.multi_reduction <add>, %496, %cst_160 [1] : vector<8x16xf32> to vector<8xf32>
    %498 = vector.shape_cast %497 : vector<8xf32> to vector<8x1xf32>
    %499 = vector.broadcast %498 : vector<8x1xf32> to vector<8x16xf32>
    %500 = arith.divf %496, %499 : vector<8x16xf32>
    %501 = vector.extract_strided_slice %451 {offsets = [0, 64], sizes = [16, 32], strides = [1, 1]} : vector<16x256xf32> to vector<16x32xf32>
    %cst_161 = arith.constant dense<0.000000e+00> : vector<8x32xf32>
    %502 = tpu.matmul %500, %501, %cst_161 {dimension_numbers = #tpu.dot_dimension_numbers<[1], [0], [0], [1], [0, 0, 1, 1], [], []>} : vector<8x16xf32>, vector<16x32xf32>, vector<8x32xf32> -> vector<8x32xf32>
    %503 = arith.addf %486, %502 : vector<8x32xf32>
    %504 = vector.extract_strided_slice %449 {offsets = [0, 48], sizes = [8, 16], strides = [1, 1]} : vector<8x128xf32> to vector<8x16xf32>
    %505 = vector.extract_strided_slice %450 {offsets = [0, 48], sizes = [16, 16], strides = [1, 1]} : vector<16x128xf32> to vector<16x16xf32>
    %cst_162 = arith.constant dense<0.000000e+00> : vector<8x16xf32>
    %506 = tpu.matmul %504, %505, %cst_162 {dimension_numbers = #tpu.dot_dimension_numbers<[1], [1], [0], [0], [0, 0, 1, 0], [], []>} : vector<8x16xf32>, vector<16x16xf32>, vector<8x16xf32> -> vector<8x16xf32>
    %cst_163 = arith.constant 2.500000e-01 : f32
    %507 = vector.broadcast %cst_163 : f32 to vector<8x16xf32>
    %508 = arith.mulf %506, %507 : vector<8x16xf32>
    %cst_164 = arith.constant dense<0xFF800000> : vector<8xf32>
    %509 = vector.multi_reduction <maximumf>, %508, %cst_164 [1] : vector<8x16xf32> to vector<8xf32>
    %510 = vector.shape_cast %509 : vector<8xf32> to vector<8x1xf32>
    %511 = vector.broadcast %510 : vector<8x1xf32> to vector<8x16xf32>
    %512 = arith.subf %508, %511 : vector<8x16xf32>
    %513 = math.exp %512 : vector<8x16xf32>
    %cst_165 = arith.constant dense<0.000000e+00> : vector<8xf32>
    %514 = vector.multi_reduction <add>, %513, %cst_165 [1] : vector<8x16xf32> to vector<8xf32>
    %515 = vector.shape_cast %514 : vector<8xf32> to vector<8x1xf32>
    %516 = vector.broadcast %515 : vector<8x1xf32> to vector<8x16xf32>
    %517 = arith.divf %513, %516 : vector<8x16xf32>
    %518 = vector.extract_strided_slice %451 {offsets = [0, 96], sizes = [16, 32], strides = [1, 1]} : vector<16x256xf32> to vector<16x32xf32>
    %cst_166 = arith.constant dense<0.000000e+00> : vector<8x32xf32>
    %519 = tpu.matmul %517, %518, %cst_166 {dimension_numbers = #tpu.dot_dimension_numbers<[1], [0], [0], [1], [0, 0, 1, 1], [], []>} : vector<8x16xf32>, vector<16x32xf32>, vector<8x32xf32> -> vector<8x32xf32>
    %520 = arith.addf %503, %519 : vector<8x32xf32>
    %521 = vector.extract_strided_slice %449 {offsets = [0, 64], sizes = [8, 16], strides = [1, 1]} : vector<8x128xf32> to vector<8x16xf32>
    %522 = vector.extract_strided_slice %450 {offsets = [0, 64], sizes = [16, 16], strides = [1, 1]} : vector<16x128xf32> to vector<16x16xf32>
    %cst_167 = arith.constant dense<0.000000e+00> : vector<8x16xf32>
    %523 = tpu.matmul %521, %522, %cst_167 {dimension_numbers = #tpu.dot_dimension_numbers<[1], [1], [0], [0], [0, 0, 1, 0], [], []>} : vector<8x16xf32>, vector<16x16xf32>, vector<8x16xf32> -> vector<8x16xf32>
    %cst_168 = arith.constant 2.500000e-01 : f32
    %524 = vector.broadcast %cst_168 : f32 to vector<8x16xf32>
    %525 = arith.mulf %523, %524 : vector<8x16xf32>
    %cst_169 = arith.constant dense<0xFF800000> : vector<8xf32>
    %526 = vector.multi_reduction <maximumf>, %525, %cst_169 [1] : vector<8x16xf32> to vector<8xf32>
    %527 = vector.shape_cast %526 : vector<8xf32> to vector<8x1xf32>
    %528 = vector.broadcast %527 : vector<8x1xf32> to vector<8x16xf32>
    %529 = arith.subf %525, %528 : vector<8x16xf32>
    %530 = math.exp %529 : vector<8x16xf32>
    %cst_170 = arith.constant dense<0.000000e+00> : vector<8xf32>
    %531 = vector.multi_reduction <add>, %530, %cst_170 [1] : vector<8x16xf32> to vector<8xf32>
    %532 = vector.shape_cast %531 : vector<8xf32> to vector<8x1xf32>
    %533 = vector.broadcast %532 : vector<8x1xf32> to vector<8x16xf32>
    %534 = arith.divf %530, %533 : vector<8x16xf32>
    %535 = vector.extract_strided_slice %451 {offsets = [0, 128], sizes = [16, 32], strides = [1, 1]} : vector<16x256xf32> to vector<16x32xf32>
    %cst_171 = arith.constant dense<0.000000e+00> : vector<8x32xf32>
    %536 = tpu.matmul %534, %535, %cst_171 {dimension_numbers = #tpu.dot_dimension_numbers<[1], [0], [0], [1], [0, 0, 1, 1], [], []>} : vector<8x16xf32>, vector<16x32xf32>, vector<8x32xf32> -> vector<8x32xf32>
    %537 = arith.addf %520, %536 : vector<8x32xf32>
    %538 = vector.extract_strided_slice %449 {offsets = [0, 80], sizes = [8, 16], strides = [1, 1]} : vector<8x128xf32> to vector<8x16xf32>
    %539 = vector.extract_strided_slice %450 {offsets = [0, 80], sizes = [16, 16], strides = [1, 1]} : vector<16x128xf32> to vector<16x16xf32>
    %cst_172 = arith.constant dense<0.000000e+00> : vector<8x16xf32>
    %540 = tpu.matmul %538, %539, %cst_172 {dimension_numbers = #tpu.dot_dimension_numbers<[1], [1], [0], [0], [0, 0, 1, 0], [], []>} : vector<8x16xf32>, vector<16x16xf32>, vector<8x16xf32> -> vector<8x16xf32>
    %cst_173 = arith.constant 2.500000e-01 : f32
    %541 = vector.broadcast %cst_173 : f32 to vector<8x16xf32>
    %542 = arith.mulf %540, %541 : vector<8x16xf32>
    %cst_174 = arith.constant dense<0xFF800000> : vector<8xf32>
    %543 = vector.multi_reduction <maximumf>, %542, %cst_174 [1] : vector<8x16xf32> to vector<8xf32>
    %544 = vector.shape_cast %543 : vector<8xf32> to vector<8x1xf32>
    %545 = vector.broadcast %544 : vector<8x1xf32> to vector<8x16xf32>
    %546 = arith.subf %542, %545 : vector<8x16xf32>
    %547 = math.exp %546 : vector<8x16xf32>
    %cst_175 = arith.constant dense<0.000000e+00> : vector<8xf32>
    %548 = vector.multi_reduction <add>, %547, %cst_175 [1] : vector<8x16xf32> to vector<8xf32>
    %549 = vector.shape_cast %548 : vector<8xf32> to vector<8x1xf32>
    %550 = vector.broadcast %549 : vector<8x1xf32> to vector<8x16xf32>
    %551 = arith.divf %547, %550 : vector<8x16xf32>
    %552 = vector.extract_strided_slice %451 {offsets = [0, 160], sizes = [16, 32], strides = [1, 1]} : vector<16x256xf32> to vector<16x32xf32>
    %cst_176 = arith.constant dense<0.000000e+00> : vector<8x32xf32>
    %553 = tpu.matmul %551, %552, %cst_176 {dimension_numbers = #tpu.dot_dimension_numbers<[1], [0], [0], [1], [0, 0, 1, 1], [], []>} : vector<8x16xf32>, vector<16x32xf32>, vector<8x32xf32> -> vector<8x32xf32>
    %554 = arith.addf %537, %553 : vector<8x32xf32>
    %555 = vector.extract_strided_slice %449 {offsets = [0, 96], sizes = [8, 16], strides = [1, 1]} : vector<8x128xf32> to vector<8x16xf32>
    %556 = vector.extract_strided_slice %450 {offsets = [0, 96], sizes = [16, 16], strides = [1, 1]} : vector<16x128xf32> to vector<16x16xf32>
    %cst_177 = arith.constant dense<0.000000e+00> : vector<8x16xf32>
    %557 = tpu.matmul %555, %556, %cst_177 {dimension_numbers = #tpu.dot_dimension_numbers<[1], [1], [0], [0], [0, 0, 1, 0], [], []>} : vector<8x16xf32>, vector<16x16xf32>, vector<8x16xf32> -> vector<8x16xf32>
    %cst_178 = arith.constant 2.500000e-01 : f32
    %558 = vector.broadcast %cst_178 : f32 to vector<8x16xf32>
    %559 = arith.mulf %557, %558 : vector<8x16xf32>
    %cst_179 = arith.constant dense<0xFF800000> : vector<8xf32>
    %560 = vector.multi_reduction <maximumf>, %559, %cst_179 [1] : vector<8x16xf32> to vector<8xf32>
    %561 = vector.shape_cast %560 : vector<8xf32> to vector<8x1xf32>
    %562 = vector.broadcast %561 : vector<8x1xf32> to vector<8x16xf32>
    %563 = arith.subf %559, %562 : vector<8x16xf32>
    %564 = math.exp %563 : vector<8x16xf32>
    %cst_180 = arith.constant dense<0.000000e+00> : vector<8xf32>
    %565 = vector.multi_reduction <add>, %564, %cst_180 [1] : vector<8x16xf32> to vector<8xf32>
    %566 = vector.shape_cast %565 : vector<8xf32> to vector<8x1xf32>
    %567 = vector.broadcast %566 : vector<8x1xf32> to vector<8x16xf32>
    %568 = arith.divf %564, %567 : vector<8x16xf32>
    %569 = vector.extract_strided_slice %451 {offsets = [0, 192], sizes = [16, 32], strides = [1, 1]} : vector<16x256xf32> to vector<16x32xf32>
    %cst_181 = arith.constant dense<0.000000e+00> : vector<8x32xf32>
    %570 = tpu.matmul %568, %569, %cst_181 {dimension_numbers = #tpu.dot_dimension_numbers<[1], [0], [0], [1], [0, 0, 1, 1], [], []>} : vector<8x16xf32>, vector<16x32xf32>, vector<8x32xf32> -> vector<8x32xf32>
    %571 = arith.addf %554, %570 : vector<8x32xf32>
    %572 = vector.extract_strided_slice %449 {offsets = [0, 112], sizes = [8, 16], strides = [1, 1]} : vector<8x128xf32> to vector<8x16xf32>
    %573 = vector.extract_strided_slice %450 {offsets = [0, 112], sizes = [16, 16], strides = [1, 1]} : vector<16x128xf32> to vector<16x16xf32>
    %cst_182 = arith.constant dense<0.000000e+00> : vector<8x16xf32>
    %574 = tpu.matmul %572, %573, %cst_182 {dimension_numbers = #tpu.dot_dimension_numbers<[1], [1], [0], [0], [0, 0, 1, 0], [], []>} : vector<8x16xf32>, vector<16x16xf32>, vector<8x16xf32> -> vector<8x16xf32>
    %cst_183 = arith.constant 2.500000e-01 : f32
    %575 = vector.broadcast %cst_183 : f32 to vector<8x16xf32>
    %576 = arith.mulf %574, %575 : vector<8x16xf32>
    %cst_184 = arith.constant dense<0xFF800000> : vector<8xf32>
    %577 = vector.multi_reduction <maximumf>, %576, %cst_184 [1] : vector<8x16xf32> to vector<8xf32>
    %578 = vector.shape_cast %577 : vector<8xf32> to vector<8x1xf32>
    %579 = vector.broadcast %578 : vector<8x1xf32> to vector<8x16xf32>
    %580 = arith.subf %576, %579 : vector<8x16xf32>
    %581 = math.exp %580 : vector<8x16xf32>
    %cst_185 = arith.constant dense<0.000000e+00> : vector<8xf32>
    %582 = vector.multi_reduction <add>, %581, %cst_185 [1] : vector<8x16xf32> to vector<8xf32>
    %583 = vector.shape_cast %582 : vector<8xf32> to vector<8x1xf32>
    %584 = vector.broadcast %583 : vector<8x1xf32> to vector<8x16xf32>
    %585 = arith.divf %581, %584 : vector<8x16xf32>
    %586 = vector.extract_strided_slice %451 {offsets = [0, 224], sizes = [16, 32], strides = [1, 1]} : vector<16x256xf32> to vector<16x32xf32>
    %cst_186 = arith.constant dense<0.000000e+00> : vector<8x32xf32>
    %587 = tpu.matmul %585, %586, %cst_186 {dimension_numbers = #tpu.dot_dimension_numbers<[1], [0], [0], [1], [0, 0, 1, 1], [], []>} : vector<8x16xf32>, vector<16x32xf32>, vector<8x32xf32> -> vector<8x32xf32>
    %588 = arith.addf %571, %587 : vector<8x32xf32>
    %589 = vector.broadcast %302 : vector<1x32xf32> to vector<8x32xf32>
    %590 = arith.addf %588, %589 : vector<8x32xf32>
    %591 = tpu.concatenate %448, %590 in 0 : vector<8x32xf32>, vector<8x32xf32> -> vector<16x32xf32>
    %c0_187 = arith.constant 0 : index
    %c0_188 = arith.constant 0 : index
    %592 = vector.load %arg6[%c0_187, %c0_188] : memref<16x32xf32, #tpu.memory_space<vmem>>, vector<16x32xf32>
    tpu.vector_store %arg6[%c0_187, %c0_188], %591 {strides = array<i32>} : memref<16x32xf32, #tpu.memory_space<vmem>>, vector<16x32xf32>,
    return
  }
  func.func @transform_0(%arg0: i32) -> (i32, i32) {
    %c0_i32 = arith.constant 0 : i32
    %c0_i32_0 = arith.constant 0 : i32
    %c0_i32_1 = arith.constant 0 : i32
    return %c0_i32, %c0_i32_0 : i32, i32
  }
  func.func @transform_1(%arg0: i32) -> (i32, i32) {
    %c0_i32 = arith.constant 0 : i32
    %c0_i32_0 = arith.constant 0 : i32
    %c0_i32_1 = arith.constant 0 : i32
    return %c0_i32, %c0_i32_0 : i32, i32
  }
  func.func @transform_2(%arg0: i32) -> (i32, i32, i32) {
    %c0_i32 = arith.constant 0 : i32
    %c0_i32_0 = arith.constant 0 : i32
    %c0_i32_1 = arith.constant 0 : i32
    %c0_i32_2 = arith.constant 0 : i32
    return %c0_i32, %c0_i32_0, %c0_i32_1 : i32, i32, i32
  }
  func.func @transform_3(%arg0: i32) -> (i32, i32, i32) {
    %c0_i32 = arith.constant 0 : i32
    %c0_i32_0 = arith.constant 0 : i32
    %c0_i32_1 = arith.constant 0 : i32
    %c0_i32_2 = arith.constant 0 : i32
    return %c0_i32, %c0_i32_0, %c0_i32_1 : i32, i32, i32
  }
  func.func @transform_4(%arg0: i32) -> (i32, i32, i32) {
    %c0_i32 = arith.constant 0 : i32
    %c0_i32_0 = arith.constant 0 : i32
    %c0_i32_1 = arith.constant 0 : i32
    %c0_i32_2 = arith.constant 0 : i32
    return %c0_i32, %c0_i32_0, %c0_i32_1 : i32, i32, i32
  }
  func.func @transform_5(%arg0: i32) -> (i32, i32) {
    %c0_i32 = arith.constant 0 : i32
    %c0_i32_0 = arith.constant 0 : i32
    %c0_i32_1 = arith.constant 0 : i32
    return %c0_i32, %c0_i32_0 : i32, i32
  }
}

</mosaic_0001>

<bundles_post_ra>
// kernel: tpu_custom_call.1
= control target key start
LH: loop header
LB: loop body
LE: loop exit
PB: predicated region body
PF: predicated region fallthrough
CT: control target
= control target key end

     0   :  { %10 = vsyncpa [#allocation3], 0  ;;  %s8608_s0 = inlined_call_operand.vmem [shape: f32[16,32], index: 0, kind: input, shape index: {}]   ;;  %s8609_s1 = inlined_call_operand.vmem [shape: f32[32,24], index: 1, kind: input, shape index: {}]   ;;  %s8610_s2 = inlined_call_operand.hbm [shape: f32[2,32,128], index: 2, kind: input, shape index: {}]   ;;  %s8611_s3 = inlined_call_operand.hbm [shape: f32[2,24,384], index: 3, kind: input, shape index: {}]   ;;  %s8612_s4 = inlined_call_operand.vmem [shape: f32[2,1,32], index: 4, kind: input, shape index: {}]   ;;  %s8613_s5 = inlined_call_operand.hbm [shape: f32[16,32], index: 5, kind: output, shape index: {}]  }
   0x1   :  { %11 = vsyncpa [#allocation6], 0 }
   0x2   :  { %12 = vsyncpa [#allocation4], 0  ;;  %s7763_s18 = smov [#allocation2]   ;;  %s7691_s22 = scalar_lea.hbm %s8610_s2, 1024 }
   0x3   :  { %s22_s19 = sshll.u32 %s7763_s18, 4  ;;  %p7692_p0 = scmp.ne.s32.totalorder %s8610_s2, %s7691_s22  ;;  %s23_s19 = int_to_ptr.vmem [resolvable:$true] %s22_s19 }
   0x4   :  { %p7695_p1 = scmp.lt.u32.totalorder %s7691_s22, %s8610_s2 }
   0x6   :  { %p7697_p2 = pnand %p7695_p1, %p7692_p0 }
   0x8   :  { %7700 = shalt.err (!%p7697_p2)
}
   0x9   :  { %s7701_s27 = scalar_lea.vmem %s23_s19, 1024  ;;  %p7706_p4 = scmp.lt.s32.totalorder %s23_s19, %s23_s19 }
   0xa   :  { %p7702_p3 = scmp.ne.s32.totalorder %s23_s19, %s7701_s27  ;;  %p7707_p5 = scmp.lt.s32.totalorder %s7701_s27, %s7701_s27 }
   0xc   :  { %p7708_p6 = por %p7707_p5, %p7706_p4 }
   0xe   :  { %p7709_p7 = pnand %p7708_p6, %p7702_p3 }
  0x10   :  { %7712 = shalt.err (!%p7709_p7)
}
  0x11   :  { %s7764_s28 = smov 128   ;;  %s7765_s29 = smov 8  }
  0x12   :  { %28 = dma.hbm_to_vmem [thread:$0]  %s8610_s2, 1024, %s23_s19, [#allocation3], %s7764_s28, %s7764_s28, %s7765_s29  }
  0x13   :  { %s7766_s7 = smov [#allocation5]   ;;  %s7713_s11 = scalar_lea.hbm %s8611_s3, 2304 }
  0x14   :  { %s34_s8 = sshll.u32 %s7766_s7, 4  ;;  %p7714_p8 = scmp.ne.s32.totalorder %s8611_s3, %s7713_s11  ;;  %s35_s8 = int_to_ptr.vmem [resolvable:$true] %s34_s8 }
  0x15   :  { %p7717_p9 = scmp.lt.u32.totalorder %s7713_s11, %s8611_s3 }
  0x17   :  { %p7719_p10 = pnand %p7717_p9, %p7714_p8 }
  0x19   :  { %7722 = shalt.err (!%p7719_p10)
}
  0x1a   :  { %s7723_s16 = scalar_lea.vmem %s35_s8, 2304  ;;  %p7728_p12 = scmp.lt.s32.totalorder %s35_s8, %s35_s8 }
  0x1b   :  { %p7724_p11 = scmp.ne.s32.totalorder %s35_s8, %s7723_s16  ;;  %p7729_p13 = scmp.lt.s32.totalorder %s7723_s16, %s7723_s16 }
  0x1d   :  { %p7730_p0 = por %p7729_p13, %p7728_p12 }
  0x1f   :  { %p7731_p1 = pnand %p7730_p0, %p7724_p11 }
  0x21   :  { %7734 = shalt.err (!%p7731_p1)
}
  0x22   :  { %s7767_s2 = smov 384   ;;  %s7768_s17 = smov 24  }
  0x23   :  { %40 = dma.hbm_to_vmem [thread:$0]  %s8611_s3, 2304, %s35_s8, [#allocation6], %s7767_s2, %s7767_s2, %s7768_s17  }
  0x24   :  { %7757 = dma.done.wait [#allocation3], 1024  }
  0x25   :  { %7758 = vsyncadd [#allocation3], 4294966272 }
  0x26   :  { %7759 = dma.done.wait [#allocation6], 2304  }
  0x27   :  { %7760 = vsyncadd [#allocation6], 4294964992  ;;  %v7769_v0 = vmov 0.0   ;;  %v60_v1 = vld [vmem:[#allocation5 + $0x8] sm:$0xff]  ;;  %v63_v2 = vld [vmem:[#allocation5 + $0x20] sm:$0xff]  ;;  %vm69_vm0 = vcmask 261120  }
  0x28   :  { %228 = vmatprep.mubr.f32.mxu1 %v7769_v0  ;;  %v59_v3 = vld [vmem:[#allocation5] sm:$0xff]  ;;  %v7034_v4 = vpack.c.bf16 %v63_v2, %v60_v1  ;;  %v62_v5 = vld [vmem:[#allocation5 + $0x18] sm:$0xff]  ;;  %v56_v9 = vld [vmem:[#allocation2 + $0x8] sm:$0xff]  ;;  %vm151_vm1 = vcmask 195584   ;;  %v7770_v23 = vmov 0.0|0.0   ;;  %vm7771_vm2 = vmmov 0  }
  0x29   :  { %v7036_v6 = vpack.c.bf16 %v62_v5, %v59_v3  ;;  %v66_v7 = vld [vmem:[#allocation5 + $0x38] sm:$0xff]  ;;  %v55_v8 = vld [vmem:[#allocation2] sm:$0xff]  ;;  %v57_v11 = vld [vmem:[#allocation2 + $0x10] sm:$0xff]  ;;  %vm338_vm3 = vcmask 130048   ;;  %s7772_s7 = smov 112   ;;  %s7773_s8 = smov 96  }
  0x2a   :  { %7035 = vmatprep.subr.bf16.mxu1 %v7034_v4  ;;  %v7026_v10 = vpack.c.bf16 %v56_v9, %v55_v8  ;;  %v58_v12 = vld [vmem:[#allocation2 + $0x18] sm:$0xff]  ;;  %v49_v14 = vld [vmem:[%s8608_s0] sm:$0xff]  ;;  %v61_v15 = vld [vmem:[#allocation5 + $0x10] sm:$0xff]  ;;  %s7774_s9 = smov 80   ;;  %s7775_s10 = smov 64  }
  0x2b   :  { %7037 = vmatpush1.bf16.msra.mxu1 %v7036_v6  ;;  %v7030_v13 = vpack.c.bf16 %v58_v12, %v57_v11  ;;  %v65_v16 = vld [vmem:[#allocation5 + $0x30] sm:$0xff]  ;;  %v64_v17 = vld [vmem:[#allocation5 + $0x28] sm:$0xff]  ;;  %v51_v18 = vld [vmem:[%s8609_s1] sm:$0xff]  ;;  %6540 = vmatprep.mubr.msk.f32.mxu0 %vm69_vm0, %v49_v14  ;;  %s7776_s11 = smov 32   ;;  %s7777_s12 = smov 48  }
  0x2c   :  { %168 = vmatprep.subr.mxu1 %v66_v7  ;;  %7027 = vmatprep.subr.bf16.mxu0 %v7026_v10  ;;  %v7038_v19 = vpack.c.bf16 %v64_v17, %v61_v15  ;;  %v52_v20 = vld [vmem:[%s8609_s1 + $0x8] sm:$0xff]  ;;  %v67_v22 = vld [vmem:[#allocation5 + $0x40] sm:$0xff]  ;;  %v53_v24 = vld [vmem:[%s8609_s1 + $0x10] sm:$0xff]  ;;  %s7778_s13 = smov 16  }
  0x2d   :  { %7029 = vmatpush3.bf16.msra.mxu0 %v7026_v10  ;;  %v50_v21 = vld [vmem:[%s8608_s0 + $0x8] sm:$0xff]  ;;  %v54_v25 = vld [vmem:[%s8609_s1 + $0x18] sm:$0xff]  ;;  %vm7877_vm4 = vmpackc.low %vm338_vm3, %vm338_vm3 }
  0x2e   :  { %7031 = vmatprep.subr.bf16.mxu0 %v7030_v13 }
  0x2f   :  { %169 = vmatpush1.msra.mxu1 %v65_v16 }
  0x30   :  { %6165 = vmatmul.mubr.msk.f32.vlgmr.msra.gmra.mrb[0].mxu1 %vm151_vm1, %v51_v18  ;;  %7046 = vmatprep.subr.bf16.mxu1 %v7770_v23 }
  0x31   :  { %234 = vmatprep.mubr.f32.mxu1 %v7769_v0  ;;  %7033 = vmatpush3.bf16.msra.mxu0 %v7030_v13 }
  0x32   :  { %7039 = vmatprep.subr.bf16.mxu0 %v7038_v19 }
  0x34   :  { %6166 = vmatmul.mubr.msk.f32.gmra.mrb[2].mxu1 %vm151_vm1, %v52_v20  ;;  %6541 = vmatmul.mubr.msk.f32.vlgmr.msra.gmra.mrb[0].mxu0 %vm69_vm0, %v50_v21 }
  0x35   :  { %7041 = vmatpush3.bf16.msra.mxu0 %v7038_v19  ;;  %6549 = vmatprep.mubr.msk.f32.mxu0 %vm151_vm1, %v51_v18 }
  0x36   :  { %6547 = vmatprep.subr.mxu0 %v67_v22  ;;  %240 = vmatprep.mubr.f32.mxu1 %v7769_v0 }
  0x38   :  { %6167 = vmatmul.mubr.msk.f32.gmra.mrb[4].mxu1 %vm151_vm1, %v53_v24 }
  0x39   :  { %6548 = vmatpush3.msra.mxu0 %v67_v22  ;;  %246 = vmatprep.mubr.f32.mxu1 %v7769_v0 }
  0x3a   :  { %6550 = vmatmul.mubr.msk.f32.vlgmr.msra.gmra.mrb[2].mxu0 %vm151_vm1, %v52_v20  ;;  %7042 = vmatprep.subr.bf16.mxu0 %v7770_v23 }
  0x3b   :  { %6552 = vmatprep.mubr.msk.f32.mxu0 %vm151_vm1, %v53_v24 }
  0x3c   :  { %6168 = vmatmul.mubr.msk.f32.gmra.mrb[6].mxu1 %vm151_vm1, %v54_v25 }
  0x3d   :  { %6566 = vmatprep.mubr.msk.f32.mxu1 %vm7771_vm2, %v7769_v0 }
  0x3e   :  { %6553 = vmatmul.mubr.msk.f32.gmra.mrb[4].mxu0 %vm151_vm1, %v54_v25 }
  0x3f   :  { %6559 = vmatprep.mubr.msk.f32.mxu0 %vm7771_vm2, %v7769_v0 }
 0x103   :  { %v230_v26 = vpop.f32.mrb[0].mxu1 }
 0x104   :  { %v232_v27 = vpop.f32.mrb[1].mxu1 }
 0x107   :  { %v236_v28 = vpop.f32.mrb[2].mxu1  ;;  %v7881_v30 = vpop.f32.mrb[0].mxu0 }
 0x108   :  { %v238_v31 = vpop.f32.mrb[3].mxu1  ;;  %v7883_v32 = vpack.i.bf16 %v236_v28, %v230_v26  ;;  %v7043_v33 = vpack.c.bf16 %v236_v28, %v230_v26  ;;  %v7885_v34 = vpop.f32.mrb[1].mxu0 }
 0x109   :  { %v7054_v35 = vpack.c.bf16 %v238_v31, %v232_v27  ;;  %v7887_v36 = vpack.i.bf16 %v238_v31, %v232_v27 }
 0x10a   :  { %7300 = vrot.lane.b32.xlu0 %v7883_v32, %s7772_s7  ;;  %7045 = vmatpush3.bf16.xpose.msk.msra.mxu0 %vm7877_vm4, %v7043_v33 }
 0x10b   :  { %7050 = vmatprep.subr.bf16.mxu0 %v7770_v23  ;;  %v7916_v43 = vpop.f32.mrb[4].mxu1 }
 0x10c   :  { %v7918_v44 = vpop.f32.mrb[5].mxu1 }
 0x10d   :  { %v7894_v37 = vpop.f32.mrb[2].mxu0 }
 0x10e   :  { %430 = vrot.lane.b32.xlu0 %v7885_v34, %s7772_s7  ;;  %v7898_v38 = vpop.f32.mrb[3].mxu0 }
 0x10f   :  { %v7075_v39 = vpack.c.bf16 %v7894_v37, %v7898_v38  ;;  %v7920_v45 = vpop.f32.mrb[6].mxu1  ;;  %v7964_v27 = vpack.i.bf16 %v7894_v37, %v7898_v38 }
 0x110   :  { %v7922_v46 = vpop.f32.mrb[7].mxu1  ;;  %v7936_v57 = vpack.i.bf16 %v7920_v45, %v7916_v43  ;;  %v7099_v59 = vpack.c.bf16 %v7920_v45, %v7916_v43 }
 0x111   :  { %6560 = vmatmul.mubr.msk.f32.vlgmr.msra.gmra.mrb[6].mxu0 %vm338_vm3, %v7885_v34  ;;  %v7910_v40 = vpop.f32.mrb[4].mxu0  ;;  %v7110_v47 = vpack.c.bf16 %v7922_v46, %v7918_v44  ;;  %v7940_v58 = vpack.i.bf16 %v7922_v46, %v7918_v44 }
 0x112   :  { %7305 = vrot.lane.b32.xlu0 %v7887_v36, %s7773_s8  ;;  %6573 = vmatprep.mubr.msk.f32.mxu0 %vm7771_vm2, %v7769_v0  ;;  %v7912_v41 = vpop.f32.mrb[5].mxu0 }
 0x113   :  { %v7131_v42 = vpack.c.bf16 %v7910_v40, %v7912_v41  ;;  %v7968_v28 = vpack.i.bf16 %v7910_v40, %v7912_v41 }
 0x116   :  { %678 = vrot.lane.b32.xlu0 %v7885_v34, %s7773_s8 }
 0x17c   :  { %v7301_v48 = vpop.permute.xlu0 %7300 }
 0x17d   :  { %v7303_v49 = vunpack.i.h.bf16 %v7301_v48  ;;  %v7302_v50 = vunpack.i.l.bf16 %v7301_v48 }
 0x17f   :  { %v7047_v51 = vpack.c.bf16 %v7303_v49, %v7302_v50 }
 0x180   :  { %v431_v52 = vpop.permute.xlu0 %430 }
 0x181   :  { %7049 = vmatpush3.bf16.xpose.msk.msra.mxu1 %vm7877_vm4, %v7047_v51 }
 0x182   :  { %7053 = vmatprep.subr.bf16.mxu1 %v7770_v23 }
 0x184   :  { %v7306_v53 = vpop.permute.xlu0 %7305 }
 0x185   :  { %v7308_v54 = vunpack.i.h.bf16 %v7306_v53  ;;  %v7307_v55 = vunpack.i.l.bf16 %v7306_v53 }
 0x187   :  { %v7051_v56 = vpack.c.bf16 %v7308_v54, %v7307_v55 }
 0x188   :  { %6567 = vmatmul.mubr.msk.f32.vlgmr.msra.gmra.mrb[8].mxu1 %vm338_vm3, %v431_v52  ;;  %v679_v5 = vpop.permute.xlu0 %678 }
 0x189   :  { %7052 = vmatpush3.bf16.msra.mxu0 %v7051_v56  ;;  %7055 = vmatpush3.bf16.msra.mxu1 %v7054_v35 }
 0x18a   :  { %6580 = vmatprep.mubr.msk.f32.mxu1 %vm7771_vm2, %v7769_v0  ;;  %7056 = vmatprep.subr.bf16.mxu0 %v7770_v23 }
 0x18b   :  { %7060 = vmatprep.subr.bf16.mxu1 %v7770_v23 }
 0x1e4   :  { %v414_v60 = vpop.f32.mrb[6].mxu0 }
 0x1e5   :  { %v418_v61 = vmul.f32 0.25, %v414_v60  ;;  %v6561_v62 = vpop.f32.mrb[7].mxu0 }
 0x1e7   :  { %v419_v63 = vsel %vm338_vm3, %v418_v61, -inf }
 0x1e8   :  { %420 = vmax.xlane.f32.xlu0 %v419_v63 }
 0x25b   :  { %v508_v1 = vpop.f32.mrb[8].mxu1 }
 0x25c   :  { %v512_v2 = vmul.f32 0.25, %v508_v1  ;;  %v6568_v3 = vpop.f32.mrb[9].mxu1 }
 0x25e   :  { %v513_v4 = vsel %vm338_vm3, %v512_v2, -inf }
 0x25f   :  { %514 = vmax.xlane.f32.xlu1 %v513_v4 }
 0x275   :  { %v421_v6 = vpop.xlane.xlu0 %420 }
 0x276   :  { %v422_v7 = vsub.f32 %v418_v61, %v421_v6 }
 0x278   :  { %v423_v8 = vmul.f32 1.442695, %v422_v7 }
 0x27a   :  { %7559 = vpow2.f32 %v423_v8 }
 0x284   :  { %v7560_v9 = vpop.eup %7559 }
 0x285   :  { %v425_v10 = vsel %vm338_vm3, %v7560_v9, 0.0 }
 0x286   :  { %426 = vadd.xlane.f32.xlu0 %v425_v10 }
 0x2ec   :  { %v515_v11 = vpop.xlane.xlu1 %514 }
 0x2ed   :  { %v516_v12 = vsub.f32 %v512_v2, %v515_v11 }
 0x2ef   :  { %v517_v13 = vmul.f32 1.442695, %v516_v12 }
 0x2f1   :  { %7561 = vpow2.f32 %v517_v13 }
 0x2fb   :  { %v7562_v14 = vpop.eup %7561 }
 0x2fc   :  { %v519_v15 = vsel %vm338_vm3, %v7562_v14, 0.0 }
 0x2fd   :  { %520 = vadd.xlane.f32.xlu1 %v519_v15 }
 0x30e   :  { %7310 = vrot.lane.b32.xlu1 %v7883_v32, %s7773_s8 }
 0x313   :  { %v427_v16 = vpop.xlane.xlu0 %426 }
 0x314   :  { %7563 = vrcp.f32 %v427_v16 }
 0x31e   :  { %v7564_v17 = vpop.eup %7563 }
 0x31f   :  { %v429_v18 = vmul.f32 %v7564_v17, %v7560_v9 }
 0x321   :  { %6581 = vmatmul.mubr.msk.f32.vlgmr.msra.gmra.mrb[10].mxu1 %vm338_vm3, %v429_v18 }
 0x322   :  { %6594 = vmatprep.mubr.msk.f32.mxu1 %vm7771_vm2, %v7769_v0 }
 0x38a   :  { %v521_v19 = vpop.xlane.xlu1 %520 }
 0x38b   :  { %7565 = vrcp.f32 %v521_v19 }
 0x38e   :  { %v7311_v20 = vpop.permute.xlu1 %7310 }
 0x38f   :  { %v7313_v21 = vunpack.i.h.bf16 %v7311_v20  ;;  %v7312_v22 = vunpack.i.l.bf16 %v7311_v20 }
 0x391   :  { %v7057_v26 = vpack.c.bf16 %v7313_v21, %v7312_v22 }
 0x395   :  { %v7566_v24 = vpop.eup %7565 }
 0x396   :  { %v523_v25 = vmul.f32 %v7566_v24, %v7562_v14 }
 0x398   :  { %6574 = vmatmul.mubr.msk.f32.vlgmr.msra.gmra.mrb[8].mxu0 %vm338_vm3, %v523_v25 }
 0x399   :  { %7059 = vmatpush3.bf16.xpose.msk.msra.mxu0 %vm7877_vm4, %v7057_v26  ;;  %6587 = vmatprep.mubr.msk.f32.mxu0 %vm7771_vm2, %v7769_v0 }
 0x39a   :  { %7067 = vmatprep.subr.bf16.mxu0 %v7770_v23 }
 0x3a0   :  { %6588 = vmatmul.mubr.msk.f32.vlgmr.msra.gmra.mrb[10].mxu0 %vm338_vm3, %v679_v5 }
 0x3a1   :  { %6608 = vmatprep.mubr.msk.f32.mxu0 %vm7771_vm2, %v7769_v0 }
 0x3f4   :  { %v674_v31 = vpop.f32.mrb[10].mxu1 }
 0x3f5   :  { %v6582_v33 = vpop.f32.mrb[11].mxu1 }
 0x46b   :  { %v601_v35 = vpop.f32.mrb[8].mxu0 }
 0x46c   :  { %v675_v48 = vadd.f32 %v674_v31, %v601_v35  ;;  %v6575_v49 = vpop.f32.mrb[9].mxu0 }
 0x473   :  { %v756_v50 = vpop.f32.mrb[10].mxu0 }
 0x474   :  { %v760_v51 = vmul.f32 0.25, %v756_v50  ;;  %v6589_v52 = vpop.f32.mrb[11].mxu0 }
 0x476   :  { %v761_v53 = vsel %vm338_vm3, %v760_v51, -inf }
 0x477   :  { %762 = vmax.xlane.f32.xlu1 %v761_v53 }
 0x488   :  { %7320 = vrot.lane.b32.xlu1 %v7883_v32, %s7774_s9 }
 0x504   :  { %v763_v54 = vpop.xlane.xlu1 %762 }
 0x505   :  { %v764_v55 = vsub.f32 %v760_v51, %v763_v54 }
 0x507   :  { %v765_v56 = vmul.f32 1.442695, %v764_v55 }
 0x508   :  { %v7321_v4 = vpop.permute.xlu1 %7320 }
 0x509   :  { %7567 = vpow2.f32 %v765_v56  ;;  %v7323_v6 = vunpack.i.h.bf16 %v7321_v4  ;;  %v7322_v7 = vunpack.i.l.bf16 %v7321_v4 }
 0x50b   :  { %v7064_v9 = vpack.c.bf16 %v7323_v6, %v7322_v7 }
 0x513   :  { %v7568_v60 = vpop.eup %7567 }
 0x514   :  { %v767_v61 = vsel %vm338_vm3, %v7568_v60, 0.0 }
 0x515   :  { %768 = vadd.xlane.f32.xlu0 %v767_v61 }
 0x52b   :  { %7315 = vrot.lane.b32.xlu0 %v7887_v36, %s7775_s10 }
 0x52f   :  { %852 = vrot.lane.b32.xlu0 %v7885_v34, %s7774_s9 }
 0x5a2   :  { %v769_v62 = vpop.xlane.xlu0 %768 }
 0x5a3   :  { %7569 = vrcp.f32 %v769_v62 }
 0x5a6   :  { %v7316_v63 = vpop.permute.xlu0 %7315 }
 0x5a7   :  { %v7318_v1 = vunpack.i.h.bf16 %v7316_v63  ;;  %v7317_v2 = vunpack.i.l.bf16 %v7316_v63 }
 0x5a9   :  { %v7061_v3 = vpack.c.bf16 %v7318_v1, %v7317_v2 }
 0x5aa   :  { %v853_v10 = vpop.permute.xlu0 %852 }
 0x5ab   :  { %7062 = vmatpush3.bf16.msra.mxu1 %v7061_v3 }
 0x5ac   :  { %7063 = vmatprep.subr.bf16.mxu1 %v7770_v23 }
 0x5ad   :  { %v7570_v5 = vpop.eup %7569 }
 0x5ae   :  { %v771_v8 = vmul.f32 %v7570_v5, %v7568_v60 }
 0x5b0   :  { %6595 = vmatmul.mubr.msk.f32.vlgmr.msra.gmra.mrb[12].mxu1 %vm338_vm3, %v771_v8 }
 0x5b1   :  { %6601 = vmatprep.mubr.msk.f32.mxu1 %vm7771_vm2, %v7769_v0 }
 0x5b4   :  { %7066 = vmatpush3.bf16.xpose.msk.msra.mxu1 %vm7877_vm4, %v7064_v9 }
 0x5b5   :  { %7074 = vmatprep.subr.bf16.mxu1 %v7770_v23 }
 0x5bb   :  { %6602 = vmatmul.mubr.msk.f32.vlgmr.msra.gmra.mrb[14].mxu1 %vm338_vm3, %v853_v10 }
 0x5bc   :  { %7076 = vmatpush3.bf16.msra.mxu1 %v7075_v39  ;;  %6622 = vmatprep.mubr.msk.f32.mxu1 %vm7771_vm2, %v7769_v0 }
 0x5bd   :  { %7077 = vmatprep.subr.bf16.mxu1 %v7770_v23 }
 0x683   :  { %v847_v11 = vpop.f32.mrb[12].mxu1 }
 0x684   :  { %v851_v12 = vadd.f32 %v847_v11, %v675_v48  ;;  %v6596_v13 = vpop.f32.mrb[13].mxu1 }
 0x68e   :  { %v930_v14 = vpop.f32.mrb[14].mxu1 }
 0x68f   :  { %v934_v15 = vmul.f32 0.25, %v930_v14  ;;  %v6603_v16 = vpop.f32.mrb[15].mxu1 }
 0x691   :  { %v935_v17 = vsel %vm338_vm3, %v934_v15, -inf }
 0x692   :  { %936 = vmax.xlane.f32.xlu1 %v935_v17 }
 0x6a3   :  { %7330 = vrot.lane.b32.xlu1 %v7883_v32, %s7775_s10 }
 0x6a7   :  { %1026 = vrot.lane.b32.xlu1 %v7885_v34, %s7775_s10 }
 0x71f   :  { %v937_v37 = vpop.xlane.xlu1 %936 }
 0x720   :  { %v938_v38 = vsub.f32 %v934_v15, %v937_v37 }
 0x722   :  { %v939_v39 = vmul.f32 1.442695, %v938_v38 }
 0x723   :  { %v7331_v26 = vpop.permute.xlu1 %7330 }
 0x724   :  { %7571 = vpow2.f32 %v939_v39  ;;  %v7333_v33 = vunpack.i.h.bf16 %v7331_v26  ;;  %v7332_v35 = vunpack.i.l.bf16 %v7331_v26 }
 0x727   :  { %v1027_v49 = vpop.permute.xlu1 %1026 }
 0x72e   :  { %v7572_v18 = vpop.eup %7571 }
 0x72f   :  { %v941_v19 = vsel %vm338_vm3, %v7572_v18, 0.0 }
 0x730   :  { %942 = vadd.xlane.f32.xlu0 %v941_v19 }
 0x746   :  { %7325 = vrot.lane.b32.xlu0 %v7887_v36, %s7776_s11  ;;  %v7071_v36 = vpack.c.bf16 %v7333_v33, %v7332_v35 }
 0x7bd   :  { %v943_v20 = vpop.xlane.xlu0 %942 }
 0x7be   :  { %7573 = vrcp.f32 %v943_v20 }
 0x7c1   :  { %v7326_v21 = vpop.permute.xlu0 %7325 }
 0x7c2   :  { %v7328_v22 = vunpack.i.h.bf16 %v7326_v21  ;;  %v7327_v24 = vunpack.i.l.bf16 %v7326_v21 }
 0x7c4   :  { %v7068_v25 = vpack.c.bf16 %v7328_v22, %v7327_v24 }
 0x7c6   :  { %7069 = vmatpush3.bf16.msra.mxu0 %v7068_v25 }
 0x7c7   :  { %7070 = vmatprep.subr.bf16.mxu0 %v7770_v23 }
 0x7c8   :  { %v7574_v31 = vpop.eup %7573 }
 0x7c9   :  { %v945_v48 = vmul.f32 %v7574_v31, %v7572_v18 }
 0x7cb   :  { %6609 = vmatmul.mubr.msk.f32.vlgmr.msra.gmra.mrb[12].mxu0 %vm338_vm3, %v945_v48 }
 0x7cc   :  { %6615 = vmatprep.mubr.msk.f32.mxu0 %vm7771_vm2, %v7769_v0 }
 0x7cf   :  { %7073 = vmatpush3.bf16.xpose.msk.msra.mxu0 %vm7877_vm4, %v7071_v36 }
 0x7d0   :  { %7081 = vmatprep.subr.bf16.mxu0 %v7770_v23 }
 0x7d6   :  { %6616 = vmatmul.mubr.msk.f32.vlgmr.msra.gmra.mrb[14].mxu0 %vm338_vm3, %v1027_v49 }
 0x7d7   :  { %6636 = vmatprep.mubr.msk.f32.mxu0 %vm7771_vm2, %v7769_v0 }
 0x89e   :  { %v1021_v50 = vpop.f32.mrb[12].mxu0 }
 0x89f   :  { %v1025_v51 = vadd.f32 %v1021_v50, %v851_v12  ;;  %v6610_v52 = vpop.f32.mrb[13].mxu0 }
 0x8a9   :  { %v1104_v53 = vpop.f32.mrb[14].mxu0 }
 0x8aa   :  { %v1108_v54 = vmul.f32 0.25, %v1104_v53  ;;  %v6617_v55 = vpop.f32.mrb[15].mxu0 }
 0x8ac   :  { %v1109_v56 = vsel %vm338_vm3, %v1108_v54, -inf }
 0x8ad   :  { %1110 = vmax.xlane.f32.xlu0 %v1109_v56 }
 0x8c3   :  { %7335 = vrot.lane.b32.xlu0 %v7883_v32, %s7777_s12 }
 0x93a   :  { %v1111_v60 = vpop.xlane.xlu0 %1110 }
 0x93b   :  { %v1112_v61 = vsub.f32 %v1108_v54, %v1111_v60 }
 0x93d   :  { %v1113_v62 = vmul.f32 1.442695, %v1112_v61 }
 0x93e   :  { %v7336_v3 = vpop.permute.xlu0 %7335 }
 0x93f   :  { %7575 = vpow2.f32 %v1113_v62  ;;  %v7338_v4 = vunpack.i.h.bf16 %v7336_v3  ;;  %v7337_v5 = vunpack.i.l.bf16 %v7336_v3 }
 0x941   :  { %v7078_v8 = vpack.c.bf16 %v7338_v4, %v7337_v5 }
 0x949   :  { %v7576_v63 = vpop.eup %7575 }
 0x94a   :  { %v1115_v1 = vsel %vm338_vm3, %v7576_v63, 0.0 }
 0x94b   :  { %1116 = vadd.xlane.f32.xlu1 %v1115_v1 }
 0x95c   :  { %1194 = vrot.lane.b32.xlu1 %v7885_v34, %s7777_s12 }
 0x9d8   :  { %v1117_v2 = vpop.xlane.xlu1 %1116 }
 0x9d9   :  { %7577 = vrcp.f32 %v1117_v2 }
 0x9dc   :  { %v1195_v9 = vpop.permute.xlu1 %1194 }
 0x9e3   :  { %v7578_v6 = vpop.eup %7577 }
 0x9e4   :  { %v1119_v7 = vmul.f32 %v7578_v6, %v7576_v63 }
 0x9e6   :  { %6623 = vmatmul.mubr.msk.f32.vlgmr.msra.gmra.mrb[16].mxu1 %vm338_vm3, %v1119_v7 }
 0x9e7   :  { %7080 = vmatpush3.bf16.xpose.msk.msra.mxu1 %vm7877_vm4, %v7078_v8  ;;  %6629 = vmatprep.mubr.msk.f32.mxu1 %vm7771_vm2, %v7769_v0 }
 0x9e8   :  { %7088 = vmatprep.subr.bf16.mxu1 %v7770_v23 }
 0x9ee   :  { %6630 = vmatmul.mubr.msk.f32.vlgmr.msra.gmra.mrb[18].mxu1 %vm338_vm3, %v1195_v9 }
 0x9ef   :  { %6650 = vmatprep.mubr.msk.f32.mxu1 %vm7771_vm2, %v7769_v0 }
 0xab9   :  { %v1189_v10 = vpop.f32.mrb[16].mxu1 }
 0xaba   :  { %v1193_v11 = vadd.f32 %v1189_v10, %v1025_v51  ;;  %v6624_v12 = vpop.f32.mrb[17].mxu1 }
 0xac1   :  { %v1272_v13 = vpop.f32.mrb[18].mxu1 }
 0xac2   :  { %v1276_v14 = vmul.f32 0.25, %v1272_v13  ;;  %v6631_v15 = vpop.f32.mrb[19].mxu1 }
 0xac4   :  { %v1277_v16 = vsel %vm338_vm3, %v1276_v14, -inf }
 0xac5   :  { %1278 = vmax.xlane.f32.xlu0 %v1277_v16 }
 0xadb   :  { %7340 = vrot.lane.b32.xlu0 %v7964_v27, %s7773_s8 }
 0xadf   :  { %1370 = vrot.lane.b32.xlu0 %v7885_v34, %s7776_s11 }
 0xb52   :  { %v1279_v17 = vpop.xlane.xlu0 %1278 }
 0xb53   :  { %v1280_v37 = vsub.f32 %v1276_v14, %v1279_v17 }
 0xb55   :  { %v1281_v38 = vmul.f32 1.442695, %v1280_v37 }
 0xb56   :  { %v7341_v39 = vpop.permute.xlu0 %7340 }
 0xb57   :  { %7579 = vpow2.f32 %v1281_v38  ;;  %v7343_v18 = vunpack.i.h.bf16 %v7341_v39  ;;  %v7342_v19 = vunpack.i.l.bf16 %v7341_v39 }
 0xb59   :  { %v7082_v20 = vpack.c.bf16 %v7343_v18, %v7342_v19 }
 0xb5a   :  { %v1371_v36 = vpop.permute.xlu0 %1370 }
 0xb5b   :  { %7083 = vmatpush3.bf16.msra.mxu0 %v7082_v20 }
 0xb5c   :  { %7084 = vmatprep.subr.bf16.mxu0 %v7770_v23 }
 0xb61   :  { %v7580_v21 = vpop.eup %7579 }
 0xb62   :  { %v1283_v22 = vsel %vm338_vm3, %v7580_v21, 0.0 }
 0xb63   :  { %1284 = vadd.xlane.f32.xlu1 %v1283_v22 }
 0xb74   :  { %7345 = vrot.lane.b32.xlu1 %v7883_v32, %s7776_s11 }
 0xbf0   :  { %v1285_v24 = vpop.xlane.xlu1 %1284 }
 0xbf1   :  { %7581 = vrcp.f32 %v1285_v24 }
 0xbf4   :  { %v7346_v25 = vpop.permute.xlu1 %7345 }
 0xbf5   :  { %v7348_v26 = vunpack.i.h.bf16 %v7346_v25  ;;  %v7347_v31 = vunpack.i.l.bf16 %v7346_v25 }
 0xbf7   :  { %v7085_v48 = vpack.c.bf16 %v7348_v26, %v7347_v31 }
 0xbfb   :  { %v7582_v33 = vpop.eup %7581 }
 0xbfc   :  { %v1287_v35 = vmul.f32 %v7582_v33, %v7580_v21 }
 0xbfe   :  { %6637 = vmatmul.mubr.msk.f32.vlgmr.msra.gmra.mrb[16].mxu0 %vm338_vm3, %v1287_v35 }
 0xbff   :  { %7087 = vmatpush3.bf16.xpose.msk.msra.mxu0 %vm7877_vm4, %v7085_v48  ;;  %6643 = vmatprep.mubr.msk.f32.mxu0 %vm7771_vm2, %v7769_v0 }
 0xc00   :  { %7095 = vmatprep.subr.bf16.mxu0 %v7770_v23 }
 0xc06   :  { %6644 = vmatmul.mubr.msk.f32.vlgmr.msra.gmra.mrb[18].mxu0 %vm338_vm3, %v1371_v36 }
 0xc07   :  { %6664 = vmatprep.mubr.msk.f32.mxu0 %vm7771_vm2, %v7769_v0 }
 0xcd1   :  { %v1365_v49 = vpop.f32.mrb[16].mxu0 }
 0xcd2   :  { %v1369_v50 = vadd.f32 %v1365_v49, %v1193_v11  ;;  %v6638_v51 = vpop.f32.mrb[17].mxu0 }
 0xcd9   :  { %v1448_v52 = vpop.f32.mrb[18].mxu0 }
 0xcda   :  { %v1452_v53 = vmul.f32 0.25, %v1448_v52  ;;  %v6645_v54 = vpop.f32.mrb[19].mxu0 }
 0xcdc   :  { %v1453_v55 = vsel %vm338_vm3, %v1452_v53, -inf }
 0xcdd   :  { %1454 = vmax.xlane.f32.xlu1 %v1453_v55 }
 0xcee   :  { %7355 = vrot.lane.b32.xlu1 %v7883_v32, %s7778_s13 }
 0xcf2   :  { %1544 = vrot.lane.b32.xlu1 %v7885_v34, %s7778_s13 }
 0xcf6   :  { %1816 = vrot.lane.b32.xlu1 %v7881_v30, %s7772_s7 }
 0xd6a   :  { %v1455_v56 = vpop.xlane.xlu1 %1454 }
 0xd6b   :  { %v1456_v60 = vsub.f32 %v1452_v53, %v1455_v56 }
 0xd6d   :  { %v1457_v61 = vmul.f32 1.442695, %v1456_v60 }
 0xd6e   :  { %v7356_v4 = vpop.permute.xlu1 %7355 }
 0xd6f   :  { %7583 = vpow2.f32 %v1457_v61  ;;  %v7358_v6 = vunpack.i.h.bf16 %v7356_v4  ;;  %v7357_v7 = vunpack.i.l.bf16 %v7356_v4 }
 0xd71   :  { %v7092_v9 = vpack.c.bf16 %v7358_v6, %v7357_v7 }
 0xd72   :  { %v1545_v13 = vpop.permute.xlu1 %1544 }
 0xd76   :  { %v1817_v15 = vpop.permute.xlu1 %1816 }
 0xd79   :  { %v7584_v62 = vpop.eup %7583 }
 0xd7a   :  { %v1459_v63 = vsel %vm338_vm3, %v7584_v62, 0.0 }
 0xd7b   :  { %1460 = vadd.xlane.f32.xlu0 %v1459_v63 }
 0xd91   :  { %7350 = vrot.lane.b32.xlu0 %v7964_v27, %s7775_s10 }
 0xd95   :  { %7360 = vrot.lane.b32.xlu0 %v7936_v57, %s7772_s7 }
 0xe08   :  { %v1461_v32 = vpop.xlane.xlu0 %1460 }
 0xe09   :  { %7585 = vrcp.f32 %v1461_v32 }
 0xe0c   :  { %v7351_v34 = vpop.permute.xlu0 %7350 }
 0xe0d   :  { %v7353_v1 = vunpack.i.h.bf16 %v7351_v34  ;;  %v7352_v2 = vunpack.i.l.bf16 %v7351_v34 }
 0xe0f   :  { %v7089_v3 = vpack.c.bf16 %v7353_v1, %v7352_v2 }
 0xe10   :  { %v7361_v10 = vpop.permute.xlu0 %7360 }
 0xe11   :  { %7090 = vmatpush3.bf16.msra.mxu1 %v7089_v3  ;;  %v7363_v11 = vunpack.i.h.bf16 %v7361_v10  ;;  %v7362_v12 = vunpack.i.l.bf16 %v7361_v10 }
 0xe12   :  { %7091 = vmatprep.subr.bf16.mxu1 %v7770_v23 }
 0xe13   :  { %v7586_v5 = vpop.eup %7585  ;;  %v7103_v14 = vpack.c.bf16 %v7363_v11, %v7362_v12 }
 0xe14   :  { %v1463_v8 = vmul.f32 %v7586_v5, %v7584_v62 }
 0xe16   :  { %6651 = vmatmul.mubr.msk.f32.vlgmr.msra.gmra.mrb[20].mxu1 %vm338_vm3, %v1463_v8 }
 0xe17   :  { %6657 = vmatprep.mubr.msk.f32.mxu1 %vm7771_vm2, %v7769_v0 }
 0xe1a   :  { %7094 = vmatpush3.bf16.xpose.msk.msra.mxu1 %vm7877_vm4, %v7092_v9 }
 0xe1b   :  { %7102 = vmatprep.subr.bf16.mxu1 %v7770_v23 }
 0xe21   :  { %6658 = vmatmul.mubr.msk.f32.vlgmr.msra.gmra.mrb[22].mxu1 %vm338_vm3, %v1545_v13 }
 0xe22   :  { %7105 = vmatpush3.bf16.xpose.msk.msra.mxu1 %vm7877_vm4, %v7103_v14  ;;  %6678 = vmatprep.mubr.msk.f32.mxu1 %vm7771_vm2, %v7769_v0 }
 0xe23   :  { %7109 = vmatprep.subr.bf16.mxu1 %v7770_v23 }
 0xe29   :  { %6679 = vmatmul.mubr.msk.f32.vlgmr.msra.gmra.mrb[24].mxu1 %vm338_vm3, %v1817_v15 }
 0xe2a   :  { %7111 = vmatpush3.bf16.msra.mxu1 %v7110_v47  ;;  %6692 = vmatprep.mubr.msk.f32.mxu1 %vm7771_vm2, %v7769_v0 }
 0xe2b   :  { %7116 = vmatprep.subr.bf16.mxu1 %v7770_v23 }
 0xee9   :  { %v1539_v16 = vpop.f32.mrb[20].mxu1 }
 0xeea   :  { %v8075_v17 = vadd.f32 %v1539_v16, %v1369_v50  ;;  %v6652_v37 = vpop.f32.mrb[21].mxu1 }
 0xef4   :  { %v1622_v38 = vpop.f32.mrb[22].mxu1 }
 0xef5   :  { %v1626_v39 = vmul.f32 0.25, %v1622_v38  ;;  %v6659_v18 = vpop.f32.mrb[23].mxu1 }
 0xef7   :  { %v1627_v19 = vsel %vm338_vm3, %v1626_v39, -inf }
 0xef8   :  { %1628 = vmax.xlane.f32.xlu0 %v1627_v19 }
 0xefc   :  { %v1894_v20 = vpop.f32.mrb[24].mxu1 }
 0xefd   :  { %v1898_v21 = vmul.f32 0.25, %v1894_v20  ;;  %v6680_v22 = vpop.f32.mrb[25].mxu1 }
 0xeff   :  { %v1899_v44 = vsel %vm338_vm3, %v1898_v21, -inf }
 0xf00   :  { %1900 = vmax.xlane.f32.xlu1 %v1899_v44 }
 0xf11   :  { %7370 = vrot.lane.b32.xlu1 %v7940_v58, %s7773_s8 }
 0xf85   :  { %v1629_v46 = vpop.xlane.xlu0 %1628 }
 0xf86   :  { %v1630_v47 = vsub.f32 %v1626_v39, %v1629_v46 }
 0xf88   :  { %v1631_v24 = vmul.f32 1.442695, %v1630_v47 }
 0xf8a   :  { %7587 = vpow2.f32 %v1631_v24 }
 0xf8d   :  { %v1901_v25 = vpop.xlane.xlu1 %1900 }
 0xf8e   :  { %v1902_v26 = vsub.f32 %v1898_v21, %v1901_v25 }
 0xf90   :  { %v1903_v31 = vmul.f32 1.442695, %v1902_v26 }
 0xf91   :  { %v7371_v53 = vpop.permute.xlu1 %7370 }
 0xf92   :  { %7589 = vpow2.f32 %v1903_v31  ;;  %v7372_v61 = vunpack.i.l.bf16 %v7371_v53 }
 0xf94   :  { %v7588_v33 = vpop.eup %7587 }
 0xf95   :  { %v1633_v35 = vsel %vm338_vm3, %v7588_v33, 0.0 }
 0xf96   :  { %1634 = vadd.xlane.f32.xlu0 %v1633_v35 }
 0xf9c   :  { %v7590_v48 = vpop.eup %7589 }
 0xf9d   :  { %v1905_v36 = vsel %vm338_vm3, %v7590_v48, 0.0 }
 0xf9e   :  { %1906 = vadd.xlane.f32.xlu1 %v1905_v36 }
 0xfac   :  { %7365 = vrot.lane.b32.xlu0 %v7964_v27, %s7776_s11  ;;  %v7373_v27 = vunpack.i.h.bf16 %v7371_v53 }
 0xfae   :  { %v7107_v63 = vpack.c.bf16 %v7373_v27, %v7372_v61 }
 0xfaf   :  { %2064 = vrot.lane.b32.xlu1 %v7881_v30, %s7773_s8 }
 0xfb0   :  { %7375 = vrot.lane.b32.xlu0 %v7936_v57, %s7773_s8 }
0x1023   :  { %v1635_v49 = vpop.xlane.xlu0 %1634 }
0x1024   :  { %7591 = vrcp.f32 %v1635_v49 }
0x1027   :  { %v7366_v50 = vpop.permute.xlu0 %7365 }
0x1028   :  { %v7368_v51 = vunpack.i.h.bf16 %v7366_v50  ;;  %v7367_v52 = vunpack.i.l.bf16 %v7366_v50 }
0x102a   :  { %v7096_v54 = vpack.c.bf16 %v7368_v51, %v7367_v52 }
0x102b   :  { %v1907_v56 = vpop.xlane.xlu1 %1906  ;;  %v7376_v32 = vpop.permute.xlu0 %7375 }
0x102c   :  { %7097 = vmatpush3.bf16.msra.mxu0 %v7096_v54  ;;  %7593 = vrcp.f32 %v1907_v56  ;;  %v7378_v43 = vunpack.i.h.bf16 %v7376_v32  ;;  %v7377_v45 = vunpack.i.l.bf16 %v7376_v32 }
0x102d   :  { %7098 = vmatprep.subr.bf16.mxu0 %v7770_v23 }
0x102e   :  { %v7592_v55 = vpop.eup %7591 }
0x102f   :  { %v1637_v60 = vmul.f32 %v7592_v55, %v7588_v33  ;;  %v2065_v1 = vpop.permute.xlu1 %2064 }
0x1031   :  { %6665 = vmatmul.mubr.msk.f32.vlgmr.msra.gmra.mrb[20].mxu0 %vm338_vm3, %v1637_v60 }
0x1032   :  { %6671 = vmatprep.mubr.msk.f32.mxu0 %vm7771_vm2, %v7769_v0 }
0x1035   :  { %7101 = vmatpush3.bf16.xpose.msk.msra.mxu0 %vm7877_vm4, %v7099_v59  ;;  %v7113_v59 = vpack.c.bf16 %v7378_v43, %v7377_v45 }
0x1036   :  { %7106 = vmatprep.subr.bf16.mxu0 %v7770_v23  ;;  %v7594_v62 = vpop.eup %7593 }
0x1037   :  { %v1909_v34 = vmul.f32 %v7594_v62, %v7590_v48 }
0x103c   :  { %6672 = vmatmul.mubr.msk.f32.vlgmr.msra.gmra.mrb[22].mxu0 %vm338_vm3, %v7881_v30 }
0x103d   :  { %7108 = vmatpush3.bf16.msra.mxu0 %v7107_v63  ;;  %6685 = vmatprep.mubr.msk.f32.mxu0 %vm7771_vm2, %v7769_v0 }
0x103e   :  { %7112 = vmatprep.subr.bf16.mxu0 %v7770_v23 }
0x1040   :  { %6686 = vmatmul.mubr.msk.f32.vlgmr.msra.gmra.mrb[24].mxu0 %vm338_vm3, %v1909_v34 }
0x1041   :  { %6699 = vmatprep.mubr.msk.f32.mxu0 %vm7771_vm2, %v7769_v0 }
0x1046   :  { %7115 = vmatpush3.bf16.xpose.msk.msra.mxu0 %vm7877_vm4, %v7113_v59 }
0x1047   :  { %7123 = vmatprep.subr.bf16.mxu0 %v7770_v23 }
0x104d   :  { %6700 = vmatmul.mubr.msk.f32.vlgmr.msra.gmra.mrb[26].mxu0 %vm338_vm3, %v2065_v1 }
0x104e   :  { %6720 = vmatprep.mubr.msk.f32.mxu0 %vm7771_vm2, %v7769_v0 }
0x1104   :  { %v1713_v2 = vpop.f32.mrb[20].mxu0 }
0x1105   :  { %v8114_v3 = vadd.f32 %v1713_v2, %v8075_v17  ;;  %v6666_v4 = vpop.f32.mrb[21].mxu0 }
0x110f   :  { %v1800_v5 = vpop.f32.mrb[22].mxu0 }
0x1110   :  { %v1804_v6 = vmul.f32 0.25, %v1800_v5  ;;  %v6673_v7 = vpop.f32.mrb[23].mxu0 }
0x1112   :  { %v1805_v8 = vsel %vm338_vm3, %v1804_v6, -inf }
0x1113   :  { %1806 = vmax.xlane.f32.xlu0 %v1805_v8  ;;  %v1987_v9 = vpop.f32.mrb[24].mxu0 }
0x1114   :  { %v6687_v10 = vpop.f32.mrb[25].mxu0 }
0x1120   :  { %v2142_v11 = vpop.f32.mrb[26].mxu0 }
0x1121   :  { %v2146_v12 = vmul.f32 0.25, %v2142_v11  ;;  %v6701_v13 = vpop.f32.mrb[27].mxu0 }
0x1123   :  { %v2147_v14 = vsel %vm338_vm3, %v2146_v12, -inf }
0x1124   :  { %2148 = vmax.xlane.f32.xlu1 %v2147_v14 }
0x1135   :  { %7380 = vrot.lane.b32.xlu1 %v7940_v58, %s7775_s10 }
0x1139   :  { %2238 = vrot.lane.b32.xlu1 %v7881_v30, %s7774_s9 }
0x11a0   :  { %v1807_v15 = vpop.xlane.xlu0 %1806 }
0x11a1   :  { %v1808_v16 = vsub.f32 %v1804_v6, %v1807_v15 }
0x11a3   :  { %v1809_v17 = vmul.f32 1.442695, %v1808_v16 }
0x11a5   :  { %7595 = vpow2.f32 %v1809_v17 }
0x11af   :  { %v7596_v37 = vpop.eup %7595 }
0x11b0   :  { %v1811_v38 = vsel %vm338_vm3, %v7596_v37, 0.0 }
0x11b1   :  { %1812 = vadd.xlane.f32.xlu0 %v1811_v38  ;;  %v2149_v39 = vpop.xlane.xlu1 %2148 }
0x11b2   :  { %v2150_v18 = vsub.f32 %v2146_v12, %v2149_v39 }
0x11b4   :  { %v2151_v19 = vmul.f32 1.442695, %v2150_v18 }
0x11b5   :  { %v7381_v44 = vpop.permute.xlu1 %7380 }
0x11b6   :  { %7597 = vpow2.f32 %v2151_v19  ;;  %v7383_v46 = vunpack.i.h.bf16 %v7381_v44  ;;  %v7382_v47 = vunpack.i.l.bf16 %v7381_v44 }
0x11b8   :  { %v7117_v26 = vpack.c.bf16 %v7383_v46, %v7382_v47 }
0x11b9   :  { %v2239_v51 = vpop.permute.xlu1 %2238 }
0x11c0   :  { %v7598_v20 = vpop.eup %7597 }
0x11c1   :  { %v2153_v21 = vsel %vm338_vm3, %v7598_v20, 0.0 }
0x11c2   :  { %2154 = vadd.xlane.f32.xlu0 %v2153_v21 }
0x11d8   :  { %7385 = vrot.lane.b32.xlu0 %v7936_v57, %s7774_s9 }
0x123e   :  { %v1813_v22 = vpop.xlane.xlu0 %1812 }
0x123f   :  { %7599 = vrcp.f32 %v1813_v22 }
0x1249   :  { %v7600_v24 = vpop.eup %7599 }
0x124a   :  { %v1815_v25 = vmul.f32 %v7600_v24, %v7596_v37 }
0x124c   :  { %6693 = vmatmul.mubr.msk.f32.vlgmr.msra.gmra.mrb[26].mxu1 %vm338_vm3, %v1815_v25 }
0x124d   :  { %7118 = vmatpush3.bf16.msra.mxu1 %v7117_v26  ;;  %6706 = vmatprep.mubr.msk.f32.mxu1 %vm7771_vm2, %v7769_v0 }
0x124e   :  { %7119 = vmatprep.subr.bf16.mxu1 %v7770_v23 }
0x124f   :  { %v2155_v31 = vpop.xlane.xlu0 %2154 }
0x1250   :  { %7601 = vrcp.f32 %v2155_v31 }
0x1253   :  { %v7386_v33 = vpop.permute.xlu0 %7385 }
0x1254   :  { %v7388_v35 = vunpack.i.h.bf16 %v7386_v33  ;;  %v7387_v48 = vunpack.i.l.bf16 %v7386_v33 }
0x1256   :  { %v7120_v50 = vpack.c.bf16 %v7388_v35, %v7387_v48 }
0x125a   :  { %v7602_v36 = vpop.eup %7601 }
0x125b   :  { %v2157_v49 = vmul.f32 %v7602_v36, %v7598_v20 }
0x125d   :  { %6707 = vmatmul.mubr.msk.f32.vlgmr.msra.gmra.mrb[28].mxu1 %vm338_vm3, %v2157_v49 }
0x125e   :  { %7122 = vmatpush3.bf16.xpose.msk.msra.mxu1 %vm7877_vm4, %v7120_v50  ;;  %6713 = vmatprep.mubr.msk.f32.mxu1 %vm7771_vm2, %v7769_v0 }
0x125f   :  { %7130 = vmatprep.subr.bf16.mxu1 %v7770_v23 }
0x1265   :  { %6714 = vmatmul.mubr.msk.f32.vlgmr.msra.gmra.mrb[30].mxu1 %vm338_vm3, %v2239_v51 }
0x1266   :  { %7132 = vmatpush3.bf16.msra.mxu1 %v7131_v42  ;;  %6734 = vmatprep.mubr.msk.f32.mxu1 %vm7771_vm2, %v7769_v0 }
0x1267   :  { %7133 = vmatprep.subr.bf16.mxu1 %v7770_v23 }
0x131f   :  { %v2060_v52 = vpop.f32.mrb[26].mxu1 }
0x1320   :  { %v2061_v53 = vadd.f32 %v2060_v52, %v1987_v9  ;;  %v6694_v54 = vpop.f32.mrb[27].mxu1 }
0x1330   :  { %v2233_v55 = vpop.f32.mrb[28].mxu1 }
0x1331   :  { %v2237_v56 = vadd.f32 %v2233_v55, %v2061_v53  ;;  %v6708_v60 = vpop.f32.mrb[29].mxu1 }
0x1338   :  { %v2316_v27 = vpop.f32.mrb[30].mxu1 }
0x1339   :  { %v2320_v61 = vmul.f32 0.25, %v2316_v27  ;;  %v6715_v62 = vpop.f32.mrb[31].mxu1 }
0x133b   :  { %v2321_v63 = vsel %vm338_vm3, %v2320_v61, -inf }
0x133c   :  { %2322 = vmax.xlane.f32.xlu1 %v2321_v63 }
0x134d   :  { %7395 = vrot.lane.b32.xlu1 %v7936_v57, %s7775_s10 }
0x1351   :  { %2412 = vrot.lane.b32.xlu1 %v7881_v30, %s7775_s10 }
0x13c9   :  { %v2323_v40 = vpop.xlane.xlu1 %2322 }
0x13ca   :  { %v2324_v41 = vsub.f32 %v2320_v61, %v2323_v40 }
0x13cc   :  { %v2325_v42 = vmul.f32 1.442695, %v2324_v41 }
0x13cd   :  { %v7396_v4 = vpop.permute.xlu1 %7395 }
0x13ce   :  { %7603 = vpow2.f32 %v2325_v42  ;;  %v7398_v6 = vunpack.i.h.bf16 %v7396_v4  ;;  %v7397_v7 = vunpack.i.l.bf16 %v7396_v4 }
0x13d1   :  { %v2413_v9 = vpop.permute.xlu1 %2412 }
0x13d8   :  { %v7604_v32 = vpop.eup %7603 }
0x13d9   :  { %v2327_v34 = vsel %vm338_vm3, %v7604_v32, 0.0 }
0x13da   :  { %2328 = vadd.xlane.f32.xlu0 %v2327_v34 }
0x13f0   :  { %7390 = vrot.lane.b32.xlu0 %v7940_v58, %s7776_s11  ;;  %v7127_v58 = vpack.c.bf16 %v7398_v6, %v7397_v7 }
0x1467   :  { %v2329_v43 = vpop.xlane.xlu0 %2328 }
0x1468   :  { %7605 = vrcp.f32 %v2329_v43 }
0x146b   :  { %v7391_v45 = vpop.permute.xlu0 %7390 }
0x146c   :  { %v7393_v59 = vunpack.i.h.bf16 %v7391_v45  ;;  %v7392_v1 = vunpack.i.l.bf16 %v7391_v45 }
0x146e   :  { %v7124_v2 = vpack.c.bf16 %v7393_v59, %v7392_v1 }
0x1470   :  { %7125 = vmatpush3.bf16.msra.mxu0 %v7124_v2 }
0x1471   :  { %7126 = vmatprep.subr.bf16.mxu0 %v7770_v23 }
0x1472   :  { %v7606_v5 = vpop.eup %7605 }
0x1473   :  { %v2331_v8 = vmul.f32 %v7606_v5, %v7604_v32 }
0x1475   :  { %6721 = vmatmul.mubr.msk.f32.vlgmr.msra.gmra.mrb[28].mxu0 %vm338_vm3, %v2331_v8 }
0x1476   :  { %6727 = vmatprep.mubr.msk.f32.mxu0 %vm7771_vm2, %v7769_v0 }
0x1479   :  { %7129 = vmatpush3.bf16.xpose.msk.msra.mxu0 %vm7877_vm4, %v7127_v58 }
0x147a   :  { %7137 = vmatprep.subr.bf16.mxu0 %v7770_v23 }
0x1480   :  { %6728 = vmatmul.mubr.msk.f32.vlgmr.msra.gmra.mrb[30].mxu0 %vm338_vm3, %v2413_v9 }
0x1481   :  { %6748 = vmatprep.mubr.msk.f32.mxu0 %vm7771_vm2, %v7769_v0 }
0x1548   :  { %v2407_v10 = vpop.f32.mrb[28].mxu0 }
0x1549   :  { %v2411_v11 = vadd.f32 %v2407_v10, %v2237_v56  ;;  %v6722_v12 = vpop.f32.mrb[29].mxu0 }
0x1553   :  { %v2490_v13 = vpop.f32.mrb[30].mxu0 }
0x1554   :  { %v2494_v14 = vmul.f32 0.25, %v2490_v13  ;;  %v6729_v15 = vpop.f32.mrb[31].mxu0 }
0x1556   :  { %v2495_v16 = vsel %vm338_vm3, %v2494_v14, -inf }
0x1557   :  { %2496 = vmax.xlane.f32.xlu0 %v2495_v16 }
0x156d   :  { %7400 = vrot.lane.b32.xlu0 %v7936_v57, %s7777_s12 }
0x15e4   :  { %v2497_v17 = vpop.xlane.xlu0 %2496 }
0x15e5   :  { %v2498_v37 = vsub.f32 %v2494_v14, %v2497_v17 }
0x15e7   :  { %v2499_v38 = vmul.f32 1.442695, %v2498_v37 }
0x15e8   :  { %v7401_v20 = vpop.permute.xlu0 %7400 }
0x15e9   :  { %7607 = vpow2.f32 %v2499_v38  ;;  %v7403_v21 = vunpack.i.h.bf16 %v7401_v20  ;;  %v7402_v22 = vunpack.i.l.bf16 %v7401_v20 }
0x15eb   :  { %v7134_v47 = vpack.c.bf16 %v7403_v21, %v7402_v22 }
0x15f3   :  { %v7608_v39 = vpop.eup %7607 }
0x15f4   :  { %v2501_v18 = vsel %vm338_vm3, %v7608_v39, 0.0 }
0x15f5   :  { %2502 = vadd.xlane.f32.xlu1 %v2501_v18 }
0x1606   :  { %2580 = vrot.lane.b32.xlu1 %v7881_v30, %s7777_s12 }
0x1682   :  { %v2503_v19 = vpop.xlane.xlu1 %2502 }
0x1683   :  { %7609 = vrcp.f32 %v2503_v19 }
0x1686   :  { %v2581_v24 = vpop.permute.xlu1 %2580 }
0x168d   :  { %v7610_v44 = vpop.eup %7609 }
0x168e   :  { %v2505_v46 = vmul.f32 %v7610_v44, %v7608_v39 }
0x1690   :  { %6735 = vmatmul.mubr.msk.f32.vlgmr.msra.gmra.mrb[32].mxu1 %vm338_vm3, %v2505_v46 }
0x1691   :  { %7136 = vmatpush3.bf16.xpose.msk.msra.mxu1 %vm7877_vm4, %v7134_v47  ;;  %6741 = vmatprep.mubr.msk.f32.mxu1 %vm7771_vm2, %v7769_v0 }
0x1692   :  { %7144 = vmatprep.subr.bf16.mxu1 %v7770_v23 }
0x1698   :  { %6742 = vmatmul.mubr.msk.f32.vlgmr.msra.gmra.mrb[34].mxu1 %vm338_vm3, %v2581_v24 }
0x1699   :  { %6762 = vmatprep.mubr.msk.f32.mxu1 %vm7771_vm2, %v7769_v0 }
0x1763   :  { %v2575_v25 = vpop.f32.mrb[32].mxu1 }
0x1764   :  { %v2579_v26 = vadd.f32 %v2575_v25, %v2411_v11  ;;  %v6736_v31 = vpop.f32.mrb[33].mxu1 }
0x176b   :  { %v2658_v33 = vpop.f32.mrb[34].mxu1 }
0x176c   :  { %v2662_v35 = vmul.f32 0.25, %v2658_v33  ;;  %v6743_v48 = vpop.f32.mrb[35].mxu1 }
0x176d   :  { %v3112_v48 = vld [vmem:[#allocation5 + $0x50] sm:$0xff] }
0x176e   :  { %v2663_v36 = vsel %vm338_vm3, %v2662_v35, -inf }
0x176f   :  { %2664 = vmax.xlane.f32.xlu0 %v2663_v36  ;;  %v3115_v36 = vld [vmem:[#allocation5 + $0x68] sm:$0xff] }
0x1785   :  { %7405 = vrot.lane.b32.xlu0 %v7968_v28, %s7773_s8 }
0x1789   :  { %2756 = vrot.lane.b32.xlu0 %v7881_v30, %s7776_s11 }
0x17fc   :  { %v2665_v49 = vpop.xlane.xlu0 %2664 }
0x17fd   :  { %v2666_v50 = vsub.f32 %v2662_v35, %v2665_v49  ;;  %v3111_v49 = vld [vmem:[#allocation5 + $0x48] sm:$0xff] }
0x17ff   :  { %v2667_v51 = vmul.f32 1.442695, %v2666_v50  ;;  %v7162_v50 = vpack.c.bf16 %v3115_v36, %v3112_v48 }
0x1800   :  { %v7406_v52 = vpop.permute.xlu0 %7405 }
0x1801   :  { %7611 = vpow2.f32 %v2667_v51  ;;  %v7408_v53 = vunpack.i.h.bf16 %v7406_v52  ;;  %v7407_v54 = vunpack.i.l.bf16 %v7406_v52  ;;  %v3114_v51 = vld [vmem:[#allocation5 + $0x60] sm:$0xff] }
0x1802   :  { %v7164_v52 = vpack.c.bf16 %v3114_v51, %v3111_v49 }
0x1803   :  { %v7138_v55 = vpack.c.bf16 %v7408_v53, %v7407_v54  ;;  %v3106_v53 = vld [vmem:[#allocation2 + $0x20] sm:$0xff]  ;;  %v3107_v54 = vld [vmem:[#allocation2 + $0x28] sm:$0xff] }
0x1804   :  { %v2757_v32 = vpop.permute.xlu0 %2756 }
0x1805   :  { %7139 = vmatpush3.bf16.msra.mxu0 %v7138_v55  ;;  %v7154_v55 = vpack.c.bf16 %v3107_v54, %v3106_v53 }
0x1806   :  { %7140 = vmatprep.subr.bf16.mxu0 %v7770_v23 }
0x180b   :  { %v7612_v56 = vpop.eup %7611 }
0x180c   :  { %v2669_v60 = vsel %vm338_vm3, %v7612_v56, 0.0 }
0x180d   :  { %2670 = vadd.xlane.f32.xlu1 %v2669_v60  ;;  %v7687_v60 = vld [vmem:[%s8609_s1] sm:$0xff] }
0x181e   :  { %7410 = vrot.lane.b32.xlu1 %v7936_v57, %s7776_s11 }
0x189a   :  { %v2671_v27 = vpop.xlane.xlu1 %2670 }
0x189b   :  { %7613 = vrcp.f32 %v2671_v27  ;;  %v7688_v27 = vld [vmem:[%s8609_s1 + $0x8] sm:$0xff] }
0x189e   :  { %v7411_v61 = vpop.permute.xlu1 %7410 }
0x189f   :  { %v7413_v62 = vunpack.i.h.bf16 %v7411_v61  ;;  %v7412_v63 = vunpack.i.l.bf16 %v7411_v61  ;;  %v7689_v61 = vld [vmem:[%s8609_s1 + $0x10] sm:$0xff] }
0x18a1   :  { %v7141_v42 = vpack.c.bf16 %v7413_v62, %v7412_v63  ;;  %v7690_v62 = vld [vmem:[%s8609_s1 + $0x18] sm:$0xff] }
0x18a5   :  { %v7614_v40 = vpop.eup %7613 }
0x18a6   :  { %v2673_v41 = vmul.f32 %v7614_v40, %v7612_v56  ;;  %v3117_v56 = vld [vmem:[#allocation5 + $0x78] sm:$0xff]  ;;  %v6205_v40 = vld [vmem:[%s8612_s4] ss:$0 sm:$0xff] }
0x18a8   :  { %6749 = vmatmul.mubr.msk.f32.vlgmr.msra.gmra.mrb[32].mxu0 %vm338_vm3, %v2673_v41 }
0x18a9   :  { %7143 = vmatpush3.bf16.xpose.msk.msra.mxu0 %vm7877_vm4, %v7141_v42  ;;  %6755 = vmatprep.mubr.msk.f32.mxu0 %vm7771_vm2, %v7769_v0 }
0x18aa   :  { %7151 = vmatprep.subr.bf16.mxu0 %v7770_v23 }
0x18b0   :  { %6756 = vmatmul.mubr.msk.f32.vlgmr.msra.gmra.mrb[34].mxu0 %vm338_vm3, %v2757_v32  ;;  %v1724_v32 = vadd.f32 %v6205_v40, %v8114_v3 }
0x18b1   :  { %6776 = vmatprep.mubr.msk.f32.mxu0 %vm7771_vm2, %v7769_v0 }
0x197b   :  { %v2751_v34 = vpop.f32.mrb[32].mxu0 }
0x197c   :  { %v2755_v43 = vadd.f32 %v2751_v34, %v2579_v26  ;;  %v6750_v45 = vpop.f32.mrb[33].mxu0  ;;  %v3108_v34 = vld [vmem:[#allocation2 + $0x30] sm:$0xff] }
0x1983   :  { %v2834_v59 = vpop.f32.mrb[34].mxu0 }
0x1984   :  { %v2838_v1 = vmul.f32 0.25, %v2834_v59  ;;  %v6757_v2 = vpop.f32.mrb[35].mxu0  ;;  %v3113_v59 = vld [vmem:[#allocation5 + $0x58] sm:$0xff] }
0x1986   :  { %v2839_v4 = vsel %vm338_vm3, %v2838_v1, -inf }
0x1987   :  { %2840 = vmax.xlane.f32.xlu1 %v2839_v4 }
0x1998   :  { %7420 = vrot.lane.b32.xlu1 %v7936_v57, %s7778_s13 }
0x199c   :  { %2930 = vrot.lane.b32.xlu1 %v7881_v30, %s7778_s13 }
0x1a14   :  { %v2841_v5 = vpop.xlane.xlu1 %2840 }
0x1a15   :  { %v2842_v6 = vsub.f32 %v2838_v1, %v2841_v5  ;;  %v3116_v1 = vld [vmem:[#allocation5 + $0x70] sm:$0xff] }
0x1a16   :  { %v7166_v2 = vpack.c.bf16 %v3116_v1, %v3113_v59 }
0x1a17   :  { %v2843_v7 = vmul.f32 1.442695, %v2842_v6 }
0x1a18   :  { %v7421_v13 = vpop.permute.xlu1 %7420 }
0x1a19   :  { %7615 = vpow2.f32 %v2843_v7  ;;  %v7423_v14 = vunpack.i.h.bf16 %v7421_v13  ;;  %v7422_v15 = vunpack.i.l.bf16 %v7421_v13 }
0x1a1b   :  { %v7148_v17 = vpack.c.bf16 %v7423_v14, %v7422_v15 }
0x1a1c   :  { %v2931_v37 = vpop.permute.xlu1 %2930 }
0x1a23   :  { %v7616_v8 = vpop.eup %7615 }
0x1a24   :  { %v2845_v58 = vsel %vm338_vm3, %v7616_v8, 0.0 }
0x1a25   :  { %2846 = vadd.xlane.f32.xlu0 %v2845_v58 }
0x1a3b   :  { %7415 = vrot.lane.b32.xlu0 %v7968_v28, %s7775_s10 }
0x1ab2   :  { %v2847_v9 = vpop.xlane.xlu0 %2846 }
0x1ab3   :  { %7617 = vrcp.f32 %v2847_v9 }
0x1ab6   :  { %v7416_v10 = vpop.permute.xlu0 %7415 }
0x1ab7   :  { %v7418_v11 = vunpack.i.h.bf16 %v7416_v10  ;;  %v7417_v12 = vunpack.i.l.bf16 %v7416_v10 }
0x1ab9   :  { %v7145_v57 = vpack.c.bf16 %v7418_v11, %v7417_v12 }
0x1abb   :  { %7146 = vmatpush3.bf16.msra.mxu1 %v7145_v57  ;;  %v3119_v57 = vld [vmem:[#allocation5 + $0x88] sm:$0xff] }
0x1abc   :  { %7147 = vmatprep.subr.bf16.mxu1 %v7770_v23 }
0x1abd   :  { %v7618_v30 = vpop.eup %7617 }
0x1abe   :  { %v2849_v16 = vmul.f32 %v7618_v30, %v7616_v8 }
0x1ac0   :  { %6763 = vmatmul.mubr.msk.f32.vlgmr.msra.gmra.mrb[36].mxu1 %vm338_vm3, %v2849_v16 }
0x1ac1   :  { %6769 = vmatprep.mubr.msk.f32.mxu1 %vm7771_vm2, %v7769_v0 }
0x1ac4   :  { %7150 = vmatpush3.bf16.xpose.msk.msra.mxu1 %vm7877_vm4, %v7148_v17 }
0x1ac5   :  { %7163 = vmatprep.subr.bf16.mxu1 %v7162_v50 }
0x1acb   :  { %6770 = vmatmul.mubr.msk.f32.vlgmr.msra.gmra.mrb[38].mxu1 %vm338_vm3, %v2931_v37 }
0x1acc   :  { %3267 = vmatprep.mubr.f32.mxu1 %v7769_v0  ;;  %7165 = vmatpush1.bf16.msra.mxu1 %v7164_v52 }
0x1b93   :  { %v2925_v38 = vpop.f32.mrb[36].mxu1 }
0x1b94   :  { %v8210_v39 = vadd.f32 %v2925_v38, %v2755_v43  ;;  %v6764_v18 = vpop.f32.mrb[37].mxu1  ;;  %v3109_v43 = vld [vmem:[#allocation2 + $0x38] sm:$0xff] }
0x1b95   :  { %v7158_v45 = vpack.c.bf16 %v3109_v43, %v3108_v34 }
0x1b9e   :  { %v3008_v19 = vpop.f32.mrb[38].mxu1 }
0x1b9f   :  { %v3012_v20 = vmul.f32 0.25, %v3008_v19  ;;  %v6771_v21 = vpop.f32.mrb[39].mxu1 }
0x1ba1   :  { %v3013_v22 = vsel %vm338_vm3, %v3012_v20, -inf }
0x1ba2   :  { %3014 = vmax.xlane.f32.xlu0 %v3013_v22 }
0x1bb8   :  { %7425 = vrot.lane.b32.xlu0 %v7968_v28, %s7776_s11  ;;  %v3118_v28 = vld [vmem:[#allocation5 + $0x80] sm:$0xff] }
0x1bb9   :  { %3207 = vmatprep.subr.mxu1 %v3118_v28 }
0x1bba   :  { %3208 = vmatpush1.msra.mxu1 %v3117_v56 }
0x1bbb   :  { %6241 = vmatmul.mubr.msk.f32.vlgmr.msra.gmra.mrb[40].mxu1 %vm151_vm1, %v7687_v60  ;;  %7174 = vmatprep.subr.bf16.mxu1 %v7770_v23 }
0x1bbc   :  { %3273 = vmatprep.mubr.f32.mxu1 %v7769_v0 }
0x1bbf   :  { %6242 = vmatmul.mubr.msk.f32.gmra.mrb[42].mxu1 %vm151_vm1, %v7688_v27 }
0x1bc0   :  { %3279 = vmatprep.mubr.f32.mxu1 %v7769_v0 }
0x1bc3   :  { %6243 = vmatmul.mubr.msk.f32.gmra.mrb[44].mxu1 %vm151_vm1, %v7689_v61 }
0x1bc4   :  { %3285 = vmatprep.mubr.f32.mxu1 %v7769_v0 }
0x1bc7   :  { %6244 = vmatmul.mubr.msk.f32.gmra.mrb[46].mxu1 %vm151_vm1, %v7690_v62 }
0x1bc8   :  { %6813 = vmatprep.mubr.msk.f32.mxu1 %vm7771_vm2, %v7769_v0 }
0x1c2f   :  { %v3015_v44 = vpop.xlane.xlu0 %3014 }
0x1c30   :  { %v3016_v46 = vsub.f32 %v3012_v20, %v3015_v44 }
0x1c32   :  { %v3017_v47 = vmul.f32 1.442695, %v3016_v46 }
0x1c33   :  { %v7426_v24 = vpop.permute.xlu0 %7425 }
0x1c34   :  { %7619 = vpow2.f32 %v3017_v47  ;;  %v7428_v25 = vunpack.i.h.bf16 %v7426_v24  ;;  %v7427_v26 = vunpack.i.l.bf16 %v7426_v24 }
0x1c36   :  { %v7152_v31 = vpack.c.bf16 %v7428_v25, %v7427_v26 }
0x1c38   :  { %7153 = vmatpush3.bf16.msra.mxu0 %v7152_v31 }
0x1c39   :  { %7155 = vmatprep.subr.bf16.mxu0 %v7154_v55 }
0x1c3e   :  { %v7620_v33 = vpop.eup %7619 }
0x1c3f   :  { %v3019_v35 = vsel %vm338_vm3, %v7620_v33, 0.0 }
0x1c40   :  { %3020 = vadd.xlane.f32.xlu1 %v3019_v35 }
0x1c8e   :  { %v3269_v4 = vpop.f32.mrb[40].mxu1 }
0x1c8f   :  { %v3271_v5 = vpop.f32.mrb[41].mxu1 }
0x1c92   :  { %v3275_v6 = vpop.f32.mrb[42].mxu1 }
0x1c93   :  { %v3277_v7 = vpop.f32.mrb[43].mxu1  ;;  %v8244_v8 = vpack.i.bf16 %v3275_v6, %v3269_v4  ;;  %v7171_v3 = vpack.c.bf16 %v3275_v6, %v3269_v4 }
0x1c94   :  { %v7182_v58 = vpack.c.bf16 %v3277_v7, %v3271_v5  ;;  %v8260_v13 = vpack.i.bf16 %v3277_v7, %v3271_v5 }
0x1c95   :  { %7430 = vrot.lane.b32.xlu1 %v8244_v8, %s7772_s7 }
0x1c96   :  { %v8295_v46 = vpop.f32.mrb[44].mxu1 }
0x1c97   :  { %v8297_v47 = vpop.f32.mrb[45].mxu1 }
0x1c9a   :  { %v8299_v24 = vpop.f32.mrb[46].mxu1 }
0x1c9b   :  { %v8301_v25 = vpop.f32.mrb[47].mxu1  ;;  %v8315_v35 = vpack.i.bf16 %v8299_v24, %v8295_v46  ;;  %v7227_v48 = vpack.c.bf16 %v8299_v24, %v8295_v46 }
0x1c9c   :  { %v8305_v26 = vpack.i.bf16 %v8301_v25, %v8297_v47  ;;  %v7238_v31 = vpack.c.bf16 %v8301_v25, %v8297_v47 }
0x1ccd   :  { %v3021_v63 = vpop.xlane.xlu1 %3020 }
0x1cce   :  { %7621 = vrcp.f32 %v3021_v63 }
0x1cd8   :  { %v7622_v41 = vpop.eup %7621 }
0x1cd9   :  { %v3023_v42 = vmul.f32 %v7622_v41, %v7620_v33 }
0x1cdb   :  { %6777 = vmatmul.mubr.msk.f32.vlgmr.msra.gmra.mrb[36].mxu0 %vm338_vm3, %v3023_v42 }
0x1cdc   :  { %6787 = vmatprep.mubr.msk.f32.mxu0 %vm69_vm0, %v1724_v32  ;;  %7157 = vmatpush3.bf16.msra.mxu0 %v7154_v55 }
0x1cdd   :  { %7159 = vmatprep.subr.bf16.mxu0 %v7158_v45 }
0x1ce0   :  { %7161 = vmatpush3.bf16.msra.mxu0 %v7158_v45 }
0x1ce1   :  { %7167 = vmatprep.subr.bf16.mxu0 %v7166_v2 }
0x1d07   :  { %v7431_v30 = vpop.permute.xlu1 %7430 }
0x1d08   :  { %v7433_v14 = vunpack.i.h.bf16 %v7431_v30  ;;  %v7432_v15 = vunpack.i.l.bf16 %v7431_v30 }
0x1d0a   :  { %v7175_v16 = vpack.c.bf16 %v7433_v14, %v7432_v15 }
0x1d0c   :  { %7177 = vmatpush3.bf16.xpose.msk.msra.mxu1 %vm7877_vm4, %v7175_v16 }
0x1d0d   :  { %7181 = vmatprep.subr.bf16.mxu1 %v7770_v23 }
0x1dae   :  { %v3099_v9 = vpop.f32.mrb[36].mxu0 }
0x1daf   :  { %v3103_v10 = vadd.f32 %v3099_v9, %v8210_v39  ;;  %v6778_v11 = vpop.f32.mrb[37].mxu0 }
0x1db1   :  { %v3104_v12 = vadd.f32 %v6205_v40, %v3103_v10 }
0x1db3   :  { %6788 = vmatmul.mubr.msk.f32.vlgmr.msra.gmra.mrb[38].mxu0 %vm69_vm0, %v3104_v12 }
0x1db4   :  { %7169 = vmatpush3.bf16.msra.mxu0 %v7166_v2  ;;  %6796 = vmatprep.mubr.msk.f32.mxu0 %vm151_vm1, %v7687_v60 }
0x1db5   :  { %6794 = vmatprep.subr.mxu0 %v3119_v57 }
0x1db8   :  { %6795 = vmatpush3.msra.mxu0 %v3119_v57 }
0x1db9   :  { %7170 = vmatprep.subr.bf16.mxu0 %v7770_v23  ;;  %6797 = vmatmul.mubr.msk.f32.vlgmr.msra.gmra.mrb[40].mxu0 %vm151_vm1, %v7688_v27 }
0x1dba   :  { %6799 = vmatprep.mubr.msk.f32.mxu0 %vm151_vm1, %v7689_v61 }
0x1dbd   :  { %6800 = vmatmul.mubr.msk.f32.gmra.mrb[42].mxu0 %vm151_vm1, %v7690_v62 }
0x1dbe   :  { %6806 = vmatprep.mubr.msk.f32.mxu0 %vm7771_vm2, %v7769_v0 }
0x1dbf   :  { %7173 = vmatpush3.bf16.xpose.msk.msra.mxu0 %vm7877_vm4, %v7171_v3 }
0x1dc0   :  { %7178 = vmatprep.subr.bf16.mxu0 %v7770_v23 }
0x1e86   :  { %v8265_v17 = vpop.f32.mrb[38].mxu0 }
0x1e87   :  { %v8267_v37 = vpop.f32.mrb[39].mxu0 }
0x1e88   :  { %3468 = vrot.lane.b32.xlu0 %v8267_v37, %s7772_s7  ;;  %6807 = vmatmul.mubr.msk.f32.vlgmr.msra.gmra.mrb[44].mxu0 %vm338_vm3, %v8267_v37 }
0x1e89   :  { %6820 = vmatprep.mubr.msk.f32.mxu0 %vm7771_vm2, %v7769_v0 }
0x1e8c   :  { %v8275_v38 = vpop.f32.mrb[40].mxu0 }
0x1e8d   :  { %v8277_v39 = vpop.f32.mrb[41].mxu0 }
0x1e8e   :  { %v8281_v18 = vpack.i.bf16 %v8275_v38, %v8277_v39  ;;  %v7203_v19 = vpack.c.bf16 %v8275_v38, %v8277_v39 }
0x1e90   :  { %v8285_v20 = vpop.f32.mrb[42].mxu0 }
0x1e91   :  { %v8287_v21 = vpop.f32.mrb[43].mxu0 }
0x1e92   :  { %v8291_v22 = vpack.i.bf16 %v8285_v20, %v8287_v21  ;;  %v7259_v44 = vpack.c.bf16 %v8285_v20, %v8287_v21 }
0x1efa   :  { %v3469_v33 = vpop.permute.xlu0 %3468 }
0x1efb   :  { %6814 = vmatmul.mubr.msk.f32.vlgmr.msra.gmra.mrb[48].mxu1 %vm338_vm3, %v3469_v33 }
0x1efc   :  { %7183 = vmatpush3.bf16.msra.mxu1 %v7182_v58  ;;  %6827 = vmatprep.mubr.msk.f32.mxu1 %vm7771_vm2, %v7769_v0 }
0x1efd   :  { %7188 = vmatprep.subr.bf16.mxu1 %v7770_v23 }
0x1f5b   :  { %v3452_v36 = vpop.f32.mrb[44].mxu0 }
0x1f5c   :  { %v6808_v49 = vpop.f32.mrb[45].mxu0  ;;  %v3456_v27 = vmul.f32 0.25, %v3452_v36 }
0x1f5e   :  { %v3457_v61 = vsel %vm338_vm3, %v3456_v27, -inf }
0x1fce   :  { %v3546_v50 = vpop.f32.mrb[48].mxu1 }
0x1fcf   :  { %v3550_v51 = vmul.f32 0.25, %v3546_v50  ;;  %v6815_v52 = vpop.f32.mrb[49].mxu1 }
0x1fd1   :  { %v3551_v28 = vsel %vm338_vm3, %v3550_v51, -inf }
0x1fd2   :  { %3552 = vmax.xlane.f32.xlu1 %v3551_v28 }
0x1fe3   :  { %7440 = vrot.lane.b32.xlu1 %v8244_v8, %s7773_s8 }
0x1fe7   :  { %3716 = vrot.lane.b32.xlu1 %v8267_v37, %s7773_s8 }
0x205f   :  { %v3553_v53 = vpop.xlane.xlu1 %3552 }
0x2060   :  { %v3554_v54 = vsub.f32 %v3550_v51, %v3553_v53 }
0x2062   :  { %v3555_v55 = vmul.f32 1.442695, %v3554_v54 }
0x2063   :  { %v7441_v32 = vpop.permute.xlu1 %7440 }
0x2064   :  { %7623 = vpow2.f32 %v3555_v55  ;;  %v7443_v43 = vunpack.i.h.bf16 %v7441_v32  ;;  %v7442_v45 = vunpack.i.l.bf16 %v7441_v32 }
0x2066   :  { %v7185_v1 = vpack.c.bf16 %v7443_v43, %v7442_v45 }
0x2067   :  { %v3717_v2 = vpop.permute.xlu1 %3716 }
0x206e   :  { %v7624_v56 = vpop.eup %7623 }
0x206f   :  { %v3557_v60 = vsel %vm338_vm3, %v7624_v56, 0.0 }
0x2070   :  { %3558 = vadd.xlane.f32.xlu0 %v3557_v60 }
0x2086   :  { %7435 = vrot.lane.b32.xlu0 %v8260_v13, %s7773_s8 }
0x20a5   :  { %3458 = vmax.xlane.f32.xlu0 %v3457_v61 }
0x20fd   :  { %v3559_v62 = vpop.xlane.xlu0 %3558 }
0x20fe   :  { %7625 = vrcp.f32 %v3559_v62 }
0x2101   :  { %v7436_v63 = vpop.permute.xlu0 %7435 }
0x2102   :  { %v7438_v40 = vunpack.i.h.bf16 %v7436_v63  ;;  %v7437_v41 = vunpack.i.l.bf16 %v7436_v63 }
0x2104   :  { %v7179_v42 = vpack.c.bf16 %v7438_v40, %v7437_v41 }
0x2106   :  { %7180 = vmatpush3.bf16.msra.mxu0 %v7179_v42 }
0x2107   :  { %7184 = vmatprep.subr.bf16.mxu0 %v7770_v23 }
0x2108   :  { %v7626_v34 = vpop.eup %7625 }
0x2109   :  { %v3561_v59 = vmul.f32 %v7626_v34, %v7624_v56 }
0x210b   :  { %6821 = vmatmul.mubr.msk.f32.vlgmr.msra.gmra.mrb[46].mxu0 %vm338_vm3, %v3561_v59 }
0x210c   :  { %6834 = vmatprep.mubr.msk.f32.mxu0 %vm7771_vm2, %v7769_v0 }
0x210f   :  { %7187 = vmatpush3.bf16.xpose.msk.msra.mxu0 %vm7877_vm4, %v7185_v1 }
0x2110   :  { %7195 = vmatprep.subr.bf16.mxu0 %v7770_v23 }
0x2116   :  { %6835 = vmatmul.mubr.msk.f32.vlgmr.msra.gmra.mrb[48].mxu0 %vm338_vm3, %v3717_v2 }
0x2117   :  { %6855 = vmatprep.mubr.msk.f32.mxu0 %vm7771_vm2, %v7769_v0 }
0x2132   :  { %v3459_v4 = vpop.xlane.xlu0 %3458 }
0x2133   :  { %v3460_v5 = vsub.f32 %v3456_v27, %v3459_v4 }
0x2135   :  { %v3461_v6 = vmul.f32 1.442695, %v3460_v5 }
0x2137   :  { %7627 = vpow2.f32 %v3461_v6 }
0x2141   :  { %v7628_v7 = vpop.eup %7627 }
0x2142   :  { %v3463_v3 = vsel %vm338_vm3, %v7628_v7, 0.0 }
0x2143   :  { %3464 = vadd.xlane.f32.xlu0 %v3463_v3 }
0x21d0   :  { %v3465_v58 = vpop.xlane.xlu0 %3464 }
0x21d1   :  { %7629 = vrcp.f32 %v3465_v58 }
0x21db   :  { %v7630_v9 = vpop.eup %7629 }
0x21dc   :  { %v3467_v10 = vmul.f32 %v7630_v9, %v7628_v7 }
0x21de   :  { %v3639_v11 = vpop.f32.mrb[46].mxu0  ;;  %6828 = vmatmul.mubr.msk.f32.vlgmr.msra.gmra.mrb[50].mxu1 %vm338_vm3, %v3467_v10 }
0x21df   :  { %v6822_v12 = vpop.f32.mrb[47].mxu0  ;;  %6841 = vmatprep.mubr.msk.f32.mxu1 %vm7771_vm2, %v7769_v0 }
0x21e9   :  { %v3794_v57 = vpop.f32.mrb[48].mxu0 }
0x21ea   :  { %v3798_v30 = vmul.f32 0.25, %v3794_v57  ;;  %v6836_v14 = vpop.f32.mrb[49].mxu0 }
0x21ec   :  { %v3799_v15 = vsel %vm338_vm3, %v3798_v30, -inf }
0x21ed   :  { %3800 = vmax.xlane.f32.xlu1 %v3799_v15 }
0x21fe   :  { %7445 = vrot.lane.b32.xlu1 %v8260_v13, %s7775_s10 }
0x2202   :  { %3890 = vrot.lane.b32.xlu1 %v8267_v37, %s7774_s9 }
0x227a   :  { %v3801_v16 = vpop.xlane.xlu1 %3800 }
0x227b   :  { %v3802_v33 = vsub.f32 %v3798_v30, %v3801_v16 }
0x227d   :  { %v3803_v36 = vmul.f32 1.442695, %v3802_v33 }
0x227e   :  { %v7446_v49 = vpop.permute.xlu1 %7445 }
0x227f   :  { %7631 = vpow2.f32 %v3803_v36  ;;  %v7448_v50 = vunpack.i.h.bf16 %v7446_v49  ;;  %v7447_v51 = vunpack.i.l.bf16 %v7446_v49 }
0x2281   :  { %v7189_v52 = vpack.c.bf16 %v7448_v50, %v7447_v51 }
0x2282   :  { %v3891_v42 = vpop.permute.xlu1 %3890 }
0x2283   :  { %7190 = vmatpush3.bf16.msra.mxu1 %v7189_v52 }
0x2284   :  { %7191 = vmatprep.subr.bf16.mxu1 %v7770_v23 }
0x2289   :  { %v7632_v28 = vpop.eup %7631 }
0x228a   :  { %v3805_v53 = vsel %vm338_vm3, %v7632_v28, 0.0 }
0x228b   :  { %3806 = vadd.xlane.f32.xlu0 %v3805_v53 }
0x22a1   :  { %7450 = vrot.lane.b32.xlu0 %v8244_v8, %s7774_s9 }
0x22b1   :  { %v3712_v54 = vpop.f32.mrb[50].mxu1 }
0x22b2   :  { %v3713_v55 = vadd.f32 %v3712_v54, %v3639_v11  ;;  %v6829_v56 = vpop.f32.mrb[51].mxu1 }
0x2318   :  { %v3807_v60 = vpop.xlane.xlu0 %3806 }
0x2319   :  { %7633 = vrcp.f32 %v3807_v60 }
0x231c   :  { %v7451_v27 = vpop.permute.xlu0 %7450 }
0x231d   :  { %v7453_v61 = vunpack.i.h.bf16 %v7451_v27  ;;  %v7452_v62 = vunpack.i.l.bf16 %v7451_v27 }
0x231f   :  { %v7192_v41 = vpack.c.bf16 %v7453_v61, %v7452_v62 }
0x2323   :  { %v7634_v63 = vpop.eup %7633 }
0x2324   :  { %v3809_v40 = vmul.f32 %v7634_v63, %v7632_v28 }
0x2326   :  { %6842 = vmatmul.mubr.msk.f32.vlgmr.msra.gmra.mrb[52].mxu1 %vm338_vm3, %v3809_v40 }
0x2327   :  { %7194 = vmatpush3.bf16.xpose.msk.msra.mxu1 %vm7877_vm4, %v7192_v41  ;;  %6848 = vmatprep.mubr.msk.f32.mxu1 %vm7771_vm2, %v7769_v0 }
0x2328   :  { %7202 = vmatprep.subr.bf16.mxu1 %v7770_v23 }
0x232e   :  { %6849 = vmatmul.mubr.msk.f32.vlgmr.msra.gmra.mrb[54].mxu1 %vm338_vm3, %v3891_v42 }
0x232f   :  { %7204 = vmatpush3.bf16.msra.mxu1 %v7203_v19  ;;  %6869 = vmatprep.mubr.msk.f32.mxu1 %vm7771_vm2, %v7769_v0 }
0x2330   :  { %7205 = vmatprep.subr.bf16.mxu1 %v7770_v23 }
0x23f9   :  { %v3885_v32 = vpop.f32.mrb[52].mxu1 }
0x23fa   :  { %v3889_v34 = vadd.f32 %v3885_v32, %v3713_v55  ;;  %v6843_v43 = vpop.f32.mrb[53].mxu1 }
0x2401   :  { %v3968_v45 = vpop.f32.mrb[54].mxu1 }
0x2402   :  { %v3972_v59 = vmul.f32 0.25, %v3968_v45  ;;  %v6850_v1 = vpop.f32.mrb[55].mxu1 }
0x2404   :  { %v3973_v2 = vsel %vm338_vm3, %v3972_v59, -inf }
0x2405   :  { %3974 = vmax.xlane.f32.xlu1 %v3973_v2 }
0x2416   :  { %7460 = vrot.lane.b32.xlu1 %v8244_v8, %s7775_s10 }
0x241a   :  { %4064 = vrot.lane.b32.xlu1 %v8267_v37, %s7775_s10 }
0x2492   :  { %v3975_v38 = vpop.xlane.xlu1 %3974 }
0x2493   :  { %v3976_v39 = vsub.f32 %v3972_v59, %v3975_v38 }
0x2495   :  { %v3977_v19 = vmul.f32 1.442695, %v3976_v39 }
0x2496   :  { %v7461_v10 = vpop.permute.xlu1 %7460 }
0x2497   :  { %7635 = vpow2.f32 %v3977_v19  ;;  %v7463_v12 = vunpack.i.h.bf16 %v7461_v10  ;;  %v7462_v57 = vunpack.i.l.bf16 %v7461_v10 }
0x249a   :  { %v4065_v14 = vpop.permute.xlu1 %4064 }
0x24a1   :  { %v7636_v4 = vpop.eup %7635 }
0x24a2   :  { %v3979_v5 = vsel %vm338_vm3, %v7636_v4, 0.0 }
0x24a3   :  { %3980 = vadd.xlane.f32.xlu0 %v3979_v5 }
0x24b9   :  { %7455 = vrot.lane.b32.xlu0 %v8260_v13, %s7776_s11  ;;  %v7199_v13 = vpack.c.bf16 %v7463_v12, %v7462_v57 }
0x2530   :  { %v3981_v6 = vpop.xlane.xlu0 %3980 }
0x2531   :  { %7637 = vrcp.f32 %v3981_v6 }
0x2534   :  { %v7456_v7 = vpop.permute.xlu0 %7455 }
0x2535   :  { %v7458_v3 = vunpack.i.h.bf16 %v7456_v7  ;;  %v7457_v58 = vunpack.i.l.bf16 %v7456_v7 }
0x2537   :  { %v7196_v9 = vpack.c.bf16 %v7458_v3, %v7457_v58 }
0x2539   :  { %7197 = vmatpush3.bf16.msra.mxu0 %v7196_v9 }
0x253a   :  { %7198 = vmatprep.subr.bf16.mxu0 %v7770_v23 }
0x253b   :  { %v7638_v11 = vpop.eup %7637 }
0x253c   :  { %v3983_v30 = vmul.f32 %v7638_v11, %v7636_v4 }
0x253e   :  { %6856 = vmatmul.mubr.msk.f32.vlgmr.msra.gmra.mrb[50].mxu0 %vm338_vm3, %v3983_v30 }
0x253f   :  { %6862 = vmatprep.mubr.msk.f32.mxu0 %vm7771_vm2, %v7769_v0 }
0x2542   :  { %7201 = vmatpush3.bf16.xpose.msk.msra.mxu0 %vm7877_vm4, %v7199_v13 }
0x2543   :  { %7209 = vmatprep.subr.bf16.mxu0 %v7770_v23 }
0x2549   :  { %6863 = vmatmul.mubr.msk.f32.vlgmr.msra.gmra.mrb[52].mxu0 %vm338_vm3, %v4065_v14 }
0x254a   :  { %6883 = vmatprep.mubr.msk.f32.mxu0 %vm7771_vm2, %v7769_v0 }
0x2611   :  { %v4059_v15 = vpop.f32.mrb[50].mxu0 }
0x2612   :  { %v4063_v16 = vadd.f32 %v4059_v15, %v3889_v34  ;;  %v6857_v33 = vpop.f32.mrb[51].mxu0 }
0x261c   :  { %v4142_v36 = vpop.f32.mrb[52].mxu0 }
0x261d   :  { %v4146_v49 = vmul.f32 0.25, %v4142_v36  ;;  %v6864_v50 = vpop.f32.mrb[53].mxu0 }
0x261f   :  { %v4147_v51 = vsel %vm338_vm3, %v4146_v49, -inf }
0x2620   :  { %4148 = vmax.xlane.f32.xlu0 %v4147_v51 }
0x2636   :  { %7465 = vrot.lane.b32.xlu0 %v8244_v8, %s7777_s12 }
0x26ad   :  { %v4149_v52 = vpop.xlane.xlu0 %4148 }
0x26ae   :  { %v4150_v28 = vsub.f32 %v4146_v49, %v4149_v52 }
0x26b0   :  { %v4151_v53 = vmul.f32 1.442695, %v4150_v28 }
0x26b1   :  { %v7466_v60 = vpop.permute.xlu0 %7465 }
0x26b2   :  { %7639 = vpow2.f32 %v4151_v53  ;;  %v7468_v27 = vunpack.i.h.bf16 %v7466_v60  ;;  %v7467_v61 = vunpack.i.l.bf16 %v7466_v60 }
0x26b4   :  { %v7206_v40 = vpack.c.bf16 %v7468_v27, %v7467_v61 }
0x26bc   :  { %v7640_v54 = vpop.eup %7639 }
0x26bd   :  { %v4153_v55 = vsel %vm338_vm3, %v7640_v54, 0.0 }
0x26be   :  { %4154 = vadd.xlane.f32.xlu1 %v4153_v55 }
0x26cf   :  { %4232 = vrot.lane.b32.xlu1 %v8267_v37, %s7777_s12 }
0x274b   :  { %v4155_v56 = vpop.xlane.xlu1 %4154 }
0x274c   :  { %7641 = vrcp.f32 %v4155_v56 }
0x274f   :  { %v4233_v41 = vpop.permute.xlu1 %4232 }
0x2756   :  { %v7642_v62 = vpop.eup %7641 }
0x2757   :  { %v4157_v63 = vmul.f32 %v7642_v62, %v7640_v54 }
0x2759   :  { %6870 = vmatmul.mubr.msk.f32.vlgmr.msra.gmra.mrb[56].mxu1 %vm338_vm3, %v4157_v63 }
0x275a   :  { %7208 = vmatpush3.bf16.xpose.msk.msra.mxu1 %vm7877_vm4, %v7206_v40  ;;  %6876 = vmatprep.mubr.msk.f32.mxu1 %vm7771_vm2, %v7769_v0 }
0x275b   :  { %7216 = vmatprep.subr.bf16.mxu1 %v7770_v23 }
0x2761   :  { %6877 = vmatmul.mubr.msk.f32.vlgmr.msra.gmra.mrb[58].mxu1 %vm338_vm3, %v4233_v41 }
0x2762   :  { %6897 = vmatprep.mubr.msk.f32.mxu1 %vm7771_vm2, %v7769_v0 }
0x282c   :  { %v4227_v42 = vpop.f32.mrb[56].mxu1 }
0x282d   :  { %v4231_v32 = vadd.f32 %v4227_v42, %v4063_v16  ;;  %v6871_v34 = vpop.f32.mrb[57].mxu1 }
0x2834   :  { %v4310_v43 = vpop.f32.mrb[58].mxu1 }
0x2835   :  { %v4314_v45 = vmul.f32 0.25, %v4310_v43  ;;  %v6878_v59 = vpop.f32.mrb[59].mxu1 }
0x2837   :  { %v4315_v1 = vsel %vm338_vm3, %v4314_v45, -inf }
0x2838   :  { %4316 = vmax.xlane.f32.xlu0 %v4315_v1 }
0x284e   :  { %7470 = vrot.lane.b32.xlu0 %v8281_v18, %s7773_s8 }
0x2852   :  { %4408 = vrot.lane.b32.xlu0 %v8267_v37, %s7776_s11 }
0x28c5   :  { %v4317_v2 = vpop.xlane.xlu0 %4316 }
0x28c6   :  { %v4318_v38 = vsub.f32 %v4314_v45, %v4317_v2 }
0x28c8   :  { %v4319_v39 = vmul.f32 1.442695, %v4318_v38 }
0x28c9   :  { %v7471_v19 = vpop.permute.xlu0 %7470 }
0x28ca   :  { %7643 = vpow2.f32 %v4319_v39  ;;  %v7473_v4 = vunpack.i.h.bf16 %v7471_v19  ;;  %v7472_v5 = vunpack.i.l.bf16 %v7471_v19 }
0x28cc   :  { %v7210_v6 = vpack.c.bf16 %v7473_v4, %v7472_v5 }
0x28cd   :  { %v4409_v13 = vpop.permute.xlu0 %4408 }
0x28ce   :  { %7211 = vmatpush3.bf16.msra.mxu0 %v7210_v6 }
0x28cf   :  { %7212 = vmatprep.subr.bf16.mxu0 %v7770_v23 }
0x28d4   :  { %v7644_v7 = vpop.eup %7643 }
0x28d5   :  { %v4321_v3 = vsel %vm338_vm3, %v7644_v7, 0.0 }
0x28d6   :  { %4322 = vadd.xlane.f32.xlu1 %v4321_v3 }
0x28e7   :  { %7475 = vrot.lane.b32.xlu1 %v8244_v8, %s7776_s11 }
0x2963   :  { %v4323_v58 = vpop.xlane.xlu1 %4322 }
0x2964   :  { %7645 = vrcp.f32 %v4323_v58 }
0x2967   :  { %v7476_v9 = vpop.permute.xlu1 %7475 }
0x2968   :  { %v7478_v10 = vunpack.i.h.bf16 %v7476_v9  ;;  %v7477_v11 = vunpack.i.l.bf16 %v7476_v9 }
0x296a   :  { %v7213_v30 = vpack.c.bf16 %v7478_v10, %v7477_v11 }
0x296e   :  { %v7646_v12 = vpop.eup %7645 }
0x296f   :  { %v4325_v57 = vmul.f32 %v7646_v12, %v7644_v7 }
0x2971   :  { %6884 = vmatmul.mubr.msk.f32.vlgmr.msra.gmra.mrb[54].mxu0 %vm338_vm3, %v4325_v57 }
0x2972   :  { %7215 = vmatpush3.bf16.xpose.msk.msra.mxu0 %vm7877_vm4, %v7213_v30  ;;  %6890 = vmatprep.mubr.msk.f32.mxu0 %vm7771_vm2, %v7769_v0 }
0x2973   :  { %7223 = vmatprep.subr.bf16.mxu0 %v7770_v23 }
0x2979   :  { %6891 = vmatmul.mubr.msk.f32.vlgmr.msra.gmra.mrb[56].mxu0 %vm338_vm3, %v4409_v13 }
0x297a   :  { %6911 = vmatprep.mubr.msk.f32.mxu0 %vm7771_vm2, %v7769_v0 }
0x2a44   :  { %v4403_v14 = vpop.f32.mrb[54].mxu0 }
0x2a45   :  { %v4407_v15 = vadd.f32 %v4403_v14, %v4231_v32  ;;  %v6885_v16 = vpop.f32.mrb[55].mxu0 }
0x2a4c   :  { %v4486_v33 = vpop.f32.mrb[56].mxu0 }
0x2a4d   :  { %v4490_v36 = vmul.f32 0.25, %v4486_v33  ;;  %v6892_v49 = vpop.f32.mrb[57].mxu0 }
0x2a4f   :  { %v4491_v50 = vsel %vm338_vm3, %v4490_v36, -inf }
0x2a50   :  { %4492 = vmax.xlane.f32.xlu1 %v4491_v50 }
0x2a61   :  { %7485 = vrot.lane.b32.xlu1 %v8244_v8, %s7778_s13 }
0x2a65   :  { %4582 = vrot.lane.b32.xlu1 %v8267_v37, %s7778_s13 }
0x2a69   :  { %4854 = vrot.lane.b32.xlu1 %v8265_v17, %s7772_s7 }
0x2add   :  { %v4493_v51 = vpop.xlane.xlu1 %4492 }
0x2ade   :  { %v4494_v52 = vsub.f32 %v4490_v36, %v4493_v51 }
0x2ae0   :  { %v4495_v28 = vmul.f32 1.442695, %v4494_v52 }
0x2ae1   :  { %v7486_v27 = vpop.permute.xlu1 %7485 }
0x2ae2   :  { %7647 = vpow2.f32 %v4495_v28  ;;  %v7488_v62 = vunpack.i.h.bf16 %v7486_v27  ;;  %v7487_v63 = vunpack.i.l.bf16 %v7486_v27 }
0x2ae4   :  { %v7220_v41 = vpack.c.bf16 %v7488_v62, %v7487_v63 }
0x2ae5   :  { %v4583_v43 = vpop.permute.xlu1 %4582 }
0x2ae9   :  { %v4855_v59 = vpop.permute.xlu1 %4854 }
0x2aec   :  { %v7648_v53 = vpop.eup %7647 }
0x2aed   :  { %v4497_v54 = vsel %vm338_vm3, %v7648_v53, 0.0 }
0x2aee   :  { %4498 = vadd.xlane.f32.xlu0 %v4497_v54 }
0x2b04   :  { %7480 = vrot.lane.b32.xlu0 %v8281_v18, %s7775_s10 }
0x2b08   :  { %7490 = vrot.lane.b32.xlu0 %v8315_v35, %s7772_s7 }
0x2b7b   :  { %v4499_v8 = vpop.xlane.xlu0 %4498 }
0x2b7c   :  { %7649 = vrcp.f32 %v4499_v8 }
0x2b7f   :  { %v7481_v37 = vpop.permute.xlu0 %7480 }
0x2b80   :  { %v7483_v55 = vunpack.i.h.bf16 %v7481_v37  ;;  %v7482_v56 = vunpack.i.l.bf16 %v7481_v37 }
0x2b82   :  { %v7217_v60 = vpack.c.bf16 %v7483_v55, %v7482_v56  ;;  %v8488_v56 = vld [vmem:[%s8612_s4 + $0x1] ss:$0 sm:$0xff]  ;;  %s7779_s4 = smov [#allocation7]  }
0x2b83   :  { %v7491_v42 = vpop.permute.xlu0 %7490  ;;  %s6150_s23 = sshll.u32 %s7779_s4, 4  ;;  %s6151_s23 = int_to_ptr.vmem [resolvable:$true] %s6150_s23 }
0x2b84   :  { %7218 = vmatpush3.bf16.msra.mxu1 %v7217_v60  ;;  %v7493_v32 = vunpack.i.h.bf16 %v7491_v42  ;;  %v7492_v34 = vunpack.i.l.bf16 %v7491_v42  ;;  %s7735_s24 = scalar_lea.vmem %s6151_s23, 256  ;;  %p7740_p3 = scmp.lt.s32.totalorder %s6151_s23, %s6151_s23 }
0x2b85   :  { %7219 = vmatprep.subr.bf16.mxu1 %v7770_v23  ;;  %p7736_p2 = scmp.ne.s32.totalorder %s6151_s23, %s7735_s24  ;;  %p7741_p4 = scmp.lt.s32.totalorder %s7735_s24, %s7735_s24 }
0x2b86   :  { %v7650_v61 = vpop.eup %7649  ;;  %v7231_v45 = vpack.c.bf16 %v7493_v32, %v7492_v34 }
0x2b87   :  { %v4501_v40 = vmul.f32 %v7650_v61, %v7648_v53  ;;  %p7742_p5 = por %p7741_p4, %p7740_p3 }
0x2b89   :  { %6898 = vmatmul.mubr.msk.f32.vlgmr.msra.gmra.mrb[60].mxu1 %vm338_vm3, %v4501_v40  ;;  %p7743_p6 = pnand %p7742_p5, %p7736_p2 }
0x2b8a   :  { %6904 = vmatprep.mubr.msk.f32.mxu1 %vm7771_vm2, %v7769_v0 }
0x2b8d   :  { %7222 = vmatpush3.bf16.xpose.msk.msra.mxu1 %vm7877_vm4, %v7220_v41 }
0x2b8e   :  { %7230 = vmatprep.subr.bf16.mxu1 %v7770_v23 }
0x2b94   :  { %6905 = vmatmul.mubr.msk.f32.vlgmr.msra.gmra.mrb[62].mxu1 %vm338_vm3, %v4583_v43 }
0x2b95   :  { %7233 = vmatpush3.bf16.xpose.msk.msra.mxu1 %vm7877_vm4, %v7231_v45  ;;  %6925 = vmatprep.mubr.msk.f32.mxu1 %vm7771_vm2, %v7769_v0 }
0x2b96   :  { %7237 = vmatprep.subr.bf16.mxu1 %v7770_v23 }
0x2b9c   :  { %6926 = vmatmul.mubr.msk.f32.vlgmr.msra.gmra.mrb[64].mxu1 %vm338_vm3, %v4855_v59 }
0x2b9d   :  { %7239 = vmatpush3.bf16.msra.mxu1 %v7238_v31  ;;  %6939 = vmatprep.mubr.msk.f32.mxu1 %vm7771_vm2, %v7769_v0 }
0x2b9e   :  { %7244 = vmatprep.subr.bf16.mxu1 %v7770_v23 }
0x2c5c   :  { %v4577_v1 = vpop.f32.mrb[60].mxu1 }
0x2c5d   :  { %v8447_v2 = vadd.f32 %v4577_v1, %v4407_v15  ;;  %v6899_v38 = vpop.f32.mrb[61].mxu1 }
0x2c67   :  { %v4660_v39 = vpop.f32.mrb[62].mxu1 }
0x2c68   :  { %v4664_v19 = vmul.f32 0.25, %v4660_v39  ;;  %v6906_v4 = vpop.f32.mrb[63].mxu1 }
0x2c6a   :  { %v4665_v5 = vsel %vm338_vm3, %v4664_v19, -inf }
0x2c6b   :  { %4666 = vmax.xlane.f32.xlu0 %v4665_v5 }
0x2c6f   :  { %v4932_v6 = vpop.f32.mrb[64].mxu1 }
0x2c70   :  { %v4936_v7 = vmul.f32 0.25, %v4932_v6  ;;  %v6927_v3 = vpop.f32.mrb[65].mxu1 }
0x2c72   :  { %v4937_v47 = vsel %vm338_vm3, %v4936_v7, -inf }
0x2c73   :  { %4938 = vmax.xlane.f32.xlu1 %v4937_v47 }
0x2c84   :  { %7500 = vrot.lane.b32.xlu1 %v8305_v26, %s7773_s8 }
0x2cf8   :  { %v4667_v25 = vpop.xlane.xlu0 %4666 }
0x2cf9   :  { %v4668_v31 = vsub.f32 %v4664_v19, %v4667_v25 }
0x2cfb   :  { %v4669_v58 = vmul.f32 1.442695, %v4668_v31 }
0x2cfd   :  { %7651 = vpow2.f32 %v4669_v58 }
0x2d00   :  { %v4939_v9 = vpop.xlane.xlu1 %4938 }
0x2d01   :  { %v4940_v10 = vsub.f32 %v4936_v7, %v4939_v9 }
0x2d03   :  { %v4941_v11 = vmul.f32 1.442695, %v4940_v10 }
0x2d04   :  { %v7501_v36 = vpop.permute.xlu1 %7500 }
0x2d05   :  { %7653 = vpow2.f32 %v4941_v11  ;;  %v7502_v28 = vunpack.i.l.bf16 %v7501_v36 }
0x2d07   :  { %v7652_v12 = vpop.eup %7651 }
0x2d08   :  { %v4671_v57 = vsel %vm338_vm3, %v7652_v12, 0.0 }
0x2d09   :  { %4672 = vadd.xlane.f32.xlu0 %v4671_v57 }
0x2d0f   :  { %v7654_v30 = vpop.eup %7653 }
0x2d10   :  { %v4943_v13 = vsel %vm338_vm3, %v7654_v30, 0.0 }
0x2d11   :  { %4944 = vadd.xlane.f32.xlu1 %v4943_v13 }
0x2d1f   :  { %7495 = vrot.lane.b32.xlu0 %v8281_v18, %s7776_s11  ;;  %v7503_v18 = vunpack.i.h.bf16 %v7501_v36 }
0x2d21   :  { %v7235_v54 = vpack.c.bf16 %v7503_v18, %v7502_v28 }
0x2d22   :  { %5102 = vrot.lane.b32.xlu1 %v8265_v17, %s7773_s8 }
0x2d23   :  { %7505 = vrot.lane.b32.xlu0 %v8315_v35, %s7773_s8 }
0x2d96   :  { %v4673_v14 = vpop.xlane.xlu0 %4672 }
0x2d97   :  { %7655 = vrcp.f32 %v4673_v14 }
0x2d9a   :  { %v7496_v15 = vpop.permute.xlu0 %7495 }
0x2d9b   :  { %v7498_v16 = vunpack.i.h.bf16 %v7496_v15  ;;  %v7497_v33 = vunpack.i.l.bf16 %v7496_v15 }
0x2d9d   :  { %v7224_v49 = vpack.c.bf16 %v7498_v16, %v7497_v33 }
0x2d9e   :  { %v4945_v51 = vpop.xlane.xlu1 %4944  ;;  %v7506_v8 = vpop.permute.xlu0 %7505 }
0x2d9f   :  { %7225 = vmatpush3.bf16.msra.mxu0 %v7224_v49  ;;  %7657 = vrcp.f32 %v4945_v51  ;;  %v7508_v46 = vunpack.i.h.bf16 %v7506_v8  ;;  %v7507_v24 = vunpack.i.l.bf16 %v7506_v8 }
0x2da0   :  { %7226 = vmatprep.subr.bf16.mxu0 %v7770_v23 }
0x2da1   :  { %v7656_v50 = vpop.eup %7655 }
0x2da2   :  { %v4675_v52 = vmul.f32 %v7656_v50, %v7652_v12  ;;  %v5103_v55 = vpop.permute.xlu1 %5102 }
0x2da4   :  { %6912 = vmatmul.mubr.msk.f32.vlgmr.msra.gmra.mrb[58].mxu0 %vm338_vm3, %v4675_v52 }
0x2da5   :  { %6918 = vmatprep.mubr.msk.f32.mxu0 %vm7771_vm2, %v7769_v0 }
0x2da8   :  { %7229 = vmatpush3.bf16.xpose.msk.msra.mxu0 %vm7877_vm4, %v7227_v48  ;;  %v7241_v48 = vpack.c.bf16 %v7508_v46, %v7507_v24 }
0x2da9   :  { %7234 = vmatprep.subr.bf16.mxu0 %v7770_v23  ;;  %v7658_v53 = vpop.eup %7657 }
0x2daa   :  { %v4947_v37 = vmul.f32 %v7658_v53, %v7654_v30 }
0x2daf   :  { %6919 = vmatmul.mubr.msk.f32.vlgmr.msra.gmra.mrb[60].mxu0 %vm338_vm3, %v8265_v17 }
0x2db0   :  { %7236 = vmatpush3.bf16.msra.mxu0 %v7235_v54  ;;  %6932 = vmatprep.mubr.msk.f32.mxu0 %vm7771_vm2, %v7769_v0 }
0x2db1   :  { %7240 = vmatprep.subr.bf16.mxu0 %v7770_v23 }
0x2db3   :  { %6933 = vmatmul.mubr.msk.f32.vlgmr.msra.gmra.mrb[62].mxu0 %vm338_vm3, %v4947_v37 }
0x2db4   :  { %6946 = vmatprep.mubr.msk.f32.mxu0 %vm7771_vm2, %v7769_v0 }
0x2db9   :  { %7243 = vmatpush3.bf16.xpose.msk.msra.mxu0 %vm7877_vm4, %v7241_v48 }
0x2dba   :  { %7251 = vmatprep.subr.bf16.mxu0 %v7770_v23 }
0x2dc0   :  { %6947 = vmatmul.mubr.msk.f32.vlgmr.msra.gmra.mrb[64].mxu0 %vm338_vm3, %v5103_v55 }
0x2dc1   :  { %6967 = vmatprep.mubr.msk.f32.mxu0 %vm7771_vm2, %v7769_v0 }
0x2e77   :  { %v4751_v60 = vpop.f32.mrb[58].mxu0 }
0x2e78   :  { %v4755_v27 = vadd.f32 %v4751_v60, %v8447_v2  ;;  %v6913_v61 = vpop.f32.mrb[59].mxu0 }
0x2e7a   :  { %v4762_v62 = vadd.f32 %v8488_v56, %v4755_v27 }
0x2e7c   :  { %6143 = vst.msk [vmem:[#allocation7] sm:$0xff] %vm69_vm0, %v4762_v62 }
0x2e82   :  { %v4838_v63 = vpop.f32.mrb[60].mxu0 }
0x2e83   :  { %v4842_v40 = vmul.f32 0.25, %v4838_v63  ;;  %v6920_v41 = vpop.f32.mrb[61].mxu0 }
0x2e85   :  { %v4843_v42 = vsel %vm338_vm3, %v4842_v40, -inf }
0x2e86   :  { %4844 = vmax.xlane.f32.xlu0 %v4843_v42  ;;  %v5025_v32 = vpop.f32.mrb[62].mxu0 }
0x2e87   :  { %v6934_v34 = vpop.f32.mrb[63].mxu0 }
0x2e93   :  { %v5180_v43 = vpop.f32.mrb[64].mxu0 }
0x2e94   :  { %v5184_v45 = vmul.f32 0.25, %v5180_v43  ;;  %v6948_v59 = vpop.f32.mrb[65].mxu0 }
0x2e96   :  { %v5185_v1 = vsel %vm338_vm3, %v5184_v45, -inf }
0x2e97   :  { %5186 = vmax.xlane.f32.xlu1 %v5185_v1 }
0x2ea8   :  { %7510 = vrot.lane.b32.xlu1 %v8305_v26, %s7775_s10 }
0x2eac   :  { %5276 = vrot.lane.b32.xlu1 %v8265_v17, %s7774_s9 }
0x2f13   :  { %v4845_v2 = vpop.xlane.xlu0 %4844 }
0x2f14   :  { %v4846_v38 = vsub.f32 %v4842_v40, %v4845_v2 }
0x2f16   :  { %v4847_v39 = vmul.f32 1.442695, %v4846_v38 }
0x2f18   :  { %7659 = vpow2.f32 %v4847_v39 }
0x2f22   :  { %v7660_v19 = vpop.eup %7659 }
0x2f23   :  { %v4849_v4 = vsel %vm338_vm3, %v7660_v19, 0.0 }
0x2f24   :  { %4850 = vadd.xlane.f32.xlu0 %v4849_v4  ;;  %v5187_v5 = vpop.xlane.xlu1 %5186 }
0x2f25   :  { %v5188_v6 = vsub.f32 %v5184_v45, %v5187_v5 }
0x2f27   :  { %v5189_v7 = vmul.f32 1.442695, %v5188_v6 }
0x2f28   :  { %v7511_v31 = vpop.permute.xlu1 %7510 }
0x2f29   :  { %7661 = vpow2.f32 %v5189_v7  ;;  %v7513_v58 = vunpack.i.h.bf16 %v7511_v31  ;;  %v7512_v9 = vunpack.i.l.bf16 %v7511_v31 }
0x2f2b   :  { %v7245_v12 = vpack.c.bf16 %v7513_v58, %v7512_v9 }
0x2f2c   :  { %v5277_v36 = vpop.permute.xlu1 %5276 }
0x2f33   :  { %v7662_v3 = vpop.eup %7661 }
0x2f34   :  { %v5191_v47 = vsel %vm338_vm3, %v7662_v3, 0.0 }
0x2f35   :  { %5192 = vadd.xlane.f32.xlu0 %v5191_v47 }
0x2f4b   :  { %7515 = vrot.lane.b32.xlu0 %v8315_v35, %s7774_s9 }
0x2fb1   :  { %v4851_v25 = vpop.xlane.xlu0 %4850 }
0x2fb2   :  { %7663 = vrcp.f32 %v4851_v25 }
0x2fbc   :  { %v7664_v10 = vpop.eup %7663 }
0x2fbd   :  { %v4853_v11 = vmul.f32 %v7664_v10, %v7660_v19 }
0x2fbf   :  { %6940 = vmatmul.mubr.msk.f32.vlgmr.msra.gmra.mrb[66].mxu1 %vm338_vm3, %v4853_v11 }
0x2fc0   :  { %7246 = vmatpush3.bf16.msra.mxu1 %v7245_v12  ;;  %6953 = vmatprep.mubr.msk.f32.mxu1 %vm7771_vm2, %v7769_v0 }
0x2fc1   :  { %7247 = vmatprep.subr.bf16.mxu1 %v7770_v23 }
0x2fc2   :  { %v5193_v57 = vpop.xlane.xlu0 %5192 }
0x2fc3   :  { %7665 = vrcp.f32 %v5193_v57 }
0x2fc6   :  { %v7516_v30 = vpop.permute.xlu0 %7515 }
0x2fc7   :  { %v7518_v13 = vunpack.i.h.bf16 %v7516_v30  ;;  %v7517_v14 = vunpack.i.l.bf16 %v7516_v30 }
0x2fc9   :  { %v7248_v33 = vpack.c.bf16 %v7518_v13, %v7517_v14 }
0x2fcd   :  { %v7666_v15 = vpop.eup %7665 }
0x2fce   :  { %v5195_v16 = vmul.f32 %v7666_v15, %v7662_v3 }
0x2fd0   :  { %6954 = vmatmul.mubr.msk.f32.vlgmr.msra.gmra.mrb[68].mxu1 %vm338_vm3, %v5195_v16 }
0x2fd1   :  { %7250 = vmatpush3.bf16.xpose.msk.msra.mxu1 %vm7877_vm4, %v7248_v33  ;;  %6960 = vmatprep.mubr.msk.f32.mxu1 %vm7771_vm2, %v7769_v0 }
0x2fd2   :  { %7258 = vmatprep.subr.bf16.mxu1 %v7770_v23 }
0x2fd8   :  { %6961 = vmatmul.mubr.msk.f32.vlgmr.msra.gmra.mrb[70].mxu1 %vm338_vm3, %v5277_v36 }
0x2fd9   :  { %7260 = vmatpush3.bf16.msra.mxu1 %v7259_v44  ;;  %6981 = vmatprep.mubr.msk.f32.mxu1 %vm7771_vm2, %v7769_v0 }
0x2fda   :  { %7261 = vmatprep.subr.bf16.mxu1 %v7770_v23 }
0x3092   :  { %v5098_v49 = vpop.f32.mrb[66].mxu1 }
0x3093   :  { %v5099_v50 = vadd.f32 %v5098_v49, %v5025_v32  ;;  %v6941_v51 = vpop.f32.mrb[67].mxu1 }
0x30a3   :  { %v5271_v52 = vpop.f32.mrb[68].mxu1 }
0x30a4   :  { %v5275_v18 = vadd.f32 %v5271_v52, %v5099_v50  ;;  %v6955_v28 = vpop.f32.mrb[69].mxu1 }
0x30ab   :  { %v5354_v53 = vpop.f32.mrb[70].mxu1 }
0x30ac   :  { %v5358_v54 = vmul.f32 0.25, %v5354_v53  ;;  %v6962_v8 = vpop.f32.mrb[71].mxu1 }
0x30ae   :  { %v5359_v37 = vsel %vm338_vm3, %v5358_v54, -inf }
0x30af   :  { %5360 = vmax.xlane.f32.xlu1 %v5359_v37 }
0x30c0   :  { %7525 = vrot.lane.b32.xlu1 %v8315_v35, %s7775_s10 }
0x30c4   :  { %5450 = vrot.lane.b32.xlu1 %v8265_v17, %s7775_s10 }
0x313c   :  { %v5361_v20 = vpop.xlane.xlu1 %5360 }
0x313d   :  { %v5362_v21 = vsub.f32 %v5358_v54, %v5361_v20 }
0x313f   :  { %v5363_v44 = vmul.f32 1.442695, %v5362_v21 }
0x3140   :  { %v7526_v62 = vpop.permute.xlu1 %7525 }
0x3141   :  { %7667 = vpow2.f32 %v5363_v44  ;;  %v7528_v40 = vunpack.i.h.bf16 %v7526_v62  ;;  %v7527_v41 = vunpack.i.l.bf16 %v7526_v62 }
0x3144   :  { %v5451_v32 = vpop.permute.xlu1 %5450 }
0x314b   :  { %v7668_v46 = vpop.eup %7667 }
0x314c   :  { %v5365_v24 = vsel %vm338_vm3, %v7668_v46, 0.0 }
0x314d   :  { %5366 = vadd.xlane.f32.xlu0 %v5365_v24 }
0x3163   :  { %7520 = vrot.lane.b32.xlu0 %v8305_v26, %s7776_s11  ;;  %v7255_v26 = vpack.c.bf16 %v7528_v40, %v7527_v41 }
0x31da   :  { %v5367_v48 = vpop.xlane.xlu0 %5366 }
0x31db   :  { %7669 = vrcp.f32 %v5367_v48 }
0x31de   :  { %v7521_v55 = vpop.permute.xlu0 %7520 }
0x31df   :  { %v7523_v60 = vunpack.i.h.bf16 %v7521_v55  ;;  %v7522_v27 = vunpack.i.l.bf16 %v7521_v55 }
0x31e1   :  { %v7252_v61 = vpack.c.bf16 %v7523_v60, %v7522_v27 }
0x31e3   :  { %7253 = vmatpush3.bf16.msra.mxu0 %v7252_v61 }
0x31e4   :  { %7254 = vmatprep.subr.bf16.mxu0 %v7770_v23 }
0x31e5   :  { %v7670_v63 = vpop.eup %7669 }
0x31e6   :  { %v5369_v42 = vmul.f32 %v7670_v63, %v7668_v46 }
0x31e8   :  { %6968 = vmatmul.mubr.msk.f32.vlgmr.msra.gmra.mrb[66].mxu0 %vm338_vm3, %v5369_v42 }
0x31e9   :  { %6974 = vmatprep.mubr.msk.f32.mxu0 %vm7771_vm2, %v7769_v0 }
0x31ec   :  { %7257 = vmatpush3.bf16.xpose.msk.msra.mxu0 %vm7877_vm4, %v7255_v26 }
0x31ed   :  { %7265 = vmatprep.subr.bf16.mxu0 %v7770_v23 }
0x31f3   :  { %6975 = vmatmul.mubr.msk.f32.vlgmr.msra.gmra.mrb[68].mxu0 %vm338_vm3, %v5451_v32 }
0x31f4   :  { %6995 = vmatprep.mubr.msk.f32.mxu0 %vm7771_vm2, %v7769_v0 }
0x32bb   :  { %v5445_v34 = vpop.f32.mrb[66].mxu0 }
0x32bc   :  { %v5449_v43 = vadd.f32 %v5445_v34, %v5275_v18  ;;  %v6969_v45 = vpop.f32.mrb[67].mxu0 }
0x32c6   :  { %v5528_v59 = vpop.f32.mrb[68].mxu0 }
0x32c7   :  { %v5532_v1 = vmul.f32 0.25, %v5528_v59  ;;  %v6976_v2 = vpop.f32.mrb[69].mxu0 }
0x32c9   :  { %v5533_v38 = vsel %vm338_vm3, %v5532_v1, -inf }
0x32ca   :  { %5534 = vmax.xlane.f32.xlu0 %v5533_v38 }
0x32e0   :  { %7530 = vrot.lane.b32.xlu0 %v8315_v35, %s7777_s12 }
0x3357   :  { %v5535_v39 = vpop.xlane.xlu0 %5534 }
0x3358   :  { %v5536_v19 = vsub.f32 %v5532_v1, %v5535_v39 }
0x335a   :  { %v5537_v4 = vmul.f32 1.442695, %v5536_v19 }
0x335b   :  { %v7531_v3 = vpop.permute.xlu0 %7530 }
0x335c   :  { %7671 = vpow2.f32 %v5537_v4  ;;  %v7533_v47 = vunpack.i.h.bf16 %v7531_v3  ;;  %v7532_v25 = vunpack.i.l.bf16 %v7531_v3 }
0x335e   :  { %v7262_v9 = vpack.c.bf16 %v7533_v47, %v7532_v25 }
0x3366   :  { %v7672_v5 = vpop.eup %7671 }
0x3367   :  { %v5539_v6 = vsel %vm338_vm3, %v7672_v5, 0.0 }
0x3368   :  { %5540 = vadd.xlane.f32.xlu1 %v5539_v6 }
0x3379   :  { %5618 = vrot.lane.b32.xlu1 %v8265_v17, %s7777_s12 }
0x33f5   :  { %v5541_v7 = vpop.xlane.xlu1 %5540 }
0x33f6   :  { %7673 = vrcp.f32 %v5541_v7 }
0x33f9   :  { %v5619_v10 = vpop.permute.xlu1 %5618 }
0x3400   :  { %v7674_v31 = vpop.eup %7673 }
0x3401   :  { %v5543_v58 = vmul.f32 %v7674_v31, %v7672_v5 }
0x3403   :  { %6982 = vmatmul.mubr.msk.f32.vlgmr.msra.gmra.mrb[72].mxu1 %vm338_vm3, %v5543_v58 }
0x3404   :  { %7264 = vmatpush3.bf16.xpose.msk.msra.mxu1 %vm7877_vm4, %v7262_v9  ;;  %6988 = vmatprep.mubr.msk.f32.mxu1 %vm7771_vm2, %v7769_v0 }
0x3405   :  { %7272 = vmatprep.subr.bf16.mxu1 %v7770_v23 }
0x340b   :  { %6989 = vmatmul.mubr.msk.f32.vlgmr.msra.gmra.mrb[74].mxu1 %vm338_vm3, %v5619_v10 }
0x340c   :  { %7009 = vmatprep.mubr.msk.f32.mxu1 %vm7771_vm2, %v7769_v0 }
0x34d6   :  { %v5613_v11 = vpop.f32.mrb[72].mxu1 }
0x34d7   :  { %v5617_v12 = vadd.f32 %v5613_v11, %v5449_v43  ;;  %v6983_v57 = vpop.f32.mrb[73].mxu1 }
0x34de   :  { %v5696_v30 = vpop.f32.mrb[74].mxu1 }
0x34df   :  { %v5700_v13 = vmul.f32 0.25, %v5696_v30  ;;  %v6990_v14 = vpop.f32.mrb[75].mxu1 }
0x34e1   :  { %v5701_v15 = vsel %vm338_vm3, %v5700_v13, -inf }
0x34e2   :  { %5702 = vmax.xlane.f32.xlu0 %v5701_v15 }
0x34f8   :  { %7535 = vrot.lane.b32.xlu0 %v8291_v22, %s7773_s8 }
0x34fc   :  { %5794 = vrot.lane.b32.xlu0 %v8265_v17, %s7776_s11 }
0x356f   :  { %v5703_v16 = vpop.xlane.xlu0 %5702 }
0x3570   :  { %v5704_v33 = vsub.f32 %v5700_v13, %v5703_v16 }
0x3572   :  { %v5705_v36 = vmul.f32 1.442695, %v5704_v33 }
0x3573   :  { %v7536_v49 = vpop.permute.xlu0 %7535 }
0x3574   :  { %7675 = vpow2.f32 %v5705_v36  ;;  %v7538_v50 = vunpack.i.h.bf16 %v7536_v49  ;;  %v7537_v51 = vunpack.i.l.bf16 %v7536_v49 }
0x3576   :  { %v7266_v52 = vpack.c.bf16 %v7538_v50, %v7537_v51 }
0x3577   :  { %v5795_v46 = vpop.permute.xlu0 %5794 }
0x3578   :  { %7267 = vmatpush3.bf16.msra.mxu0 %v7266_v52 }
0x3579   :  { %7268 = vmatprep.subr.bf16.mxu0 %v7770_v23 }
0x357e   :  { %v7676_v18 = vpop.eup %7675 }
0x357f   :  { %v5707_v28 = vsel %vm338_vm3, %v7676_v18, 0.0 }
0x3580   :  { %5708 = vadd.xlane.f32.xlu1 %v5707_v28 }
0x3591   :  { %7540 = vrot.lane.b32.xlu1 %v8315_v35, %s7776_s11 }
0x360d   :  { %v5709_v53 = vpop.xlane.xlu1 %5708 }
0x360e   :  { %7677 = vrcp.f32 %v5709_v53 }
0x3611   :  { %v7541_v54 = vpop.permute.xlu1 %7540 }
0x3612   :  { %v7543_v8 = vunpack.i.h.bf16 %v7541_v54  ;;  %v7542_v37 = vunpack.i.l.bf16 %v7541_v54 }
0x3614   :  { %v7269_v44 = vpack.c.bf16 %v7543_v8, %v7542_v37 }
0x3618   :  { %v7678_v20 = vpop.eup %7677 }
0x3619   :  { %v5711_v21 = vmul.f32 %v7678_v20, %v7676_v18 }
0x361b   :  { %6996 = vmatmul.mubr.msk.f32.vlgmr.msra.gmra.mrb[70].mxu0 %vm338_vm3, %v5711_v21 }
0x361c   :  { %7271 = vmatpush3.bf16.xpose.msk.msra.mxu0 %vm7877_vm4, %v7269_v44  ;;  %7002 = vmatprep.mubr.msk.f32.mxu0 %vm7771_vm2, %v7769_v0 }
0x361d   :  { %7279 = vmatprep.subr.bf16.mxu0 %v7770_v23 }
0x3623   :  { %7003 = vmatmul.mubr.msk.f32.vlgmr.msra.gmra.mrb[72].mxu0 %vm338_vm3, %v5795_v46 }
0x3624   :  { %7023 = vmatprep.mubr.msk.f32.mxu0 %vm7771_vm2, %v7769_v0 }
0x36ee   :  { %v5789_v24 = vpop.f32.mrb[70].mxu0 }
0x36ef   :  { %v5793_v48 = vadd.f32 %v5789_v24, %v5617_v12  ;;  %v6997_v55 = vpop.f32.mrb[71].mxu0 }
0x36f6   :  { %v5872_v60 = vpop.f32.mrb[72].mxu0 }
0x36f7   :  { %v5876_v27 = vmul.f32 0.25, %v5872_v60  ;;  %v7004_v61 = vpop.f32.mrb[73].mxu0 }
0x36f9   :  { %v5877_v62 = vsel %vm338_vm3, %v5876_v27, -inf }
0x36fa   :  { %5878 = vmax.xlane.f32.xlu1 %v5877_v62 }
0x370b   :  { %7550 = vrot.lane.b32.xlu1 %v8315_v35, %s7778_s13 }
0x370f   :  { %5968 = vrot.lane.b32.xlu1 %v8265_v17, %s7778_s13 }
0x3787   :  { %v5879_v63 = vpop.xlane.xlu1 %5878 }
0x3788   :  { %v5880_v40 = vsub.f32 %v5876_v27, %v5879_v63 }
0x378a   :  { %v5881_v41 = vmul.f32 1.442695, %v5880_v40 }
0x378b   :  { %v7551_v59 = vpop.permute.xlu1 %7550 }
0x378c   :  { %7679 = vpow2.f32 %v5881_v41  ;;  %v7553_v1 = vunpack.i.h.bf16 %v7551_v59  ;;  %v7552_v2 = vunpack.i.l.bf16 %v7551_v59 }
0x378e   :  { %v7276_v39 = vpack.c.bf16 %v7553_v1, %v7552_v2 }
0x378f   :  { %v5969_v19 = vpop.permute.xlu1 %5968 }
0x3796   :  { %v7680_v42 = vpop.eup %7679 }
0x3797   :  { %v5883_v26 = vsel %vm338_vm3, %v7680_v42, 0.0 }
0x3798   :  { %5884 = vadd.xlane.f32.xlu0 %v5883_v26 }
0x37ae   :  { %7545 = vrot.lane.b32.xlu0 %v8291_v22, %s7775_s10 }
0x3825   :  { %v5885_v32 = vpop.xlane.xlu0 %5884 }
0x3826   :  { %7681 = vrcp.f32 %v5885_v32 }
0x3829   :  { %v7546_v34 = vpop.permute.xlu0 %7545 }
0x382a   :  { %v7548_v43 = vunpack.i.h.bf16 %v7546_v34  ;;  %v7547_v45 = vunpack.i.l.bf16 %v7546_v34 }
0x382c   :  { %v7273_v35 = vpack.c.bf16 %v7548_v43, %v7547_v45 }
0x382e   :  { %7274 = vmatpush3.bf16.msra.mxu1 %v7273_v35 }
0x382f   :  { %7275 = vmatprep.subr.bf16.mxu1 %v7770_v23 }
0x3830   :  { %v7682_v17 = vpop.eup %7681 }
0x3831   :  { %v5887_v38 = vmul.f32 %v7682_v17, %v7680_v42 }
0x3833   :  { %7010 = vmatmul.mubr.msk.f32.vlgmr.msra.gmra.mrb[76].mxu1 %vm338_vm3, %v5887_v38 }
0x3834   :  { %7016 = vmatprep.mubr.msk.f32.mxu1 %vm7771_vm2, %v7769_v0 }
0x3837   :  { %7278 = vmatpush3.bf16.xpose.msk.msra.mxu1 %vm7877_vm4, %v7276_v39 }
0x383e   :  { %7017 = vmatmul.mubr.msk.f32.vlgmr.msra.gmra.mrb[78].mxu1 %vm338_vm3, %v5969_v19 }
0x3906   :  { %v5963_v4 = vpop.f32.mrb[76].mxu1 }
0x3907   :  { %v5967_v5 = vadd.f32 %v5963_v4, %v5793_v48  ;;  %v7011_v6 = vpop.f32.mrb[77].mxu1 }
0x3911   :  { %v6046_v23 = vpop.f32.mrb[78].mxu1 }
0x3912   :  { %v6050_v7 = vmul.f32 0.25, %v6046_v23  ;;  %v7018_v3 = vpop.f32.mrb[79].mxu1 }
0x3914   :  { %v6051_v47 = vsel %vm338_vm3, %v6050_v7, -inf }
0x3915   :  { %6052 = vmax.xlane.f32.xlu0 %v6051_v47 }
0x392b   :  { %7555 = vrot.lane.b32.xlu0 %v8291_v22, %s7776_s11 }
0x39a2   :  { %v6053_v0 = vpop.xlane.xlu0 %6052 }
0x39a3   :  { %v6054_v25 = vsub.f32 %v6050_v7, %v6053_v0 }
0x39a5   :  { %v6055_v31 = vmul.f32 1.442695, %v6054_v25 }
0x39a6   :  { %v7556_v29 = vpop.permute.xlu0 %7555 }
0x39a7   :  { %7683 = vpow2.f32 %v6055_v31  ;;  %v7558_v58 = vunpack.i.h.bf16 %v7556_v29  ;;  %v7557_v9 = vunpack.i.l.bf16 %v7556_v29 }
0x39a9   :  { %v7280_v10 = vpack.c.bf16 %v7558_v58, %v7557_v9 }
0x39ab   :  { %7281 = vmatpush3.bf16.msra.mxu0 %v7280_v10 }
0x39b1   :  { %v7684_v11 = vpop.eup %7683 }
0x39b2   :  { %v6057_v12 = vsel %vm338_vm3, %v7684_v11, 0.0 }
0x39b3   :  { %6058 = vadd.xlane.f32.xlu1 %v6057_v12 }
0x3a40   :  { %v6059_v57 = vpop.xlane.xlu1 %6058 }
0x3a41   :  { %7685 = vrcp.f32 %v6059_v57 }
0x3a4b   :  { %v7686_v30 = vpop.eup %7685 }
0x3a4c   :  { %v6061_v13 = vmul.f32 %v7686_v30, %v7684_v11 }
0x3a4e   :  { %7024 = vmatmul.mubr.msk.f32.vlgmr.msra.gmra.mrb[74].mxu0 %vm338_vm3, %v6061_v13 }
0x3b21   :  { %v6137_v22 = vpop.f32.mrb[74].mxu0 }
0x3b22   :  { %v6141_v14 = vadd.f32 %v6137_v22, %v5967_v5  ;;  %v7025_v15 = vpop.f32.mrb[75].mxu0 }
0x3b24   :  { %v6142_v16 = vadd.f32 %v8488_v56, %v6141_v14 }
0x3b26   :  { %6144 = vst.msk [vmem:[#allocation7 + $0x8] sm:$0xff] %vm69_vm0, %v6142_v16 }
0x3b27   :  { %7746 = shalt.err (!%p7743_p6)
}
0x3b28   :  { %s7747_s0 = scalar_lea.hbm %s8613_s5, 256 }
0x3b29   :  { %p7748_p7 = scmp.ne.s32.totalorder %s8613_s5, %s7747_s0  ;;  %p7751_p8 = scmp.lt.u32.totalorder %s7747_s0, %s8613_s5 }
0x3b2b   :  { %p7753_p9 = pnand %p7751_p8, %p7748_p7 }
0x3b2d   :  { %7756 = shalt.err (!%p7753_p9)
}
0x3b2e   :  { %6156 = dma.vmem_to_hbm [thread:$0]  %s6151_s23, 256, %s8613_s5, [#allocation4], %s7764_s28, %s7764_s28, %s7765_s29  }
0x3b2f   :  { %7761 = dma.done.wait [#allocation4], 256  }
0x3b30   :  { %7762 = vsyncadd [#allocation4], 4294967040 }
0x3b31   :  { %6160 = vsyncpa [#allocation3], 1 }
0x3b32   :  { %6161 = vsyncpa [#allocation6], 1 }
0x3b33   :  { %6162 = vsyncpa [#allocation4], 1 }

</bundles_post_ra>
